<compile_context>
chip_gen: v6e
topology: v6e:2x2x1
jax: 0.10.0
libtpu: 0.0.40
codegen_flags: <defaults>
</compile_context>

<pallas_src>
import functools
import numpy as np
import jax
import jax.numpy as jnp
from jax.experimental import pallas as pl
from jax.experimental.pallas import tpu as pltpu

# ----------------------------- config -----------------------------
WINDOW_SIZE = 4
DIM = 32
NUM_HEADS = 4
MLP_RATIO = 4.0
LN_EPS = 1e-5
DEPTH = 2
H, W = 8, 8
BATCH = 2


# ------------------- host-side layout helpers (numpy / trace time) -------------------
def window_partition(x, ws):
    B, Hh, Ww, C = x.shape
    x = x.reshape(B, Hh // ws, ws, Ww // ws, ws, C)
    return x.transpose(0, 1, 3, 2, 4, 5).reshape(-1, ws, ws, C)


def window_reverse(windows, ws, Hh, Ww):
    C = windows.shape[-1]
    x = windows.reshape(-1, Hh // ws, Ww // ws, ws, ws, C)
    return x.transpose(0, 1, 3, 2, 4, 5).reshape(-1, Hh, Ww, C)


@functools.lru_cache(maxsize=None)
def relative_position_index(ws):
    coords = np.stack(np.meshgrid(np.arange(ws), np.arange(ws), indexing="ij"))
    cf = coords.reshape(2, -1)
    rel = cf[:, :, None] - cf[:, None, :]
    rel = rel.transpose(1, 2, 0).copy()
    rel[:, :, 0] += ws - 1
    rel[:, :, 1] += ws - 1
    rel[:, :, 0] *= 2 * ws - 1
    return rel.sum(-1)                                     # (ws*ws, ws*ws) int


@functools.lru_cache(maxsize=None)
def get_attn_mask(Hh, Ww, ws, shift):
    Wt = ws * ws
    nW = (Hh // ws) * (Ww // ws)
    if shift == 0:
        return np.zeros((nW, Wt, Wt), np.float32)
    img_mask = np.zeros((1, Hh, Ww, 1), np.float32)
    h_slices = (slice(0, -ws), slice(-ws, -shift), slice(-shift, None))
    w_slices = (slice(0, -ws), slice(-ws, -shift), slice(-shift, None))
    cnt = 0
    for hs in h_slices:
        for wsl in w_slices:
            img_mask[:, hs, wsl, :] = cnt
            cnt += 1
    mw = window_partition(img_mask, ws).reshape(-1, Wt)
    attn_mask = mw[:, None, :] - mw[:, :, None]
    return np.where(attn_mask != 0, -100.0, 0.0).astype(np.float32)


def _layer_bias_image(rel_table, Hh, Ww, ws, shift, num_heads):
    """(nH, L, L) additive attention bias for ONE image, natural raster order:
    relative-position bias + Swin shift mask inside each (shifted) window,
    -1e9 for token pairs living in different windows.  Pure numpy, built once."""
    L = Hh * Ww
    Wt = ws * ws
    relb = rel_table[relative_position_index(ws).reshape(-1)]
    relb = relb.reshape(Wt, Wt, num_heads).transpose(2, 0, 1)          # (nH, Wt, Wt)
    smask = get_attn_mask(Hh, Ww, ws, shift)                           # (nW, Wt, Wt)
    r, c = np.meshgrid(np.arange(Hh), np.arange(Ww), indexing="ij")
    rs, cs = (r - shift) % Hh, (c - shift) % Ww                        # coords after roll(-shift)
    wid = ((rs // ws) * (Ww // ws) + (cs // ws)).reshape(L)            # shifted-window id
    pos = ((rs % ws) * ws + (cs % ws)).reshape(L)                      # pos inside window
    same = wid[:, None] == wid[None, :]
    bias = relb[:, pos[:, None], pos[None, :]]                         # (nH, L, L)
    bias = bias + smask[wid[:, None], pos[:, None], pos[None, :]][None]
    return np.where(same[None], bias, np.float32(-1e9)).astype(np.float32)


# ------------------------------ Pallas kernel ------------------------------
def _swin_stage_kernel(x_ref, bias_ref, ln1g_ref, ln1b_ref, wqkv_ref, bqkv_ref,
                       wo_ref, bo_ref, ln2g_ref, ln2b_ref, w1_ref, b1_ref,
                       w2_ref, b2_ref, o_ref, *, depth, num_heads, head_dim, eps):
    """One image (L tokens, natural raster order) per grid step; whole 2-block
    stage fused.  Window partition / cyclic shift / shift mask / rel-pos bias
    are all folded into the precomputed bf16 bias, so the attention is a plain
    masked per-image attention.  MXU operands bf16, everything else f32."""
    f32, bf16 = jnp.float32, jnp.bfloat16
    hid = x_ref[0]                                            # (L, C) f32
    C = num_heads * head_dim

    for l in range(depth):                                    # static unroll (depth=2)
        # ---------------- LayerNorm before attention (f32) ----------------
        mu = jnp.mean(hid, axis=-1, keepdims=True)
        var = jnp.mean(jnp.square(hid - mu), axis=-1, keepdims=True)
        xn = (hid - mu) * jax.lax.rsqrt(var + eps) * ln1g_ref[l] + ln1b_ref[l]

        # -------- fused QKV projection: one (L,C)@(C,3C) bf16 matmul --------
        # (1/sqrt(head_dim) already folded into the Q columns / bias on the host)
        qkv = jnp.dot(xn.astype(bf16), wqkv_ref[l],
                      preferred_element_type=f32) + bqkv_ref[l]        # (L, 3C) f32

        # ---------------- windowed multi-head self-attention ----------------
        ctxs = []
        for h in range(num_heads):                            # static unroll (4)
            q = qkv[:, h * head_dim:(h + 1) * head_dim]
            k = qkv[:, C + h * head_dim:C + (h + 1) * head_dim]
            v = qkv[:, 2 * C + h * head_dim:2 * C + (h + 1) * head_dim]
            s = jax.lax.dot_general(q.astype(bf16), k.astype(bf16),
                                    (((1,), (1,)), ((), ())),
                                    preferred_element_type=f32)        # (L, L)
            s = s + bias_ref[l * num_heads + h].astype(f32)
            s = s - jnp.max(s, axis=-1, keepdims=True)
            e = jnp.exp(s)                                    # cross-window -> exactly 0
            denom = jnp.sum(e, axis=-1, keepdims=True)        # f32 row sum
            ctx = jnp.dot(e.astype(bf16), v.astype(bf16),
                          preferred_element_type=f32)         # (L, hd) unnormalized
            ctxs.append(ctx * pl.reciprocal(denom, approx=True))
        ctx_all = jnp.concatenate(ctxs, axis=-1)              # (L, C)

        # ----------- fused output projection + attention residual -----------
        attn = jnp.dot(ctx_all.astype(bf16), wo_ref[l],
                       preferred_element_type=f32) + bo_ref[l]
        hid = hid + attn

        # ---------- LayerNorm after + MLP(erf-GELU) + residual (f32) ----------
        mu2 = jnp.mean(hid, axis=-1, keepdims=True)
        var2 = jnp.mean(jnp.square(hid - mu2), axis=-1, keepdims=True)
        xn2 = (hid - mu2) * jax.lax.rsqrt(var2 + eps) * ln2g_ref[l] + ln2b_ref[l]
        mid = jnp.dot(xn2.astype(bf16), w1_ref[l],
                      preferred_element_type=f32) + b1_ref[l]
        mid = 0.5 * mid * (1.0 + jax.lax.erf(mid * jnp.float32(0.7071067811865476)))
        hid = hid + jnp.dot(mid.astype(bf16), w2_ref[l],
                            preferred_element_type=f32) + b2_ref[l]

    o_ref[0] = hid


# ------------------------ host-side packing (ONCE per params) ------------------------
def pack_stage_params(params, Hh, Ww):
    """Fold the attention scale into Wq/bq, fuse Q/K/V weights, keep Wo whole,
    precompute the per-image attention bias, downcast MXU operands to bf16."""
    layers = params["layers"]
    depth = len(layers)
    C = int(np.asarray(layers[0]["wq"]).shape[0])
    nH = NUM_HEADS
    assert C % nH == 0
    hd = C // nH
    scale = np.float32(hd ** -0.5)

    wqkv, bqkv, wo, bo = [], [], [], []
    ln1g, ln1b, ln2g, ln2b = [], [], [], []
    w1, b1, w2, b2, biases = [], [], [], [], []
    for i, lp in enumerate(layers):
        shift = 0 if i % 2 == 0 else WINDOW_SIZE // 2
        ws = WINDOW_SIZE
        if min(Hh, Ww) <= ws:                                 # set_shift_and_window_size
            shift, ws = 0, min(Hh, Ww)
        # TODO(synk): maybe_pad path (H/W not multiples of window_size) not implemented
        assert Hh % ws == 0 and Ww % ws == 0

        wq = np.asarray(lp["wq"], np.float32) * scale
        bq = np.asarray(lp["bq"], np.float32) * scale
        wqkv.append(np.concatenate(
            [wq, np.asarray(lp["wk"], np.float32), np.asarray(lp["wv"], np.float32)], axis=1))
        bqkv.append(np.concatenate(
            [bq, np.asarray(lp["bk"], np.float32), np.asarray(lp["bv"], np.float32)], axis=1))
        wo.append(np.asarray(lp["wo"], np.float32))
        bo.append(np.asarray(lp["bo"], np.float32))
        ln1g.append(np.asarray(lp["ln1_g"], np.float32))
        ln1b.append(np.asarray(lp["ln1_b"], np.float32))
        ln2g.append(np.asarray(lp["ln2_g"], np.float32))
        ln2b.append(np.asarray(lp["ln2_b"], np.float32))
        w1.append(np.asarray(lp["w1"], np.float32))
        b1.append(np.asarray(lp["b1"], np.float32))
        w2.append(np.asarray(lp["w2"], np.float32))
        b2.append(np.asarray(lp["b2"], np.float32))
        biases.append(_layer_bias_image(np.asarray(lp["rel_table"], np.float32),
                                        Hh, Ww, ws, shift, nH))

    L = Hh * Ww
    st = lambda xs, dt: jnp.asarray(np.stack(xs, 0), dtype=dt)
    return dict(
        # bf16 bias: in-window values (|x| ~ 0.1 or -100) are unharmed; the -1e9
        # cross-window entries stay effectively -inf for the softmax.
        bias=jnp.asarray(np.stack(biases, 0).reshape(depth * nH, L, L), dtype=jnp.bfloat16),
        ln1_g=st(ln1g, jnp.float32), ln1_b=st(ln1b, jnp.float32),
        wqkv=st(wqkv, jnp.bfloat16), bqkv=st(bqkv, jnp.float32),
        wo=st(wo, jnp.bfloat16), bo=st(bo, jnp.float32),
        ln2_g=st(ln2g, jnp.float32), ln2_b=st(ln2b, jnp.float32),
        w1=st(w1, jnp.bfloat16), b1=st(b1, jnp.float32),
        w2=st(w2, jnp.bfloat16), b2=st(b2, jnp.float32),
    )


# ------------------------------ stage forward ------------------------------
@jax.jit
def _stage_forward(hidden, packed):
    B, L, C = hidden.shape
    depth = packed["ln1_g"].shape[0]
    nH = NUM_HEADS
    hd = C // nH
    Ci = packed["w1"].shape[-1]

    kernel = functools.partial(_swin_stage_kernel, depth=depth, num_heads=nH,
                               head_dim=hd, eps=LN_EPS)

    def rep(shape):                      # whole-array block, same for every grid step
        nd = len(shape)
        return pl.BlockSpec(shape, lambda b: (0,) * nd)

    return pl.pallas_call(
        kernel,
        out_shape=jax.ShapeDtypeStruct((B, L, C), jnp.float32),
        grid=(B,),                                           # one image per step
        in_specs=[
            pl.BlockSpec((1, L, C), lambda b: (b, 0, 0)),    # hidden (per-image slab)
            rep((depth * nH, L, L)),                         # bf16 attention bias (shared)
            rep((depth, 1, C)), rep((depth, 1, C)),          # LN1 gamma / beta
            rep((depth, C, 3 * C)), rep((depth, 1, 3 * C)),  # fused QKV (bf16) + f32 bias
            rep((depth, C, C)), rep((depth, 1, C)),          # Wo (bf16), bo
            rep((depth, 1, C)), rep((depth, 1, C)),          # LN2 gamma / beta
            rep((depth, C, Ci)), rep((depth, 1, Ci)),        # MLP dense 1 (bf16) + bias
            rep((depth, Ci, C)), rep((depth, 1, C)),         # MLP dense 2 (bf16) + bias
        ],
        out_specs=pl.BlockSpec((1, L, C), lambda b: (b, 0, 0)),
        compiler_params=pltpu.CompilerParams(
            dimension_semantics=("parallel",),               # 2nd TensorCore on v7x
            vmem_limit_bytes=8 * 1024 * 1024),
    )(hidden, packed["bias"],
      packed["ln1_g"], packed["ln1_b"], packed["wqkv"], packed["bqkv"],
      packed["wo"], packed["bo"], packed["ln2_g"], packed["ln2_b"],
      packed["w1"], packed["b1"], packed["w2"], packed["b2"])


def donut_swin_stage(hidden, input_dimensions, packed):
    Hh, Ww = input_dimensions
    hidden = _stage_forward(hidden, packed)
    hidden_before_downsampling = hidden
    # downsample=None for this stage -> output dims unchanged
    output_dimensions = (Hh, Ww, Hh, Ww)
    return hidden, hidden_before_downsampling, output_dimensions


# ------------------------------ pure-JAX reference ------------------------------
def _layernorm(x, g, b, eps=LN_EPS):
    mu = jnp.mean(x, axis=-1, keepdims=True)
    var = jnp.mean(jnp.square(x - mu), axis=-1, keepdims=True)
    return (x - mu) * jax.lax.rsqrt(var + eps) * g + b


def _reference_stage(hidden, params, Hh, Ww):
    """Plain-JAX replica of the PyTorch DonutSwinStage forward (eval mode)."""
    B, L, C = hidden.shape
    nH = NUM_HEADS
    hd = C // nH
    for i, lp in enumerate(params["layers"]):
        shift = 0 if i % 2 == 0 else WINDOW_SIZE // 2
        ws = WINDOW_SIZE
        if min(Hh, Ww) <= ws:
            shift, ws = 0, min(Hh, Ww)
        Wt = ws * ws
        nW = (Hh // ws) * (Ww // ws)

        shortcut = hidden
        xn = _layernorm(hidden, lp["ln1_g"], lp["ln1_b"])
        x = xn.reshape(B, Hh, Ww, C)
        if shift > 0:
            x = jnp.roll(x, (-shift, -shift), axis=(1, 2))
        win = window_partition(x, ws).reshape(-1, Wt, C)

        q = win @ lp["wq"] + lp["bq"]
        k = win @ lp["wk"] + lp["bk"]
        v = win @ lp["wv"] + lp["bv"]
        split = lambda t: t.reshape(-1, Wt, nH, hd).transpose(0, 2, 1, 3)
        q, k, v = split(q), split(k), split(v)

        relb = lp["rel_table"][relative_position_index(ws).reshape(-1)]
        relb = relb.reshape(Wt, Wt, nH).transpose(2, 0, 1)
        s = jnp.einsum("bhqd,bhkd->bhqk", q, k) * (hd ** -0.5) + relb[None]
        if shift > 0:
            mask = jnp.asarray(get_attn_mask(Hh, Ww, ws, shift))
            s = s.reshape(B, nW, nH, Wt, Wt) + mask[None, :, None]
            s = s.reshape(-1, nH, Wt, Wt)
        p = jax.nn.softmax(s, axis=-1)
        ctx = jnp.einsum("bhqk,bhkd->bhqd", p, v).transpose(0, 2, 1, 3).reshape(-1, Wt, C)
        attn = ctx @ lp["wo"] + lp["bo"]

        xr = window_reverse(attn.reshape(-1, ws, ws, C), ws, Hh, Ww)
        if shift > 0:
            xr = jnp.roll(xr, (shift, shift), axis=(1, 2))
        hidden = shortcut + xr.reshape(B, L, C)

        xn2 = _layernorm(hidden, lp["ln2_g"], lp["ln2_b"])
        mid = xn2 @ lp["w1"] + lp["b1"]
        mid = 0.5 * mid * (1.0 + jax.lax.erf(mid * 0.7071067811865476))
        hidden = hidden + mid @ lp["w2"] + lp["b2"]
    return hidden


# ------------------------------ params ------------------------------
def init_params(key):
    C = DIM
    Ci = int(MLP_RATIO * C)
    nrel = (2 * WINDOW_SIZE - 1) * (2 * WINDOW_SIZE - 1)

    def nrm(k, shape, s=0.02):
        return (s * jax.random.normal(k, shape)).astype(jnp.float32)

    layers = []
    for i in range(DEPTH):
        ks = jax.random.split(jax.random.fold_in(key, i), 12)
        lp = dict(
            ln1_g=jnp.ones((1, C), jnp.float32), ln1_b=jnp.zeros((1, C), jnp.float32),
            wq=nrm(ks[0], (C, C)), bq=nrm(ks[1], (1, C)),
            wk=nrm(ks[2], (C, C)), bk=nrm(ks[3], (1, C)),
            wv=nrm(ks[4], (C, C)), bv=nrm(ks[5], (1, C)),
            wo=nrm(ks[6], (C, C)), bo=nrm(ks[7], (1, C)),
            rel_table=nrm(ks[8], (nrel, NUM_HEADS)),
            ln2_g=jnp.ones((1, C), jnp.float32), ln2_b=jnp.zeros((1, C), jnp.float32),
            w1=nrm(ks[9], (C, Ci)), b1=nrm(ks[10], (1, Ci)),
            w2=nrm(ks[11], (Ci, C)), b2=jnp.zeros((1, C), jnp.float32),
        )
        layers.append(lp)
    return {"layers": layers}


if __name__ == "__main__":
    key = jax.random.PRNGKey(0)
    params = init_params(jax.random.fold_in(key, 1))
    hidden_states = jax.random.normal(
        jax.random.fold_in(key, 2), (BATCH, H * W, DIM), jnp.float32)

    packed = pack_stage_params(params, H, W)          # host-side, once per parameter set
    out, out_before_ds, out_dims = donut_swin_stage(hidden_states, (H, W), packed)
    jax.block_until_ready(out)

    assert out.shape == (BATCH, H * W, DIM)
    assert out_before_ds.shape == (BATCH, H * W, DIM)
    assert out_dims == (H, W, H, W)
    assert bool(jnp.all(jnp.isfinite(out)))

    ref = _reference_stage(hidden_states, params, H, W)
    max_err = float(jnp.max(jnp.abs(out - ref)))
    assert max_err < 2e-2, f"Pallas output deviates from reference: max_err={max_err}"

    print("KERNEL_OK")
</pallas_src>

<mosaic_0001>
module attributes {stable_mosaic.version = 11 : i64} {
  func.func @_swin_stage_kernel(%arg0: i32, %arg1: memref<1x64x32xf32, #tpu.memory_space<vmem>>, %arg2: memref<8x64x64xbf16, #tpu.memory_space<vmem>>, %arg3: memref<2x1x32xf32, #tpu.memory_space<vmem>>, %arg4: memref<2x1x32xf32, #tpu.memory_space<vmem>>, %arg5: memref<2x32x96xbf16, #tpu.memory_space<vmem>>, %arg6: memref<2x1x96xf32, #tpu.memory_space<vmem>>, %arg7: memref<2x32x32xbf16, #tpu.memory_space<vmem>>, %arg8: memref<2x1x32xf32, #tpu.memory_space<vmem>>, %arg9: memref<2x1x32xf32, #tpu.memory_space<vmem>>, %arg10: memref<2x1x32xf32, #tpu.memory_space<vmem>>, %arg11: memref<2x32x128xbf16, #tpu.memory_space<vmem>>, %arg12: memref<2x1x128xf32, #tpu.memory_space<vmem>>, %arg13: memref<2x128x32xbf16, #tpu.memory_space<vmem>>, %arg14: memref<2x1x32xf32, #tpu.memory_space<vmem>>, %arg15: memref<1x64x32xf32, #tpu.memory_space<vmem>>) attributes {dimension_semantics = [#tpu.dimension_semantics<parallel>], iteration_bounds = array<i64: 2>, scalar_prefetch = 0 : i64, scratch_operands = 0 : i64, tpu.core_type = #tpu.core_type<tc>, window_params = [{transform_indices = @transform_0, window_bounds = array<i64: 1, 64, 32>}, {pipeline_mode = #tpu.pipeline_mode<synchronous>, transform_indices = @transform_1, window_bounds = array<i64: 8, 64, 64>}, {pipeline_mode = #tpu.pipeline_mode<synchronous>, transform_indices = @transform_2, window_bounds = array<i64: 2, 1, 32>}, {pipeline_mode = #tpu.pipeline_mode<synchronous>, transform_indices = @transform_3, window_bounds = array<i64: 2, 1, 32>}, {pipeline_mode = #tpu.pipeline_mode<synchronous>, transform_indices = @transform_4, window_bounds = array<i64: 2, 32, 96>}, {pipeline_mode = #tpu.pipeline_mode<synchronous>, transform_indices = @transform_5, window_bounds = array<i64: 2, 1, 96>}, {pipeline_mode = #tpu.pipeline_mode<synchronous>, transform_indices = @transform_6, window_bounds = array<i64: 2, 32, 32>}, {pipeline_mode = #tpu.pipeline_mode<synchronous>, transform_indices = @transform_7, window_bounds = array<i64: 2, 1, 32>}, {pipeline_mode = #tpu.pipeline_mode<synchronous>, transform_indices = @transform_8, window_bounds = array<i64: 2, 1, 32>}, {pipeline_mode = #tpu.pipeline_mode<synchronous>, transform_indices = @transform_9, window_bounds = array<i64: 2, 1, 32>}, {pipeline_mode = #tpu.pipeline_mode<synchronous>, transform_indices = @transform_10, window_bounds = array<i64: 2, 32, 128>}, {pipeline_mode = #tpu.pipeline_mode<synchronous>, transform_indices = @transform_11, window_bounds = array<i64: 2, 1, 128>}, {pipeline_mode = #tpu.pipeline_mode<synchronous>, transform_indices = @transform_12, window_bounds = array<i64: 2, 128, 32>}, {pipeline_mode = #tpu.pipeline_mode<synchronous>, transform_indices = @transform_13, window_bounds = array<i64: 2, 1, 32>}, {transform_indices = @transform_14, window_bounds = array<i64: 1, 64, 32>}]} {
    %c0 = arith.constant 0 : index
    %c0_0 = arith.constant 0 : index
    %c0_1 = arith.constant 0 : index
    %0 = vector.load %arg1[%c0, %c0_0, %c0_1] : memref<1x64x32xf32, #tpu.memory_space<vmem>>, vector<1x64x32xf32>
    %1 = vector.shape_cast %0 : vector<1x64x32xf32> to vector<64x32xf32>
    %cst = arith.constant dense<0.000000e+00> : vector<64xf32>
    %2 = vector.multi_reduction <add>, %1, %cst [1] : vector<64x32xf32> to vector<64xf32>
    %3 = vector.shape_cast %2 : vector<64xf32> to vector<64x1xf32>
    %cst_2 = arith.constant 3.200000e+01 : f32
    %4 = vector.broadcast %cst_2 : f32 to vector<64x1xf32>
    %5 = arith.divf %3, %4 : vector<64x1xf32>
    %6 = vector.broadcast %5 : vector<64x1xf32> to vector<64x32xf32>
    %7 = arith.subf %1, %6 : vector<64x32xf32>
    %8 = arith.mulf %7, %7 : vector<64x32xf32>
    %cst_3 = arith.constant dense<0.000000e+00> : vector<64xf32>
    %9 = vector.multi_reduction <add>, %8, %cst_3 [1] : vector<64x32xf32> to vector<64xf32>
    %10 = vector.shape_cast %9 : vector<64xf32> to vector<64x1xf32>
    %cst_4 = arith.constant 3.200000e+01 : f32
    %11 = vector.broadcast %cst_4 : f32 to vector<64x1xf32>
    %12 = arith.divf %10, %11 : vector<64x1xf32>
    %13 = vector.broadcast %5 : vector<64x1xf32> to vector<64x32xf32>
    %14 = arith.subf %1, %13 : vector<64x32xf32>
    %cst_5 = arith.constant 9.99999974E-6 : f32
    %15 = vector.broadcast %cst_5 : f32 to vector<64x1xf32>
    %16 = arith.addf %12, %15 : vector<64x1xf32>
    %17 = math.rsqrt %16 : vector<64x1xf32>
    %18 = vector.broadcast %17 : vector<64x1xf32> to vector<64x32xf32>
    %19 = arith.mulf %14, %18 : vector<64x32xf32>
    %c0_6 = arith.constant 0 : index
    %c0_7 = arith.constant 0 : index
    %c0_8 = arith.constant 0 : index
    %20 = vector.load %arg3[%c0_6, %c0_7, %c0_8] : memref<2x1x32xf32, #tpu.memory_space<vmem>>, vector<1x1x32xf32>
    %21 = vector.shape_cast %20 : vector<1x1x32xf32> to vector<1x32xf32>
    %22 = vector.broadcast %21 : vector<1x32xf32> to vector<64x32xf32>
    %23 = arith.mulf %19, %22 : vector<64x32xf32>
    %c0_9 = arith.constant 0 : index
    %c0_10 = arith.constant 0 : index
    %c0_11 = arith.constant 0 : index
    %24 = vector.load %arg4[%c0_9, %c0_10, %c0_11] : memref<2x1x32xf32, #tpu.memory_space<vmem>>, vector<1x1x32xf32>
    %25 = vector.shape_cast %24 : vector<1x1x32xf32> to vector<1x32xf32>
    %26 = vector.broadcast %25 : vector<1x32xf32> to vector<64x32xf32>
    %27 = arith.addf %23, %26 : vector<64x32xf32>
    %28 = arith.truncf %27 : vector<64x32xf32> to vector<64x32xbf16>
    %c0_12 = arith.constant 0 : index
    %c0_13 = arith.constant 0 : index
    %c0_14 = arith.constant 0 : index
    %29 = vector.load %arg5[%c0_12, %c0_13, %c0_14] : memref<2x32x96xbf16, #tpu.memory_space<vmem>>, vector<1x32x96xbf16>
    %30 = vector.shape_cast %29 : vector<1x32x96xbf16> to vector<32x96xbf16>
    %cst_15 = arith.constant dense<0.000000e+00> : vector<64x96xf32>
    %31 = tpu.matmul %28, %30, %cst_15 {dimension_numbers = #tpu.dot_dimension_numbers<[1], [0], [0], [1], [0, 0, 1, 1], [], []>} : vector<64x32xbf16>, vector<32x96xbf16>, vector<64x96xf32> -> vector<64x96xf32>
    %c0_16 = arith.constant 0 : index
    %c0_17 = arith.constant 0 : index
    %c0_18 = arith.constant 0 : index
    %32 = vector.load %arg6[%c0_16, %c0_17, %c0_18] : memref<2x1x96xf32, #tpu.memory_space<vmem>>, vector<1x1x96xf32>
    %33 = vector.shape_cast %32 : vector<1x1x96xf32> to vector<1x96xf32>
    %34 = vector.broadcast %33 : vector<1x96xf32> to vector<64x96xf32>
    %35 = arith.addf %31, %34 : vector<64x96xf32>
    %36 = vector.extract_strided_slice %35 {offsets = [0, 0], sizes = [64, 8], strides = [1, 1]} : vector<64x96xf32> to vector<64x8xf32>
    %37 = vector.extract_strided_slice %35 {offsets = [0, 32], sizes = [64, 8], strides = [1, 1]} : vector<64x96xf32> to vector<64x8xf32>
    %38 = vector.extract_strided_slice %35 {offsets = [0, 64], sizes = [64, 8], strides = [1, 1]} : vector<64x96xf32> to vector<64x8xf32>
    %39 = arith.truncf %36 : vector<64x8xf32> to vector<64x8xbf16>
    %40 = arith.truncf %37 : vector<64x8xf32> to vector<64x8xbf16>
    %cst_19 = arith.constant dense<0.000000e+00> : vector<64x64xf32>
    %41 = tpu.matmul %39, %40, %cst_19 {dimension_numbers = #tpu.dot_dimension_numbers<[1], [1], [0], [0], [0, 0, 1, 0], [], []>} : vector<64x8xbf16>, vector<64x8xbf16>, vector<64x64xf32> -> vector<64x64xf32>
    %c0_20 = arith.constant 0 : index
    %c0_21 = arith.constant 0 : index
    %c0_22 = arith.constant 0 : index
    %42 = vector.load %arg2[%c0_20, %c0_21, %c0_22] : memref<8x64x64xbf16, #tpu.memory_space<vmem>>, vector<1x64x64xbf16>
    %43 = vector.shape_cast %42 : vector<1x64x64xbf16> to vector<64x64xbf16>
    %44 = arith.extf %43 : vector<64x64xbf16> to vector<64x64xf32>
    %45 = arith.addf %41, %44 : vector<64x64xf32>
    %cst_23 = arith.constant dense<0xFF800000> : vector<64xf32>
    %46 = vector.multi_reduction <maximumf>, %45, %cst_23 [1] : vector<64x64xf32> to vector<64xf32>
    %47 = vector.shape_cast %46 : vector<64xf32> to vector<64x1xf32>
    %48 = vector.broadcast %47 : vector<64x1xf32> to vector<64x64xf32>
    %49 = arith.subf %45, %48 : vector<64x64xf32>
    %50 = math.exp %49 : vector<64x64xf32>
    %cst_24 = arith.constant dense<0.000000e+00> : vector<64xf32>
    %51 = vector.multi_reduction <add>, %50, %cst_24 [1] : vector<64x64xf32> to vector<64xf32>
    %52 = vector.shape_cast %51 : vector<64xf32> to vector<64x1xf32>
    %53 = arith.truncf %50 : vector<64x64xf32> to vector<64x64xbf16>
    %54 = arith.truncf %38 : vector<64x8xf32> to vector<64x8xbf16>
    %cst_25 = arith.constant dense<0.000000e+00> : vector<64x8xf32>
    %55 = tpu.matmul %53, %54, %cst_25 {dimension_numbers = #tpu.dot_dimension_numbers<[1], [0], [0], [1], [0, 0, 1, 1], [], []>} : vector<64x64xbf16>, vector<64x8xbf16>, vector<64x8xf32> -> vector<64x8xf32>
    %56 = tpu.reciprocal %52 {approx = true} : vector<64x1xf32> -> vector<64x1xf32>
    %57 = vector.broadcast %56 : vector<64x1xf32> to vector<64x8xf32>
    %58 = arith.mulf %55, %57 : vector<64x8xf32>
    %59 = vector.extract_strided_slice %35 {offsets = [0, 8], sizes = [64, 8], strides = [1, 1]} : vector<64x96xf32> to vector<64x8xf32>
    %60 = vector.extract_strided_slice %35 {offsets = [0, 40], sizes = [64, 8], strides = [1, 1]} : vector<64x96xf32> to vector<64x8xf32>
    %61 = vector.extract_strided_slice %35 {offsets = [0, 72], sizes = [64, 8], strides = [1, 1]} : vector<64x96xf32> to vector<64x8xf32>
    %62 = arith.truncf %59 : vector<64x8xf32> to vector<64x8xbf16>
    %63 = arith.truncf %60 : vector<64x8xf32> to vector<64x8xbf16>
    %cst_26 = arith.constant dense<0.000000e+00> : vector<64x64xf32>
    %64 = tpu.matmul %62, %63, %cst_26 {dimension_numbers = #tpu.dot_dimension_numbers<[1], [1], [0], [0], [0, 0, 1, 0], [], []>} : vector<64x8xbf16>, vector<64x8xbf16>, vector<64x64xf32> -> vector<64x64xf32>
    %c1 = arith.constant 1 : index
    %c0_27 = arith.constant 0 : index
    %c0_28 = arith.constant 0 : index
    %65 = vector.load %arg2[%c1, %c0_27, %c0_28] : memref<8x64x64xbf16, #tpu.memory_space<vmem>>, vector<1x64x64xbf16>
    %66 = vector.shape_cast %65 : vector<1x64x64xbf16> to vector<64x64xbf16>
    %67 = arith.extf %66 : vector<64x64xbf16> to vector<64x64xf32>
    %68 = arith.addf %64, %67 : vector<64x64xf32>
    %cst_29 = arith.constant dense<0xFF800000> : vector<64xf32>
    %69 = vector.multi_reduction <maximumf>, %68, %cst_29 [1] : vector<64x64xf32> to vector<64xf32>
    %70 = vector.shape_cast %69 : vector<64xf32> to vector<64x1xf32>
    %71 = vector.broadcast %70 : vector<64x1xf32> to vector<64x64xf32>
    %72 = arith.subf %68, %71 : vector<64x64xf32>
    %73 = math.exp %72 : vector<64x64xf32>
    %cst_30 = arith.constant dense<0.000000e+00> : vector<64xf32>
    %74 = vector.multi_reduction <add>, %73, %cst_30 [1] : vector<64x64xf32> to vector<64xf32>
    %75 = vector.shape_cast %74 : vector<64xf32> to vector<64x1xf32>
    %76 = arith.truncf %73 : vector<64x64xf32> to vector<64x64xbf16>
    %77 = arith.truncf %61 : vector<64x8xf32> to vector<64x8xbf16>
    %cst_31 = arith.constant dense<0.000000e+00> : vector<64x8xf32>
    %78 = tpu.matmul %76, %77, %cst_31 {dimension_numbers = #tpu.dot_dimension_numbers<[1], [0], [0], [1], [0, 0, 1, 1], [], []>} : vector<64x64xbf16>, vector<64x8xbf16>, vector<64x8xf32> -> vector<64x8xf32>
    %79 = tpu.reciprocal %75 {approx = true} : vector<64x1xf32> -> vector<64x1xf32>
    %80 = vector.broadcast %79 : vector<64x1xf32> to vector<64x8xf32>
    %81 = arith.mulf %78, %80 : vector<64x8xf32>
    %82 = vector.extract_strided_slice %35 {offsets = [0, 16], sizes = [64, 8], strides = [1, 1]} : vector<64x96xf32> to vector<64x8xf32>
    %83 = vector.extract_strided_slice %35 {offsets = [0, 48], sizes = [64, 8], strides = [1, 1]} : vector<64x96xf32> to vector<64x8xf32>
    %84 = vector.extract_strided_slice %35 {offsets = [0, 80], sizes = [64, 8], strides = [1, 1]} : vector<64x96xf32> to vector<64x8xf32>
    %85 = arith.truncf %82 : vector<64x8xf32> to vector<64x8xbf16>
    %86 = arith.truncf %83 : vector<64x8xf32> to vector<64x8xbf16>
    %cst_32 = arith.constant dense<0.000000e+00> : vector<64x64xf32>
    %87 = tpu.matmul %85, %86, %cst_32 {dimension_numbers = #tpu.dot_dimension_numbers<[1], [1], [0], [0], [0, 0, 1, 0], [], []>} : vector<64x8xbf16>, vector<64x8xbf16>, vector<64x64xf32> -> vector<64x64xf32>
    %c2 = arith.constant 2 : index
    %c0_33 = arith.constant 0 : index
    %c0_34 = arith.constant 0 : index
    %88 = vector.load %arg2[%c2, %c0_33, %c0_34] : memref<8x64x64xbf16, #tpu.memory_space<vmem>>, vector<1x64x64xbf16>
    %89 = vector.shape_cast %88 : vector<1x64x64xbf16> to vector<64x64xbf16>
    %90 = arith.extf %89 : vector<64x64xbf16> to vector<64x64xf32>
    %91 = arith.addf %87, %90 : vector<64x64xf32>
    %cst_35 = arith.constant dense<0xFF800000> : vector<64xf32>
    %92 = vector.multi_reduction <maximumf>, %91, %cst_35 [1] : vector<64x64xf32> to vector<64xf32>
    %93 = vector.shape_cast %92 : vector<64xf32> to vector<64x1xf32>
    %94 = vector.broadcast %93 : vector<64x1xf32> to vector<64x64xf32>
    %95 = arith.subf %91, %94 : vector<64x64xf32>
    %96 = math.exp %95 : vector<64x64xf32>
    %cst_36 = arith.constant dense<0.000000e+00> : vector<64xf32>
    %97 = vector.multi_reduction <add>, %96, %cst_36 [1] : vector<64x64xf32> to vector<64xf32>
    %98 = vector.shape_cast %97 : vector<64xf32> to vector<64x1xf32>
    %99 = arith.truncf %96 : vector<64x64xf32> to vector<64x64xbf16>
    %100 = arith.truncf %84 : vector<64x8xf32> to vector<64x8xbf16>
    %cst_37 = arith.constant dense<0.000000e+00> : vector<64x8xf32>
    %101 = tpu.matmul %99, %100, %cst_37 {dimension_numbers = #tpu.dot_dimension_numbers<[1], [0], [0], [1], [0, 0, 1, 1], [], []>} : vector<64x64xbf16>, vector<64x8xbf16>, vector<64x8xf32> -> vector<64x8xf32>
    %102 = tpu.reciprocal %98 {approx = true} : vector<64x1xf32> -> vector<64x1xf32>
    %103 = vector.broadcast %102 : vector<64x1xf32> to vector<64x8xf32>
    %104 = arith.mulf %101, %103 : vector<64x8xf32>
    %105 = vector.extract_strided_slice %35 {offsets = [0, 24], sizes = [64, 8], strides = [1, 1]} : vector<64x96xf32> to vector<64x8xf32>
    %106 = vector.extract_strided_slice %35 {offsets = [0, 56], sizes = [64, 8], strides = [1, 1]} : vector<64x96xf32> to vector<64x8xf32>
    %107 = vector.extract_strided_slice %35 {offsets = [0, 88], sizes = [64, 8], strides = [1, 1]} : vector<64x96xf32> to vector<64x8xf32>
    %108 = arith.truncf %105 : vector<64x8xf32> to vector<64x8xbf16>
    %109 = arith.truncf %106 : vector<64x8xf32> to vector<64x8xbf16>
    %cst_38 = arith.constant dense<0.000000e+00> : vector<64x64xf32>
    %110 = tpu.matmul %108, %109, %cst_38 {dimension_numbers = #tpu.dot_dimension_numbers<[1], [1], [0], [0], [0, 0, 1, 0], [], []>} : vector<64x8xbf16>, vector<64x8xbf16>, vector<64x64xf32> -> vector<64x64xf32>
    %c3 = arith.constant 3 : index
    %c0_39 = arith.constant 0 : index
    %c0_40 = arith.constant 0 : index
    %111 = vector.load %arg2[%c3, %c0_39, %c0_40] : memref<8x64x64xbf16, #tpu.memory_space<vmem>>, vector<1x64x64xbf16>
    %112 = vector.shape_cast %111 : vector<1x64x64xbf16> to vector<64x64xbf16>
    %113 = arith.extf %112 : vector<64x64xbf16> to vector<64x64xf32>
    %114 = arith.addf %110, %113 : vector<64x64xf32>
    %cst_41 = arith.constant dense<0xFF800000> : vector<64xf32>
    %115 = vector.multi_reduction <maximumf>, %114, %cst_41 [1] : vector<64x64xf32> to vector<64xf32>
    %116 = vector.shape_cast %115 : vector<64xf32> to vector<64x1xf32>
    %117 = vector.broadcast %116 : vector<64x1xf32> to vector<64x64xf32>
    %118 = arith.subf %114, %117 : vector<64x64xf32>
    %119 = math.exp %118 : vector<64x64xf32>
    %cst_42 = arith.constant dense<0.000000e+00> : vector<64xf32>
    %120 = vector.multi_reduction <add>, %119, %cst_42 [1] : vector<64x64xf32> to vector<64xf32>
    %121 = vector.shape_cast %120 : vector<64xf32> to vector<64x1xf32>
    %122 = arith.truncf %119 : vector<64x64xf32> to vector<64x64xbf16>
    %123 = arith.truncf %107 : vector<64x8xf32> to vector<64x8xbf16>
    %cst_43 = arith.constant dense<0.000000e+00> : vector<64x8xf32>
    %124 = tpu.matmul %122, %123, %cst_43 {dimension_numbers = #tpu.dot_dimension_numbers<[1], [0], [0], [1], [0, 0, 1, 1], [], []>} : vector<64x64xbf16>, vector<64x8xbf16>, vector<64x8xf32> -> vector<64x8xf32>
    %125 = tpu.reciprocal %121 {approx = true} : vector<64x1xf32> -> vector<64x1xf32>
    %126 = vector.broadcast %125 : vector<64x1xf32> to vector<64x8xf32>
    %127 = arith.mulf %124, %126 : vector<64x8xf32>
    %128 = tpu.concatenate %58, %81, %104, %127 in 1 : vector<64x8xf32>, vector<64x8xf32>, vector<64x8xf32>, vector<64x8xf32> -> vector<64x32xf32>
    %129 = arith.truncf %128 : vector<64x32xf32> to vector<64x32xbf16>
    %c0_44 = arith.constant 0 : index
    %c0_45 = arith.constant 0 : index
    %c0_46 = arith.constant 0 : index
    %130 = vector.load %arg7[%c0_44, %c0_45, %c0_46] : memref<2x32x32xbf16, #tpu.memory_space<vmem>>, vector<1x32x32xbf16>
    %131 = vector.shape_cast %130 : vector<1x32x32xbf16> to vector<32x32xbf16>
    %cst_47 = arith.constant dense<0.000000e+00> : vector<64x32xf32>
    %132 = tpu.matmul %129, %131, %cst_47 {dimension_numbers = #tpu.dot_dimension_numbers<[1], [0], [0], [1], [0, 0, 1, 1], [], []>} : vector<64x32xbf16>, vector<32x32xbf16>, vector<64x32xf32> -> vector<64x32xf32>
    %c0_48 = arith.constant 0 : index
    %c0_49 = arith.constant 0 : index
    %c0_50 = arith.constant 0 : index
    %133 = vector.load %arg8[%c0_48, %c0_49, %c0_50] : memref<2x1x32xf32, #tpu.memory_space<vmem>>, vector<1x1x32xf32>
    %134 = vector.shape_cast %133 : vector<1x1x32xf32> to vector<1x32xf32>
    %135 = vector.broadcast %134 : vector<1x32xf32> to vector<64x32xf32>
    %136 = arith.addf %132, %135 : vector<64x32xf32>
    %137 = arith.addf %1, %136 : vector<64x32xf32>
    %cst_51 = arith.constant dense<0.000000e+00> : vector<64xf32>
    %138 = vector.multi_reduction <add>, %137, %cst_51 [1] : vector<64x32xf32> to vector<64xf32>
    %139 = vector.shape_cast %138 : vector<64xf32> to vector<64x1xf32>
    %cst_52 = arith.constant 3.200000e+01 : f32
    %140 = vector.broadcast %cst_52 : f32 to vector<64x1xf32>
    %141 = arith.divf %139, %140 : vector<64x1xf32>
    %142 = vector.broadcast %141 : vector<64x1xf32> to vector<64x32xf32>
    %143 = arith.subf %137, %142 : vector<64x32xf32>
    %144 = arith.mulf %143, %143 : vector<64x32xf32>
    %cst_53 = arith.constant dense<0.000000e+00> : vector<64xf32>
    %145 = vector.multi_reduction <add>, %144, %cst_53 [1] : vector<64x32xf32> to vector<64xf32>
    %146 = vector.shape_cast %145 : vector<64xf32> to vector<64x1xf32>
    %cst_54 = arith.constant 3.200000e+01 : f32
    %147 = vector.broadcast %cst_54 : f32 to vector<64x1xf32>
    %148 = arith.divf %146, %147 : vector<64x1xf32>
    %149 = vector.broadcast %141 : vector<64x1xf32> to vector<64x32xf32>
    %150 = arith.subf %137, %149 : vector<64x32xf32>
    %cst_55 = arith.constant 9.99999974E-6 : f32
    %151 = vector.broadcast %cst_55 : f32 to vector<64x1xf32>
    %152 = arith.addf %148, %151 : vector<64x1xf32>
    %153 = math.rsqrt %152 : vector<64x1xf32>
    %154 = vector.broadcast %153 : vector<64x1xf32> to vector<64x32xf32>
    %155 = arith.mulf %150, %154 : vector<64x32xf32>
    %c0_56 = arith.constant 0 : index
    %c0_57 = arith.constant 0 : index
    %c0_58 = arith.constant 0 : index
    %156 = vector.load %arg9[%c0_56, %c0_57, %c0_58] : memref<2x1x32xf32, #tpu.memory_space<vmem>>, vector<1x1x32xf32>
    %157 = vector.shape_cast %156 : vector<1x1x32xf32> to vector<1x32xf32>
    %158 = vector.broadcast %157 : vector<1x32xf32> to vector<64x32xf32>
    %159 = arith.mulf %155, %158 : vector<64x32xf32>
    %c0_59 = arith.constant 0 : index
    %c0_60 = arith.constant 0 : index
    %c0_61 = arith.constant 0 : index
    %160 = vector.load %arg10[%c0_59, %c0_60, %c0_61] : memref<2x1x32xf32, #tpu.memory_space<vmem>>, vector<1x1x32xf32>
    %161 = vector.shape_cast %160 : vector<1x1x32xf32> to vector<1x32xf32>
    %162 = vector.broadcast %161 : vector<1x32xf32> to vector<64x32xf32>
    %163 = arith.addf %159, %162 : vector<64x32xf32>
    %164 = arith.truncf %163 : vector<64x32xf32> to vector<64x32xbf16>
    %c0_62 = arith.constant 0 : index
    %c0_63 = arith.constant 0 : index
    %c0_64 = arith.constant 0 : index
    %165 = vector.load %arg11[%c0_62, %c0_63, %c0_64] : memref<2x32x128xbf16, #tpu.memory_space<vmem>>, vector<1x32x128xbf16>
    %166 = vector.shape_cast %165 : vector<1x32x128xbf16> to vector<32x128xbf16>
    %cst_65 = arith.constant dense<0.000000e+00> : vector<64x128xf32>
    %167 = tpu.matmul %164, %166, %cst_65 {dimension_numbers = #tpu.dot_dimension_numbers<[1], [0], [0], [1], [0, 0, 1, 1], [], []>} : vector<64x32xbf16>, vector<32x128xbf16>, vector<64x128xf32> -> vector<64x128xf32>
    %c0_66 = arith.constant 0 : index
    %c0_67 = arith.constant 0 : index
    %c0_68 = arith.constant 0 : index
    %168 = vector.load %arg12[%c0_66, %c0_67, %c0_68] : memref<2x1x128xf32, #tpu.memory_space<vmem>>, vector<1x1x128xf32>
    %169 = vector.shape_cast %168 : vector<1x1x128xf32> to vector<1x128xf32>
    %170 = vector.broadcast %169 : vector<1x128xf32> to vector<64x128xf32>
    %171 = arith.addf %167, %170 : vector<64x128xf32>
    %cst_69 = arith.constant 5.000000e-01 : f32
    %172 = vector.broadcast %cst_69 : f32 to vector<64x128xf32>
    %173 = arith.mulf %172, %171 : vector<64x128xf32>
    %cst_70 = arith.constant 0.707106769 : f32
    %174 = vector.broadcast %cst_70 : f32 to vector<64x128xf32>
    %175 = arith.mulf %171, %174 : vector<64x128xf32>
    %176 = math.erf %175 : vector<64x128xf32>
    %cst_71 = arith.constant 1.000000e+00 : f32
    %177 = vector.broadcast %cst_71 : f32 to vector<64x128xf32>
    %178 = arith.addf %177, %176 : vector<64x128xf32>
    %179 = arith.mulf %173, %178 : vector<64x128xf32>
    %180 = arith.truncf %179 : vector<64x128xf32> to vector<64x128xbf16>
    %c0_72 = arith.constant 0 : index
    %c0_73 = arith.constant 0 : index
    %c0_74 = arith.constant 0 : index
    %181 = vector.load %arg13[%c0_72, %c0_73, %c0_74] : memref<2x128x32xbf16, #tpu.memory_space<vmem>>, vector<1x128x32xbf16>
    %182 = vector.shape_cast %181 : vector<1x128x32xbf16> to vector<128x32xbf16>
    %cst_75 = arith.constant dense<0.000000e+00> : vector<64x32xf32>
    %183 = tpu.matmul %180, %182, %cst_75 {dimension_numbers = #tpu.dot_dimension_numbers<[1], [0], [0], [1], [0, 0, 1, 1], [], []>} : vector<64x128xbf16>, vector<128x32xbf16>, vector<64x32xf32> -> vector<64x32xf32>
    %184 = arith.addf %137, %183 : vector<64x32xf32>
    %c0_76 = arith.constant 0 : index
    %c0_77 = arith.constant 0 : index
    %c0_78 = arith.constant 0 : index
    %185 = vector.load %arg14[%c0_76, %c0_77, %c0_78] : memref<2x1x32xf32, #tpu.memory_space<vmem>>, vector<1x1x32xf32>
    %186 = vector.shape_cast %185 : vector<1x1x32xf32> to vector<1x32xf32>
    %187 = vector.broadcast %186 : vector<1x32xf32> to vector<64x32xf32>
    %188 = arith.addf %184, %187 : vector<64x32xf32>
    %cst_79 = arith.constant dense<0.000000e+00> : vector<64xf32>
    %189 = vector.multi_reduction <add>, %188, %cst_79 [1] : vector<64x32xf32> to vector<64xf32>
    %190 = vector.shape_cast %189 : vector<64xf32> to vector<64x1xf32>
    %cst_80 = arith.constant 3.200000e+01 : f32
    %191 = vector.broadcast %cst_80 : f32 to vector<64x1xf32>
    %192 = arith.divf %190, %191 : vector<64x1xf32>
    %193 = vector.broadcast %192 : vector<64x1xf32> to vector<64x32xf32>
    %194 = arith.subf %188, %193 : vector<64x32xf32>
    %195 = arith.mulf %194, %194 : vector<64x32xf32>
    %cst_81 = arith.constant dense<0.000000e+00> : vector<64xf32>
    %196 = vector.multi_reduction <add>, %195, %cst_81 [1] : vector<64x32xf32> to vector<64xf32>
    %197 = vector.shape_cast %196 : vector<64xf32> to vector<64x1xf32>
    %cst_82 = arith.constant 3.200000e+01 : f32
    %198 = vector.broadcast %cst_82 : f32 to vector<64x1xf32>
    %199 = arith.divf %197, %198 : vector<64x1xf32>
    %200 = vector.broadcast %192 : vector<64x1xf32> to vector<64x32xf32>
    %201 = arith.subf %188, %200 : vector<64x32xf32>
    %cst_83 = arith.constant 9.99999974E-6 : f32
    %202 = vector.broadcast %cst_83 : f32 to vector<64x1xf32>
    %203 = arith.addf %199, %202 : vector<64x1xf32>
    %204 = math.rsqrt %203 : vector<64x1xf32>
    %205 = vector.broadcast %204 : vector<64x1xf32> to vector<64x32xf32>
    %206 = arith.mulf %201, %205 : vector<64x32xf32>
    %c1_84 = arith.constant 1 : index
    %c0_85 = arith.constant 0 : index
    %c0_86 = arith.constant 0 : index
    %207 = vector.load %arg3[%c1_84, %c0_85, %c0_86] : memref<2x1x32xf32, #tpu.memory_space<vmem>>, vector<1x1x32xf32>
    %208 = vector.shape_cast %207 : vector<1x1x32xf32> to vector<1x32xf32>
    %209 = vector.broadcast %208 : vector<1x32xf32> to vector<64x32xf32>
    %210 = arith.mulf %206, %209 : vector<64x32xf32>
    %c1_87 = arith.constant 1 : index
    %c0_88 = arith.constant 0 : index
    %c0_89 = arith.constant 0 : index
    %211 = vector.load %arg4[%c1_87, %c0_88, %c0_89] : memref<2x1x32xf32, #tpu.memory_space<vmem>>, vector<1x1x32xf32>
    %212 = vector.shape_cast %211 : vector<1x1x32xf32> to vector<1x32xf32>
    %213 = vector.broadcast %212 : vector<1x32xf32> to vector<64x32xf32>
    %214 = arith.addf %210, %213 : vector<64x32xf32>
    %215 = arith.truncf %214 : vector<64x32xf32> to vector<64x32xbf16>
    %c1_90 = arith.constant 1 : index
    %c0_91 = arith.constant 0 : index
    %c0_92 = arith.constant 0 : index
    %216 = vector.load %arg5[%c1_90, %c0_91, %c0_92] : memref<2x32x96xbf16, #tpu.memory_space<vmem>>, vector<1x32x96xbf16>
    %217 = vector.shape_cast %216 : vector<1x32x96xbf16> to vector<32x96xbf16>
    %cst_93 = arith.constant dense<0.000000e+00> : vector<64x96xf32>
    %218 = tpu.matmul %215, %217, %cst_93 {dimension_numbers = #tpu.dot_dimension_numbers<[1], [0], [0], [1], [0, 0, 1, 1], [], []>} : vector<64x32xbf16>, vector<32x96xbf16>, vector<64x96xf32> -> vector<64x96xf32>
    %c1_94 = arith.constant 1 : index
    %c0_95 = arith.constant 0 : index
    %c0_96 = arith.constant 0 : index
    %219 = vector.load %arg6[%c1_94, %c0_95, %c0_96] : memref<2x1x96xf32, #tpu.memory_space<vmem>>, vector<1x1x96xf32>
    %220 = vector.shape_cast %219 : vector<1x1x96xf32> to vector<1x96xf32>
    %221 = vector.broadcast %220 : vector<1x96xf32> to vector<64x96xf32>
    %222 = arith.addf %218, %221 : vector<64x96xf32>
    %223 = vector.extract_strided_slice %222 {offsets = [0, 0], sizes = [64, 8], strides = [1, 1]} : vector<64x96xf32> to vector<64x8xf32>
    %224 = vector.extract_strided_slice %222 {offsets = [0, 32], sizes = [64, 8], strides = [1, 1]} : vector<64x96xf32> to vector<64x8xf32>
    %225 = vector.extract_strided_slice %222 {offsets = [0, 64], sizes = [64, 8], strides = [1, 1]} : vector<64x96xf32> to vector<64x8xf32>
    %226 = arith.truncf %223 : vector<64x8xf32> to vector<64x8xbf16>
    %227 = arith.truncf %224 : vector<64x8xf32> to vector<64x8xbf16>
    %cst_97 = arith.constant dense<0.000000e+00> : vector<64x64xf32>
    %228 = tpu.matmul %226, %227, %cst_97 {dimension_numbers = #tpu.dot_dimension_numbers<[1], [1], [0], [0], [0, 0, 1, 0], [], []>} : vector<64x8xbf16>, vector<64x8xbf16>, vector<64x64xf32> -> vector<64x64xf32>
    %c4 = arith.constant 4 : index
    %c0_98 = arith.constant 0 : index
    %c0_99 = arith.constant 0 : index
    %229 = vector.load %arg2[%c4, %c0_98, %c0_99] : memref<8x64x64xbf16, #tpu.memory_space<vmem>>, vector<1x64x64xbf16>
    %230 = vector.shape_cast %229 : vector<1x64x64xbf16> to vector<64x64xbf16>
    %231 = arith.extf %230 : vector<64x64xbf16> to vector<64x64xf32>
    %232 = arith.addf %228, %231 : vector<64x64xf32>
    %cst_100 = arith.constant dense<0xFF800000> : vector<64xf32>
    %233 = vector.multi_reduction <maximumf>, %232, %cst_100 [1] : vector<64x64xf32> to vector<64xf32>
    %234 = vector.shape_cast %233 : vector<64xf32> to vector<64x1xf32>
    %235 = vector.broadcast %234 : vector<64x1xf32> to vector<64x64xf32>
    %236 = arith.subf %232, %235 : vector<64x64xf32>
    %237 = math.exp %236 : vector<64x64xf32>
    %cst_101 = arith.constant dense<0.000000e+00> : vector<64xf32>
    %238 = vector.multi_reduction <add>, %237, %cst_101 [1] : vector<64x64xf32> to vector<64xf32>
    %239 = vector.shape_cast %238 : vector<64xf32> to vector<64x1xf32>
    %240 = arith.truncf %237 : vector<64x64xf32> to vector<64x64xbf16>
    %241 = arith.truncf %225 : vector<64x8xf32> to vector<64x8xbf16>
    %cst_102 = arith.constant dense<0.000000e+00> : vector<64x8xf32>
    %242 = tpu.matmul %240, %241, %cst_102 {dimension_numbers = #tpu.dot_dimension_numbers<[1], [0], [0], [1], [0, 0, 1, 1], [], []>} : vector<64x64xbf16>, vector<64x8xbf16>, vector<64x8xf32> -> vector<64x8xf32>
    %243 = tpu.reciprocal %239 {approx = true} : vector<64x1xf32> -> vector<64x1xf32>
    %244 = vector.broadcast %243 : vector<64x1xf32> to vector<64x8xf32>
    %245 = arith.mulf %242, %244 : vector<64x8xf32>
    %246 = vector.extract_strided_slice %222 {offsets = [0, 8], sizes = [64, 8], strides = [1, 1]} : vector<64x96xf32> to vector<64x8xf32>
    %247 = vector.extract_strided_slice %222 {offsets = [0, 40], sizes = [64, 8], strides = [1, 1]} : vector<64x96xf32> to vector<64x8xf32>
    %248 = vector.extract_strided_slice %222 {offsets = [0, 72], sizes = [64, 8], strides = [1, 1]} : vector<64x96xf32> to vector<64x8xf32>
    %249 = arith.truncf %246 : vector<64x8xf32> to vector<64x8xbf16>
    %250 = arith.truncf %247 : vector<64x8xf32> to vector<64x8xbf16>
    %cst_103 = arith.constant dense<0.000000e+00> : vector<64x64xf32>
    %251 = tpu.matmul %249, %250, %cst_103 {dimension_numbers = #tpu.dot_dimension_numbers<[1], [1], [0], [0], [0, 0, 1, 0], [], []>} : vector<64x8xbf16>, vector<64x8xbf16>, vector<64x64xf32> -> vector<64x64xf32>
    %c5 = arith.constant 5 : index
    %c0_104 = arith.constant 0 : index
    %c0_105 = arith.constant 0 : index
    %252 = vector.load %arg2[%c5, %c0_104, %c0_105] : memref<8x64x64xbf16, #tpu.memory_space<vmem>>, vector<1x64x64xbf16>
    %253 = vector.shape_cast %252 : vector<1x64x64xbf16> to vector<64x64xbf16>
    %254 = arith.extf %253 : vector<64x64xbf16> to vector<64x64xf32>
    %255 = arith.addf %251, %254 : vector<64x64xf32>
    %cst_106 = arith.constant dense<0xFF800000> : vector<64xf32>
    %256 = vector.multi_reduction <maximumf>, %255, %cst_106 [1] : vector<64x64xf32> to vector<64xf32>
    %257 = vector.shape_cast %256 : vector<64xf32> to vector<64x1xf32>
    %258 = vector.broadcast %257 : vector<64x1xf32> to vector<64x64xf32>
    %259 = arith.subf %255, %258 : vector<64x64xf32>
    %260 = math.exp %259 : vector<64x64xf32>
    %cst_107 = arith.constant dense<0.000000e+00> : vector<64xf32>
    %261 = vector.multi_reduction <add>, %260, %cst_107 [1] : vector<64x64xf32> to vector<64xf32>
    %262 = vector.shape_cast %261 : vector<64xf32> to vector<64x1xf32>
    %263 = arith.truncf %260 : vector<64x64xf32> to vector<64x64xbf16>
    %264 = arith.truncf %248 : vector<64x8xf32> to vector<64x8xbf16>
    %cst_108 = arith.constant dense<0.000000e+00> : vector<64x8xf32>
    %265 = tpu.matmul %263, %264, %cst_108 {dimension_numbers = #tpu.dot_dimension_numbers<[1], [0], [0], [1], [0, 0, 1, 1], [], []>} : vector<64x64xbf16>, vector<64x8xbf16>, vector<64x8xf32> -> vector<64x8xf32>
    %266 = tpu.reciprocal %262 {approx = true} : vector<64x1xf32> -> vector<64x1xf32>
    %267 = vector.broadcast %266 : vector<64x1xf32> to vector<64x8xf32>
    %268 = arith.mulf %265, %267 : vector<64x8xf32>
    %269 = vector.extract_strided_slice %222 {offsets = [0, 16], sizes = [64, 8], strides = [1, 1]} : vector<64x96xf32> to vector<64x8xf32>
    %270 = vector.extract_strided_slice %222 {offsets = [0, 48], sizes = [64, 8], strides = [1, 1]} : vector<64x96xf32> to vector<64x8xf32>
    %271 = vector.extract_strided_slice %222 {offsets = [0, 80], sizes = [64, 8], strides = [1, 1]} : vector<64x96xf32> to vector<64x8xf32>
    %272 = arith.truncf %269 : vector<64x8xf32> to vector<64x8xbf16>
    %273 = arith.truncf %270 : vector<64x8xf32> to vector<64x8xbf16>
    %cst_109 = arith.constant dense<0.000000e+00> : vector<64x64xf32>
    %274 = tpu.matmul %272, %273, %cst_109 {dimension_numbers = #tpu.dot_dimension_numbers<[1], [1], [0], [0], [0, 0, 1, 0], [], []>} : vector<64x8xbf16>, vector<64x8xbf16>, vector<64x64xf32> -> vector<64x64xf32>
    %c6 = arith.constant 6 : index
    %c0_110 = arith.constant 0 : index
    %c0_111 = arith.constant 0 : index
    %275 = vector.load %arg2[%c6, %c0_110, %c0_111] : memref<8x64x64xbf16, #tpu.memory_space<vmem>>, vector<1x64x64xbf16>
    %276 = vector.shape_cast %275 : vector<1x64x64xbf16> to vector<64x64xbf16>
    %277 = arith.extf %276 : vector<64x64xbf16> to vector<64x64xf32>
    %278 = arith.addf %274, %277 : vector<64x64xf32>
    %cst_112 = arith.constant dense<0xFF800000> : vector<64xf32>
    %279 = vector.multi_reduction <maximumf>, %278, %cst_112 [1] : vector<64x64xf32> to vector<64xf32>
    %280 = vector.shape_cast %279 : vector<64xf32> to vector<64x1xf32>
    %281 = vector.broadcast %280 : vector<64x1xf32> to vector<64x64xf32>
    %282 = arith.subf %278, %281 : vector<64x64xf32>
    %283 = math.exp %282 : vector<64x64xf32>
    %cst_113 = arith.constant dense<0.000000e+00> : vector<64xf32>
    %284 = vector.multi_reduction <add>, %283, %cst_113 [1] : vector<64x64xf32> to vector<64xf32>
    %285 = vector.shape_cast %284 : vector<64xf32> to vector<64x1xf32>
    %286 = arith.truncf %283 : vector<64x64xf32> to vector<64x64xbf16>
    %287 = arith.truncf %271 : vector<64x8xf32> to vector<64x8xbf16>
    %cst_114 = arith.constant dense<0.000000e+00> : vector<64x8xf32>
    %288 = tpu.matmul %286, %287, %cst_114 {dimension_numbers = #tpu.dot_dimension_numbers<[1], [0], [0], [1], [0, 0, 1, 1], [], []>} : vector<64x64xbf16>, vector<64x8xbf16>, vector<64x8xf32> -> vector<64x8xf32>
    %289 = tpu.reciprocal %285 {approx = true} : vector<64x1xf32> -> vector<64x1xf32>
    %290 = vector.broadcast %289 : vector<64x1xf32> to vector<64x8xf32>
    %291 = arith.mulf %288, %290 : vector<64x8xf32>
    %292 = vector.extract_strided_slice %222 {offsets = [0, 24], sizes = [64, 8], strides = [1, 1]} : vector<64x96xf32> to vector<64x8xf32>
    %293 = vector.extract_strided_slice %222 {offsets = [0, 56], sizes = [64, 8], strides = [1, 1]} : vector<64x96xf32> to vector<64x8xf32>
    %294 = vector.extract_strided_slice %222 {offsets = [0, 88], sizes = [64, 8], strides = [1, 1]} : vector<64x96xf32> to vector<64x8xf32>
    %295 = arith.truncf %292 : vector<64x8xf32> to vector<64x8xbf16>
    %296 = arith.truncf %293 : vector<64x8xf32> to vector<64x8xbf16>
    %cst_115 = arith.constant dense<0.000000e+00> : vector<64x64xf32>
    %297 = tpu.matmul %295, %296, %cst_115 {dimension_numbers = #tpu.dot_dimension_numbers<[1], [1], [0], [0], [0, 0, 1, 0], [], []>} : vector<64x8xbf16>, vector<64x8xbf16>, vector<64x64xf32> -> vector<64x64xf32>
    %c7 = arith.constant 7 : index
    %c0_116 = arith.constant 0 : index
    %c0_117 = arith.constant 0 : index
    %298 = vector.load %arg2[%c7, %c0_116, %c0_117] : memref<8x64x64xbf16, #tpu.memory_space<vmem>>, vector<1x64x64xbf16>
    %299 = vector.shape_cast %298 : vector<1x64x64xbf16> to vector<64x64xbf16>
    %300 = arith.extf %299 : vector<64x64xbf16> to vector<64x64xf32>
    %301 = arith.addf %297, %300 : vector<64x64xf32>
    %cst_118 = arith.constant dense<0xFF800000> : vector<64xf32>
    %302 = vector.multi_reduction <maximumf>, %301, %cst_118 [1] : vector<64x64xf32> to vector<64xf32>
    %303 = vector.shape_cast %302 : vector<64xf32> to vector<64x1xf32>
    %304 = vector.broadcast %303 : vector<64x1xf32> to vector<64x64xf32>
    %305 = arith.subf %301, %304 : vector<64x64xf32>
    %306 = math.exp %305 : vector<64x64xf32>
    %cst_119 = arith.constant dense<0.000000e+00> : vector<64xf32>
    %307 = vector.multi_reduction <add>, %306, %cst_119 [1] : vector<64x64xf32> to vector<64xf32>
    %308 = vector.shape_cast %307 : vector<64xf32> to vector<64x1xf32>
    %309 = arith.truncf %306 : vector<64x64xf32> to vector<64x64xbf16>
    %310 = arith.truncf %294 : vector<64x8xf32> to vector<64x8xbf16>
    %cst_120 = arith.constant dense<0.000000e+00> : vector<64x8xf32>
    %311 = tpu.matmul %309, %310, %cst_120 {dimension_numbers = #tpu.dot_dimension_numbers<[1], [0], [0], [1], [0, 0, 1, 1], [], []>} : vector<64x64xbf16>, vector<64x8xbf16>, vector<64x8xf32> -> vector<64x8xf32>
    %312 = tpu.reciprocal %308 {approx = true} : vector<64x1xf32> -> vector<64x1xf32>
    %313 = vector.broadcast %312 : vector<64x1xf32> to vector<64x8xf32>
    %314 = arith.mulf %311, %313 : vector<64x8xf32>
    %315 = tpu.concatenate %245, %268, %291, %314 in 1 : vector<64x8xf32>, vector<64x8xf32>, vector<64x8xf32>, vector<64x8xf32> -> vector<64x32xf32>
    %316 = arith.truncf %315 : vector<64x32xf32> to vector<64x32xbf16>
    %c1_121 = arith.constant 1 : index
    %c0_122 = arith.constant 0 : index
    %c0_123 = arith.constant 0 : index
    %317 = vector.load %arg7[%c1_121, %c0_122, %c0_123] : memref<2x32x32xbf16, #tpu.memory_space<vmem>>, vector<1x32x32xbf16>
    %318 = vector.shape_cast %317 : vector<1x32x32xbf16> to vector<32x32xbf16>
    %cst_124 = arith.constant dense<0.000000e+00> : vector<64x32xf32>
    %319 = tpu.matmul %316, %318, %cst_124 {dimension_numbers = #tpu.dot_dimension_numbers<[1], [0], [0], [1], [0, 0, 1, 1], [], []>} : vector<64x32xbf16>, vector<32x32xbf16>, vector<64x32xf32> -> vector<64x32xf32>
    %c1_125 = arith.constant 1 : index
    %c0_126 = arith.constant 0 : index
    %c0_127 = arith.constant 0 : index
    %320 = vector.load %arg8[%c1_125, %c0_126, %c0_127] : memref<2x1x32xf32, #tpu.memory_space<vmem>>, vector<1x1x32xf32>
    %321 = vector.shape_cast %320 : vector<1x1x32xf32> to vector<1x32xf32>
    %322 = vector.broadcast %321 : vector<1x32xf32> to vector<64x32xf32>
    %323 = arith.addf %319, %322 : vector<64x32xf32>
    %324 = arith.addf %188, %323 : vector<64x32xf32>
    %cst_128 = arith.constant dense<0.000000e+00> : vector<64xf32>
    %325 = vector.multi_reduction <add>, %324, %cst_128 [1] : vector<64x32xf32> to vector<64xf32>
    %326 = vector.shape_cast %325 : vector<64xf32> to vector<64x1xf32>
    %cst_129 = arith.constant 3.200000e+01 : f32
    %327 = vector.broadcast %cst_129 : f32 to vector<64x1xf32>
    %328 = arith.divf %326, %327 : vector<64x1xf32>
    %329 = vector.broadcast %328 : vector<64x1xf32> to vector<64x32xf32>
    %330 = arith.subf %324, %329 : vector<64x32xf32>
    %331 = arith.mulf %330, %330 : vector<64x32xf32>
    %cst_130 = arith.constant dense<0.000000e+00> : vector<64xf32>
    %332 = vector.multi_reduction <add>, %331, %cst_130 [1] : vector<64x32xf32> to vector<64xf32>
    %333 = vector.shape_cast %332 : vector<64xf32> to vector<64x1xf32>
    %cst_131 = arith.constant 3.200000e+01 : f32
    %334 = vector.broadcast %cst_131 : f32 to vector<64x1xf32>
    %335 = arith.divf %333, %334 : vector<64x1xf32>
    %336 = vector.broadcast %328 : vector<64x1xf32> to vector<64x32xf32>
    %337 = arith.subf %324, %336 : vector<64x32xf32>
    %cst_132 = arith.constant 9.99999974E-6 : f32
    %338 = vector.broadcast %cst_132 : f32 to vector<64x1xf32>
    %339 = arith.addf %335, %338 : vector<64x1xf32>
    %340 = math.rsqrt %339 : vector<64x1xf32>
    %341 = vector.broadcast %340 : vector<64x1xf32> to vector<64x32xf32>
    %342 = arith.mulf %337, %341 : vector<64x32xf32>
    %c1_133 = arith.constant 1 : index
    %c0_134 = arith.constant 0 : index
    %c0_135 = arith.constant 0 : index
    %343 = vector.load %arg9[%c1_133, %c0_134, %c0_135] : memref<2x1x32xf32, #tpu.memory_space<vmem>>, vector<1x1x32xf32>
    %344 = vector.shape_cast %343 : vector<1x1x32xf32> to vector<1x32xf32>
    %345 = vector.broadcast %344 : vector<1x32xf32> to vector<64x32xf32>
    %346 = arith.mulf %342, %345 : vector<64x32xf32>
    %c1_136 = arith.constant 1 : index
    %c0_137 = arith.constant 0 : index
    %c0_138 = arith.constant 0 : index
    %347 = vector.load %arg10[%c1_136, %c0_137, %c0_138] : memref<2x1x32xf32, #tpu.memory_space<vmem>>, vector<1x1x32xf32>
    %348 = vector.shape_cast %347 : vector<1x1x32xf32> to vector<1x32xf32>
    %349 = vector.broadcast %348 : vector<1x32xf32> to vector<64x32xf32>
    %350 = arith.addf %346, %349 : vector<64x32xf32>
    %351 = arith.truncf %350 : vector<64x32xf32> to vector<64x32xbf16>
    %c1_139 = arith.constant 1 : index
    %c0_140 = arith.constant 0 : index
    %c0_141 = arith.constant 0 : index
    %352 = vector.load %arg11[%c1_139, %c0_140, %c0_141] : memref<2x32x128xbf16, #tpu.memory_space<vmem>>, vector<1x32x128xbf16>
    %353 = vector.shape_cast %352 : vector<1x32x128xbf16> to vector<32x128xbf16>
    %cst_142 = arith.constant dense<0.000000e+00> : vector<64x128xf32>
    %354 = tpu.matmul %351, %353, %cst_142 {dimension_numbers = #tpu.dot_dimension_numbers<[1], [0], [0], [1], [0, 0, 1, 1], [], []>} : vector<64x32xbf16>, vector<32x128xbf16>, vector<64x128xf32> -> vector<64x128xf32>
    %c1_143 = arith.constant 1 : index
    %c0_144 = arith.constant 0 : index
    %c0_145 = arith.constant 0 : index
    %355 = vector.load %arg12[%c1_143, %c0_144, %c0_145] : memref<2x1x128xf32, #tpu.memory_space<vmem>>, vector<1x1x128xf32>
    %356 = vector.shape_cast %355 : vector<1x1x128xf32> to vector<1x128xf32>
    %357 = vector.broadcast %356 : vector<1x128xf32> to vector<64x128xf32>
    %358 = arith.addf %354, %357 : vector<64x128xf32>
    %cst_146 = arith.constant 5.000000e-01 : f32
    %359 = vector.broadcast %cst_146 : f32 to vector<64x128xf32>
    %360 = arith.mulf %359, %358 : vector<64x128xf32>
    %cst_147 = arith.constant 0.707106769 : f32
    %361 = vector.broadcast %cst_147 : f32 to vector<64x128xf32>
    %362 = arith.mulf %358, %361 : vector<64x128xf32>
    %363 = math.erf %362 : vector<64x128xf32>
    %cst_148 = arith.constant 1.000000e+00 : f32
    %364 = vector.broadcast %cst_148 : f32 to vector<64x128xf32>
    %365 = arith.addf %364, %363 : vector<64x128xf32>
    %366 = arith.mulf %360, %365 : vector<64x128xf32>
    %367 = arith.truncf %366 : vector<64x128xf32> to vector<64x128xbf16>
    %c1_149 = arith.constant 1 : index
    %c0_150 = arith.constant 0 : index
    %c0_151 = arith.constant 0 : index
    %368 = vector.load %arg13[%c1_149, %c0_150, %c0_151] : memref<2x128x32xbf16, #tpu.memory_space<vmem>>, vector<1x128x32xbf16>
    %369 = vector.shape_cast %368 : vector<1x128x32xbf16> to vector<128x32xbf16>
    %cst_152 = arith.constant dense<0.000000e+00> : vector<64x32xf32>
    %370 = tpu.matmul %367, %369, %cst_152 {dimension_numbers = #tpu.dot_dimension_numbers<[1], [0], [0], [1], [0, 0, 1, 1], [], []>} : vector<64x128xbf16>, vector<128x32xbf16>, vector<64x32xf32> -> vector<64x32xf32>
    %371 = arith.addf %324, %370 : vector<64x32xf32>
    %c1_153 = arith.constant 1 : index
    %c0_154 = arith.constant 0 : index
    %c0_155 = arith.constant 0 : index
    %372 = vector.load %arg14[%c1_153, %c0_154, %c0_155] : memref<2x1x32xf32, #tpu.memory_space<vmem>>, vector<1x1x32xf32>
    %373 = vector.shape_cast %372 : vector<1x1x32xf32> to vector<1x32xf32>
    %374 = vector.broadcast %373 : vector<1x32xf32> to vector<64x32xf32>
    %375 = arith.addf %371, %374 : vector<64x32xf32>
    %c0_156 = arith.constant 0 : index
    %c0_157 = arith.constant 0 : index
    %c0_158 = arith.constant 0 : index
    %376 = vector.load %arg15[%c0_156, %c0_157, %c0_158] : memref<1x64x32xf32, #tpu.memory_space<vmem>>, vector<1x64x32xf32>
    %377 = vector.shape_cast %376 : vector<1x64x32xf32> to vector<64x32xf32>
    %378 = vector.shape_cast %375 : vector<64x32xf32> to vector<1x64x32xf32>
    tpu.vector_store %arg15[%c0_156, %c0_157, %c0_158], %378 {strides = array<i32>} : memref<1x64x32xf32, #tpu.memory_space<vmem>>, vector<1x64x32xf32>,
    return
  }
  func.func @transform_0(%arg0: i32) -> (i32, i32, i32) {
    %c0_i32 = arith.constant 0 : i32
    %c0_i32_0 = arith.constant 0 : i32
    %c0_i32_1 = arith.constant 0 : i32
    return %arg0, %c0_i32, %c0_i32_0 : i32, i32, i32
  }
  func.func @transform_1(%arg0: i32) -> (i32, i32, i32) {
    %c0_i32 = arith.constant 0 : i32
    %c0_i32_0 = arith.constant 0 : i32
    %c0_i32_1 = arith.constant 0 : i32
    %c0_i32_2 = arith.constant 0 : i32
    return %c0_i32, %c0_i32_0, %c0_i32_1 : i32, i32, i32
  }
  func.func @transform_2(%arg0: i32) -> (i32, i32, i32) {
    %c0_i32 = arith.constant 0 : i32
    %c0_i32_0 = arith.constant 0 : i32
    %c0_i32_1 = arith.constant 0 : i32
    %c0_i32_2 = arith.constant 0 : i32
    return %c0_i32, %c0_i32_0, %c0_i32_1 : i32, i32, i32
  }
  func.func @transform_3(%arg0: i32) -> (i32, i32, i32) {
    %c0_i32 = arith.constant 0 : i32
    %c0_i32_0 = arith.constant 0 : i32
    %c0_i32_1 = arith.constant 0 : i32
    %c0_i32_2 = arith.constant 0 : i32
    return %c0_i32, %c0_i32_0, %c0_i32_1 : i32, i32, i32
  }
  func.func @transform_4(%arg0: i32) -> (i32, i32, i32) {
    %c0_i32 = arith.constant 0 : i32
    %c0_i32_0 = arith.constant 0 : i32
    %c0_i32_1 = arith.constant 0 : i32
    %c0_i32_2 = arith.constant 0 : i32
    return %c0_i32, %c0_i32_0, %c0_i32_1 : i32, i32, i32
  }
  func.func @transform_5(%arg0: i32) -> (i32, i32, i32) {
    %c0_i32 = arith.constant 0 : i32
    %c0_i32_0 = arith.constant 0 : i32
    %c0_i32_1 = arith.constant 0 : i32
    %c0_i32_2 = arith.constant 0 : i32
    return %c0_i32, %c0_i32_0, %c0_i32_1 : i32, i32, i32
  }
  func.func @transform_6(%arg0: i32) -> (i32, i32, i32) {
    %c0_i32 = arith.constant 0 : i32
    %c0_i32_0 = arith.constant 0 : i32
    %c0_i32_1 = arith.constant 0 : i32
    %c0_i32_2 = arith.constant 0 : i32
    return %c0_i32, %c0_i32_0, %c0_i32_1 : i32, i32, i32
  }
  func.func @transform_7(%arg0: i32) -> (i32, i32, i32) {
    %c0_i32 = arith.constant 0 : i32
    %c0_i32_0 = arith.constant 0 : i32
    %c0_i32_1 = arith.constant 0 : i32
    %c0_i32_2 = arith.constant 0 : i32
    return %c0_i32, %c0_i32_0, %c0_i32_1 : i32, i32, i32
  }
  func.func @transform_8(%arg0: i32) -> (i32, i32, i32) {
    %c0_i32 = arith.constant 0 : i32
    %c0_i32_0 = arith.constant 0 : i32
    %c0_i32_1 = arith.constant 0 : i32
    %c0_i32_2 = arith.constant 0 : i32
    return %c0_i32, %c0_i32_0, %c0_i32_1 : i32, i32, i32
  }
  func.func @transform_9(%arg0: i32) -> (i32, i32, i32) {
    %c0_i32 = arith.constant 0 : i32
    %c0_i32_0 = arith.constant 0 : i32
    %c0_i32_1 = arith.constant 0 : i32
    %c0_i32_2 = arith.constant 0 : i32
    return %c0_i32, %c0_i32_0, %c0_i32_1 : i32, i32, i32
  }
  func.func @transform_10(%arg0: i32) -> (i32, i32, i32) {
    %c0_i32 = arith.constant 0 : i32
    %c0_i32_0 = arith.constant 0 : i32
    %c0_i32_1 = arith.constant 0 : i32
    %c0_i32_2 = arith.constant 0 : i32
    return %c0_i32, %c0_i32_0, %c0_i32_1 : i32, i32, i32
  }
  func.func @transform_11(%arg0: i32) -> (i32, i32, i32) {
    %c0_i32 = arith.constant 0 : i32
    %c0_i32_0 = arith.constant 0 : i32
    %c0_i32_1 = arith.constant 0 : i32
    %c0_i32_2 = arith.constant 0 : i32
    return %c0_i32, %c0_i32_0, %c0_i32_1 : i32, i32, i32
  }
  func.func @transform_12(%arg0: i32) -> (i32, i32, i32) {
    %c0_i32 = arith.constant 0 : i32
    %c0_i32_0 = arith.constant 0 : i32
    %c0_i32_1 = arith.constant 0 : i32
    %c0_i32_2 = arith.constant 0 : i32
    return %c0_i32, %c0_i32_0, %c0_i32_1 : i32, i32, i32
  }
  func.func @transform_13(%arg0: i32) -> (i32, i32, i32) {
    %c0_i32 = arith.constant 0 : i32
    %c0_i32_0 = arith.constant 0 : i32
    %c0_i32_1 = arith.constant 0 : i32
    %c0_i32_2 = arith.constant 0 : i32
    return %c0_i32, %c0_i32_0, %c0_i32_1 : i32, i32, i32
  }
  func.func @transform_14(%arg0: i32) -> (i32, i32, i32) {
    %c0_i32 = arith.constant 0 : i32
    %c0_i32_0 = arith.constant 0 : i32
    %c0_i32_1 = arith.constant 0 : i32
    return %arg0, %c0_i32, %c0_i32_0 : i32, i32, i32
  }
}

</mosaic_0001>

<bundles_post_ra>
// kernel: _stage_forward.1
= control target key start
LH: loop header
LB: loop body
LE: loop exit
PB: predicated region body
PF: predicated region fallthrough
CT: control target
= control target key end

     0   :  { %19 = vsyncpa [#allocation3], 0  ;;  %s8405_s0 = inlined_call_operand.vmem [shape: f32[2,64,32], index: 0, kind: input, shape index: {}]   ;;  %s8406_s1 = inlined_call_operand.vmem [shape: bf16[8,64,64], index: 1, kind: input, shape index: {}]   ;;  %s8407_s2 = inlined_call_operand.vmem [shape: f32[2,1,32], index: 2, kind: input, shape index: {}]   ;;  %s8408_s3 = inlined_call_operand.vmem [shape: f32[2,1,32], index: 3, kind: input, shape index: {}]   ;;  %s8409_s4 = inlined_call_operand.vmem [shape: bf16[2,32,96], index: 4, kind: input, shape index: {}]   ;;  %s8410_s5 = inlined_call_operand.vmem [shape: f32[2,1,96], index: 5, kind: input, shape index: {}]   ;;  %s8411_s6 = inlined_call_operand.vmem [shape: bf16[2,32,32], index: 6, kind: input, shape index: {}]   ;;  %s8412_s7 = inlined_call_operand.hbm [shape: f32[2,1,32], index: 7, kind: input, shape index: {}]   ;;  %s8413_s8 = inlined_call_operand.vmem [shape: f32[2,1,32], index: 8, kind: input, shape index: {}]   ;;  %s8414_s9 = inlined_call_operand.vmem [shape: f32[2,1,32], index: 9, kind: input, shape index: {}]   ;;  %s8415_s10 = inlined_call_operand.hbm [shape: bf16[2,32,128], index: 10, kind: input, shape index: {}]   ;;  %s8416_s11 = inlined_call_operand.hbm [shape: f32[2,1,128], index: 11, kind: input, shape index: {}]   ;;  %s8417_s12 = inlined_call_operand.vmem [shape: bf16[2,128,32], index: 12, kind: input, shape index: {}]   ;;  %s8418_s13 = inlined_call_operand.hbm [shape: f32[2,1,32], index: 13, kind: input, shape index: {}]   ;;  %s8419_s14 = inlined_call_operand.vmem [shape: f32[2,64,32], index: 14, kind: output, shape index: {}]  }
   0x1   :  { %20 = vsyncpa [#allocation5], 0 }
   0x2   :  { %21 = vsyncpa [#allocation8], 0  ;;  %s6678_s29 = smov 0  }
   0x3 LB: > { %s6581_s30 = smov [#allocation4]   ;;  %s6684_s16 = sadd.s32 4294967295, %s6579_s29   ;;  %s6579_s29 = sphi %s6678_s29, %s27_s29  }
   0x4   : > { %s406_s15 = sshll.u32 %s6581_s30, 4  ;;  %p4891_p0 = scmp.ge.s32.totalorder %s6579_s29, 1  ;;  %s407_s15 = int_to_ptr.vmem [resolvable:$true] %s406_s15 }
   0x5   : > { %p357_p1 = scmp.lt.s32.totalorder %s6579_s29, 3  ;;  %p8420_p2 = scmp.eq.s32.totalorder %s6684_s16, 0 }
   0x6   : > { %s6582_s18 = smov [#allocation2]   ;;  %s6583_s21 = smov [#allocation6]  }
   0x7   : > { %p6689_p3 = pnand %p4891_p0, %p357_p1  ;;  %s387_s19 = sshll.u32 %s6582_s18, 4  ;;  %s6695_s19 = int_to_ptr.vmem [resolvable:$true] %s387_s19 }
   0x8   : > { %s6703_s22 = sshll.u32 %s6583_s21, 4  ;;  %s6468_s23 = scalar_lea.vmem %s407_s15, 512  ;;  %s420_s22 = int_to_ptr.vmem [resolvable:$true] %s6703_s22 }
   0x9   : > { %p5898_p4 = pneg %p6689_p3  ;;  %p6469_p7 = scmp.ne.s32.totalorder %s407_s15, %s6468_s23 }
   0xa   : > { %p6476_p10 = scmp.lt.s32.totalorder %s407_s15, %s407_s15  ;;  %p6477_p11 = scmp.lt.s32.totalorder %s6468_s23, %s6468_s23 }
   0xb   : > { %p6699_p5 = pnand %p8420_p2, %p5898_p4 }
   0xc   : > { %p6478_p12 = por %p6477_p11, %p6476_p10 }
   0xd   : > { %p6459_p6 = pneg %p6699_p5 }
   0xf   : > { %p6471_p8 = pnand %p6469_p7, %p6459_p6 }
  0x11   : > { %p6472_p9 = pneg %p6471_p8 }
  0x13   : > { %p6479_p13 = pnand %p6478_p12, %p6472_p9 }
  0x15   : > { %6482 = shalt.err (!%p6479_p13)
}
  0x16   : > { %s6584_s24 = smov 64   ;;  %s6585_s25 = smov 4  }
  0x17   : > { %5904 = dma.hbm_to_vmem [thread:$0]  (!%p6699_p5), %s8415_s10, 512, %s407_s15, [#allocation5], %s6584_s24, %s6584_s24, %s6585_s25  }
  0x18   : > { %s6494_s28 = scalar_lea.vmem %s6695_s19, 32  ;;  %p6502_p7 = scmp.lt.s32.totalorder %s6695_s19, %s6695_s19 }
  0x19   : > { %p6495_p0 = scmp.ne.s32.totalorder %s6695_s19, %s6494_s28  ;;  %p6503_p8 = scmp.lt.s32.totalorder %s6494_s28, %s6494_s28 }
  0x1b   : > { %p6497_p1 = pnand %p6495_p0, %p6459_p6  ;;  %p6504_p9 = por %p6503_p8, %p6502_p7 }
  0x1d   : > { %p6498_p4 = pneg %p6497_p1 }
  0x1f   : > { %p6505_p10 = pnand %p6504_p9, %p6498_p4 }
  0x21   : > { %6508 = shalt.err (!%p6505_p10)
}
  0x22   : > { %s6586_s30 = smov 16   ;;  %s6587_s18 = smov 1  }
  0x23   : > { %5901 = dma.hbm_to_vmem [thread:$0]  (!%p6699_p5), %s8412_s7, 32, %s6695_s19, [#allocation3], %s6586_s30, %s6586_s30, %s6587_s18  }
  0x24   : > { %s6588_s23 = smov [#allocation7]   ;;  %s6520_s25 = scalar_lea.vmem %s420_s22, 32 }
  0x25   : > { %s435_s24 = sshll.u32 %s6588_s23, 4  ;;  %p6521_p11 = scmp.ne.s32.totalorder %s420_s22, %s6520_s25  ;;  %s436_s24 = int_to_ptr.vmem [resolvable:$true] %s435_s24 }
  0x26   : > { %p6528_p0 = scmp.lt.s32.totalorder %s420_s22, %s420_s22  ;;  %p6529_p1 = scmp.lt.s32.totalorder %s6520_s25, %s6520_s25 }
  0x27   : > { %p6523_p12 = pnand %p6521_p11, %p6459_p6 }
  0x28   : > { %p6530_p4 = por %p6529_p1, %p6528_p0 }
  0x29   : > { %p6524_p13 = pneg %p6523_p12 }
  0x2b   : > { %p6531_p7 = pnand %p6530_p4, %p6524_p13 }
  0x2d   : > { %6534 = shalt.err (!%p6531_p7)
}
  0x2e   : > { %5907 = dma.hbm_to_vmem [thread:$0]  (!%p6699_p5), %s8416_s11, 32, %s420_s22, [#allocation5], %s6586_s30, %s6586_s30, %s6587_s18  }
  0x2f   : > { %s6546_s19 = scalar_lea.vmem %s436_s24, 32  ;;  %p6554_p11 = scmp.lt.s32.totalorder %s436_s24, %s436_s24 }
  0x30   : > { %p6547_p8 = scmp.ne.s32.totalorder %s436_s24, %s6546_s19  ;;  %p6555_p12 = scmp.lt.s32.totalorder %s6546_s19, %s6546_s19 }
  0x32   : > { %p6549_p9 = pnand %p6547_p8, %p6459_p6  ;;  %p6556_p2 = por %p6555_p12, %p6554_p11 }
  0x34   : > { %p6550_p10 = pneg %p6549_p9 }
  0x36   : > { %p6557_p0 = pnand %p6556_p2, %p6550_p10 }
  0x38   : > { %6560 = shalt.err (!%p6557_p0)
}
  0x39   : > { %5910 = dma.hbm_to_vmem [thread:$0]  (!%p6699_p5), %s8418_s13, 32, %s436_s24, [#allocation8], %s6586_s30, %s6586_s30, %s6587_s18  }
  0x3a   : > { %459 = sbr.rel (%p6689_p3) target bundleno = 7364 (0x1cc4), region = 76 }
  0x3f   : > { %p8448_p13 = scmp.eq.s32.totalorder %s6684_s16, 0 }
  0x41   : > { %6566 = dma.done.wait (%p8448_p13), [#allocation3], 32   ;;  %p8449_p6 = pmov %p8448_p13 }
  0x43   : > { %6568 = vsyncadd (%p8449_p6), [#allocation3], 4294967264  ;;  %p8450_p1 = pmov %p8449_p6 }
  0x45   : > { %6570 = dma.done.wait (%p8450_p1), [#allocation5], 544   ;;  %p8451_p2 = pmov %p8450_p1 }
  0x46   : > { %p8452_p4 = pmov %p8450_p1 }
  0x47   : > { %6572 = vsyncadd (%p8451_p2), [#allocation5], 4294966752 }
  0x48   : > { %6574 = dma.done.wait (%p8452_p4), [#allocation8], 32   ;;  %p8453_p5 = pmov %p8450_p1 }
  0x49   : > { %p517_p3 = scmp.lt.s32.totalorder %s6684_s16, 1  ;;  %vm536_vm0 = vcmask 261120   ;;  %v6069_v56 = vld [vmem:[%s8409_s4 + $0x8] sm:$0xff]   ;;  %v6070_v57 = vld [vmem:[%s8409_s4] sm:$0xff]   ;;  %vm808_vm1 = vcmask 64512   ;;  %s6589_s20 = smov 96  }
  0x4a   : > { %6576 = vsyncadd (%p8453_p5), [#allocation8], 4294967264  ;;  %5474 = vmatprep.subr.bf16.mxu1 %v6069_v56  ;;  %s6590_s22 = smov 64   ;;  %s6591_s18 = smov 88   ;;  %vm898_vm2 = vcmask 523264   ;;  %vm2093_vm3 = vcmask 130048  }
  0x4b   : > { %s8496_s16 = smov (!%p517_p3, %s6684_s16), 1  ;;  %5475 = vmatpush3.bf16.msra.mxu1 %v6069_v56  ;;  %s6592_s15 = smov 120   ;;  %vm2102_vm4 = vcmask 195584  }
  0x4c   : > { %s8421_s17 = sshll.u32 %s8496_s16, 6  ;;  %5476 = vmatprep.subr.bf16.mxu1 %v6070_v57  ;;  %s6593_s21 = smov 56  }
  0x4d   : > { %s6769_s30 = scalar_lea.vmem %s8405_s0, %s8421_s17  ;;  %s6594_s23 = smov 80  }
  0x4e   : > { %v528_v0 = vld [vmem:[%s6769_s30] sm:$0xff]  ;;  %v530_v1 = vld [vmem:[%s6769_s30 + $0x10] sm:$0xff]  ;;  %v529_v2 = vld [vmem:[%s6769_s30 + $0x8] sm:$0xff]  ;;  %s8436_s26 = smov 112   ;;  %s8434_s27 = smov 48  }
  0x4f   : > { %v537_v3 = vsel %vm536_vm0, %v528_v0, 0.0  ;;  %v543_v4 = vsel %vm536_vm0, %v530_v1, 0.0  ;;  %v531_v5 = vld [vmem:[%s6769_s30 + $0x18] sm:$0xff]  ;;  %v532_v6 = vld [vmem:[%s6769_s30 + $0x20] sm:$0xff]  ;;  %v533_v7 = vld [vmem:[%s6769_s30 + $0x28] sm:$0xff]  ;;  %v540_v8 = vsel %vm536_vm0, %v529_v2, 0.0  ;;  %5477 = vmatpush3.bf16.msra.mxu1 %v6070_v57 }
  0x50   : > { %538 = vadd.xlane.f32.xlu0 %v537_v3  ;;  %544 = vadd.xlane.f32.xlu1 %v543_v4  ;;  %v546_v9 = vsel %vm536_vm0, %v531_v5, 0.0  ;;  %v549_v10 = vsel %vm536_vm0, %v532_v6, 0.0  ;;  %v552_v11 = vsel %vm536_vm0, %v533_v7, 0.0  ;;  %v534_v12 = vld [vmem:[%s6769_s30 + $0x30] sm:$0xff]  ;;  %v535_v13 = vld [vmem:[%s6769_s30 + $0x38] sm:$0xff]  ;;  %s8432_s19 = smov 72  }
  0x51   : > { %v555_v14 = vsel %vm536_vm0, %v534_v12, 0.0  ;;  %v558_v15 = vsel %vm536_vm0, %v535_v13, 0.0  ;;  %s8422_s17 = smov 104   ;;  %s8424_s28 = smov 40  }
  0x52   : > { %s8428_s24 = smov 16  }
  0x54   : > { %541 = vadd.xlane.f32.xlu0 %v540_v8  ;;  %547 = vadd.xlane.f32.xlu1 %v546_v9 }
  0x58   : > { %550 = vadd.xlane.f32.xlu0 %v549_v10  ;;  %553 = vadd.xlane.f32.xlu1 %v552_v11 }
  0x5c   : > { %556 = vadd.xlane.f32.xlu0 %v555_v14  ;;  %559 = vadd.xlane.f32.xlu1 %v558_v15 }
  0xd9   : > { %v539_v16 = vpop.xlane.xlu0 %538  ;;  %v545_v17 = vpop.xlane.xlu1 %544 }
  0xda   : > { %v562_v18 = vmul.f32 0.03125, %v539_v16  ;;  %v564_v19 = vmul.f32 0.03125, %v545_v17 }
  0xdc   : > { %v6787_v20 = vsub.f32 %v528_v0, %v562_v18  ;;  %v6789_v21 = vsub.f32 %v530_v1, %v564_v19 }
  0xdd   : > { %v542_v22 = vpop.xlane.xlu0 %541  ;;  %v548_v23 = vpop.xlane.xlu1 %547 }
  0xde   : > { %v563_v24 = vmul.f32 0.03125, %v542_v22  ;;  %v565_v25 = vmul.f32 0.03125, %v548_v23  ;;  %v578_v26 = vmul.f32 %v6787_v20, %v6787_v20  ;;  %v580_v27 = vmul.f32 %v6789_v21, %v6789_v21  ;;  %v4906_v22 = vld [vmem:[%s8407_s2] ss:$0 sm:$0xff] }
  0xe0   : > { %v6795_v28 = vsub.f32 %v529_v2, %v563_v24  ;;  %v6797_v29 = vsub.f32 %v531_v5, %v565_v25  ;;  %v586_v30 = vsel %vm536_vm0, %v578_v26, 0.0  ;;  %v592_v33 = vsel %vm536_vm0, %v580_v27, 0.0  ;;  %v4907_v27 = vld [vmem:[%s8408_s3] ss:$0 sm:$0xff] }
  0xe1   : > { %587 = vadd.xlane.f32.xlu0 %v586_v30  ;;  %v551_v31 = vpop.xlane.xlu0 %550  ;;  %v554_v32 = vpop.xlane.xlu1 %553 }
  0xe2   : > { %v566_v34 = vmul.f32 0.03125, %v551_v31  ;;  %v567_v35 = vmul.f32 0.03125, %v554_v32  ;;  %v579_v36 = vmul.f32 %v6795_v28, %v6795_v28  ;;  %v581_v37 = vmul.f32 %v6797_v29, %v6797_v29 }
  0xe4   : > { %v6805_v38 = vsub.f32 %v532_v6, %v566_v34  ;;  %v6807_v39 = vsub.f32 %v533_v7, %v567_v35  ;;  %v589_v40 = vsel %vm536_vm0, %v579_v36, 0.0  ;;  %v595_v43 = vsel %vm536_vm0, %v581_v37, 0.0 }
  0xe5   : > { %593 = vadd.xlane.f32.xlu0 %v592_v33  ;;  %590 = vadd.xlane.f32.xlu1 %v589_v40  ;;  %v557_v41 = vpop.xlane.xlu0 %556  ;;  %v560_v42 = vpop.xlane.xlu1 %559 }
  0xe6   : > { %v568_v44 = vmul.f32 0.03125, %v557_v41  ;;  %v569_v45 = vmul.f32 0.03125, %v560_v42  ;;  %v582_v46 = vmul.f32 %v6805_v38, %v6805_v38  ;;  %v583_v47 = vmul.f32 %v6807_v39, %v6807_v39 }
  0xe8   : > { %v6815_v48 = vsub.f32 %v534_v12, %v568_v44  ;;  %v6817_v49 = vsub.f32 %v535_v13, %v569_v45  ;;  %v598_v50 = vsel %vm536_vm0, %v582_v46, 0.0  ;;  %v601_v51 = vsel %vm536_vm0, %v583_v47, 0.0 }
  0xe9   : > { %596 = vadd.xlane.f32.xlu1 %v595_v43  ;;  %599 = vadd.xlane.f32.xlu0 %v598_v50 }
  0xea   : > { %v584_v52 = vmul.f32 %v6815_v48, %v6815_v48  ;;  %v585_v53 = vmul.f32 %v6817_v49, %v6817_v49 }
  0xec   : > { %v604_v54 = vsel %vm536_vm0, %v584_v52, 0.0  ;;  %v607_v55 = vsel %vm536_vm0, %v585_v53, 0.0 }
  0xed   : > { %602 = vadd.xlane.f32.xlu1 %v601_v51  ;;  %605 = vadd.xlane.f32.xlu0 %v604_v54 }
  0xf1   : > { %608 = vadd.xlane.f32.xlu1 %v607_v55 }
 0x16a   : > { %v588_v58 = vpop.xlane.xlu0 %587 }
 0x16b   : > { %v610_v59 = vmul.f32 0.03125, %v588_v58 }
 0x16d   : > { %v618_v60 = vadd.f32 1e-05, %v610_v59 }
 0x16e   : > { %v591_v61 = vpop.xlane.xlu1 %590  ;;  %v594_v62 = vpop.xlane.xlu0 %593 }
 0x16f   : > { %6097 = vrsqrt.f32 %v618_v60  ;;  %v611_v63 = vmul.f32 0.03125, %v591_v61  ;;  %v612_v0 = vmul.f32 0.03125, %v594_v62  ;;  %v4908_v60 = vld [vmem:[%s8410_s5] ss:$0 sm:$0xff] }
 0x171   : > { %v619_v1 = vadd.f32 1e-05, %v611_v63  ;;  %v620_v2 = vadd.f32 1e-05, %v612_v0 }
 0x172   : > { %v597_v3 = vpop.xlane.xlu1 %596  ;;  %v600_v4 = vpop.xlane.xlu0 %599 }
 0x173   : > { %6099 = vrsqrt.f32 %v619_v1  ;;  %v613_v5 = vmul.f32 0.03125, %v597_v3  ;;  %v614_v6 = vmul.f32 0.03125, %v600_v4 }
 0x174   : > { %6101 = vrsqrt.f32 %v620_v2 }
 0x175   : > { %v621_v7 = vadd.f32 1e-05, %v613_v5  ;;  %v622_v8 = vadd.f32 1e-05, %v614_v6 }
 0x176   : > { %v603_v9 = vpop.xlane.xlu1 %602  ;;  %v606_v10 = vpop.xlane.xlu0 %605 }
 0x177   : > { %6103 = vrsqrt.f32 %v621_v7  ;;  %v615_v11 = vmul.f32 0.03125, %v603_v9  ;;  %v616_v12 = vmul.f32 0.03125, %v606_v10 }
 0x178   : > { %6105 = vrsqrt.f32 %v622_v8 }
 0x179   : > { %v623_v13 = vadd.f32 1e-05, %v615_v11  ;;  %v624_v14 = vadd.f32 1e-05, %v616_v12 }
 0x17a   : > { %v609_v15 = vpop.xlane.xlu1 %608 }
 0x17b   : > { %6107 = vrsqrt.f32 %v623_v13  ;;  %v617_v16 = vmul.f32 0.03125, %v609_v15 }
 0x17c   : > { %v6098_v17 = vpop.eup %6097  ;;  %6109 = vrsqrt.f32 %v624_v14 }
 0x17d   : > { %v625_v18 = vadd.f32 1e-05, %v617_v16  ;;  %v634_v19 = vmul.f32 %v6098_v17, %v6787_v20 }
 0x17f   : > { %6111 = vrsqrt.f32 %v625_v18  ;;  %v649_v26 = vmul.f32 %v4906_v22, %v634_v19 }
 0x180   : > { %v6100_v23 = vpop.eup %6099 }
 0x181   : > { %v6102_v24 = vpop.eup %6101  ;;  %v635_v25 = vmul.f32 %v6100_v23, %v6795_v28  ;;  %v664_v20 = vadd.f32 %v4907_v27, %v649_v26  ;;  %v5128_v26 = vld [vmem:[%s8406_s1] sm:$0xff]  }
 0x182   : > { %v636_v30 = vmul.f32 %v6102_v24, %v6789_v21 }
 0x183   : > { %v650_v31 = vmul.f32 %v4906_v22, %v635_v25  ;;  %v5255_v25 = vld [vmem:[%s8406_s1 + $0x8] sm:$0xff]  }
 0x184   : > { %v6104_v32 = vpop.eup %6103  ;;  %v651_v36 = vmul.f32 %v4906_v22, %v636_v30  ;;  %v5129_v30 = vunpack.c.l.bf16 %v5128_v26 }
 0x185   : > { %v6106_v33 = vpop.eup %6105  ;;  %v665_v34 = vadd.f32 %v4907_v27, %v650_v31  ;;  %v637_v35 = vmul.f32 %v6104_v32, %v6797_v29 }
 0x186   : > { %v638_v37 = vmul.f32 %v6106_v33, %v6805_v38  ;;  %v666_v43 = vadd.f32 %v4907_v27, %v651_v36  ;;  %v5130_v36 = vunpack.c.h.bf16 %v5128_v26 }
 0x187   : > { %v672_v40 = vpack.c.bf16 %v665_v34, %v664_v20  ;;  %v652_v41 = vmul.f32 %v4906_v22, %v637_v35  ;;  %v5134_v35 = vunpack.c.h.bf16 %v5255_v25 }
 0x188   : > { %v6108_v28 = vpop.eup %6107  ;;  %v653_v45 = vmul.f32 %v4906_v22, %v638_v37 }
 0x189   : > { %v6110_v42 = vpop.eup %6109  ;;  %5478 = vmatprep.mubr.msk.bf16.mxu1 %vm536_vm0, %v672_v40  ;;  %v667_v44 = vadd.f32 %v4907_v27, %v652_v41  ;;  %v639_v21 = vmul.f32 %v6108_v28, %v6807_v39 }
 0x18a   : > { %v640_v46 = vmul.f32 %v6110_v42, %v6815_v48  ;;  %v668_v29 = vadd.f32 %v4907_v27, %v653_v45  ;;  %v5256_v45 = vld [vmem:[%s8406_s1 + $0x10] sm:$0xff]  }
 0x18b   : > { %v673_v47 = vpack.c.bf16 %v667_v44, %v666_v43  ;;  %v654_v50 = vmul.f32 %v4906_v22, %v639_v21 }
 0x18c   : > { %v6112_v51 = vpop.eup %6111  ;;  %v655_v53 = vmul.f32 %v4906_v22, %v640_v46  ;;  %v5257_v46 = vld [vmem:[%s8406_s1 + $0x18] sm:$0xff]  }
 0x18d   : > { %5479 = vmatmul.mubr.msk.bf16.vlgmr.msra.gmra.mxu1 %vm536_vm0, %v673_v47  ;;  %v669_v38 = vadd.f32 %v4907_v27, %v654_v50  ;;  %v641_v52 = vmul.f32 %v6112_v51, %v6817_v49  ;;  %v5137_v50 = vunpack.c.l.bf16 %v5256_v45  ;;  %v5141_v51 = vunpack.c.l.bf16 %v5257_v46 }
 0x18e   : > { %v670_v56 = vadd.f32 %v4907_v27, %v655_v53 }
 0x18f   : > { %v674_v54 = vpack.c.bf16 %v669_v38, %v668_v29  ;;  %v656_v55 = vmul.f32 %v4906_v22, %v641_v52  ;;  %v5142_v52 = vunpack.c.h.bf16 %v5257_v46 }
 0x191   : > { %5482 = vmatprep.mubr.msk.bf16.mxu1 %vm536_vm0, %v674_v54  ;;  %v671_v57 = vadd.f32 %v4907_v27, %v656_v55  ;;  %v5133_v27 = vunpack.c.l.bf16 %v5255_v25  ;;  %v5138_v54 = vunpack.c.h.bf16 %v5256_v45 }
 0x193   : > { %v675_v39 = vpack.c.bf16 %v671_v57, %v670_v56 }
 0x195   : > { %5483 = vmatmul.mubr.msk.bf16.gmra.mxu1 %vm536_vm0, %v675_v39 }
 0x24d   : > { %v5480_v48 = vpop.f32.mrf.mxu1 }
 0x24e   : > { %v754_v11 = vadd.f32 %v5480_v48, %v4908_v60 }
 0x24f   : > { %v745_v58 = vpop.f32.mrf.mxu1 }
 0x250   : > { %v746_v62 = vadd.f32 %v4908_v60, %v745_v58 }
 0x251   : > { %v5481_v59 = vpop.f32.mrf.mxu1 }
 0x252   : > { %v757_v9 = vadd.f32 %v5481_v59, %v4908_v60 }
 0x253   : > { %v748_v61 = vpop.f32.mrf.mxu1 }
 0x254   : > { %v749_v49 = vadd.f32 %v4908_v60, %v748_v61  ;;  %v6866_v12 = vpack.c.bf16 %v757_v9, %v754_v11 }
 0x255   : > { %v5484_v63 = vpop.f32.mrf.mxu1 }
 0x256   : > { %v6854_v0 = vpack.c.bf16 %v749_v49, %v746_v62  ;;  %v770_v3 = vadd.f32 %v5484_v63, %v4908_v60 }
 0x257   : > { %v761_v1 = vpop.f32.mrf.mxu1 }
 0x258   : > { %5494 = vmatprep.mubr.msk.bf16.mxu1 %vm808_vm1, %v6854_v0  ;;  %v762_v6 = vadd.f32 %v4908_v60, %v761_v1 }
 0x259   : > { %v5485_v2 = vpop.f32.mrf.mxu1 }
 0x25a   : > { %v773_v4 = vadd.f32 %v5485_v2, %v4908_v60 }
 0x25b   : > { %v764_v5 = vpop.f32.mrf.mxu1 }
 0x25c   : > { %v6858_v7 = vpack.c.bf16 %v773_v4, %v770_v3  ;;  %v765_v8 = vadd.f32 %v4908_v60, %v764_v5 }
 0x25e   : > { %v6860_v10 = vpack.c.bf16 %v765_v8, %v762_v6  ;;  %806 = vrot.lane.b32.xlu0 %v6858_v7, %s6589_s20 }
 0x260   : > { %804 = vrot.lane.b32.xlu1 %v6860_v10, %s6589_s20 }
 0x262   : > { %981 = vrot.lane.b32.xlu0 %v6858_v7, %s6590_s22 }
 0x264   : > { %802 = vrot.lane.b32.xlu1 %v6866_v12, %s6589_s20 }
 0x268   : > { %800 = vrot.lane.b32.xlu1 %v6854_v0, %s6589_s20 }
 0x26c   : > { %979 = vrot.lane.b32.xlu1 %v6860_v10, %s6590_s22 }
 0x270   : > { %975 = vrot.lane.b32.xlu1 %v6854_v0, %s6590_s22 }
 0x274   : > { %1111 = vrot.lane.b32.xlu1 %v6858_v7, %s6591_s18 }
 0x2d0   : > { %v807_v13 = vpop.permute.xlu0 %806 }
 0x2d1   : > { %5850 = vmatprep.subr.msk.bf16.mxu1 %vm808_vm1, %v807_v13  ;;  %v831_v14 = vsel %vm808_vm1, %v807_v13, 0 }
 0x2d2   : > { %5487 = vmatpush3.bf16.xpose.msra.mxu1 %v831_v14  ;;  %v805_v15 = vpop.permute.xlu1 %804 }
 0x2d3   : > { %5851 = vmatprep.subr.msk.bf16.mxu1 %vm808_vm1, %v805_v15  ;;  %v828_v18 = vsel %vm808_vm1, %v805_v15, 0 }
 0x2d4   : > { %v982_v16 = vpop.permute.xlu0 %981 }
 0x2d5   : > { %5502 = vmatprep.subr.bf16.mxu0 %v982_v16 }
 0x2d6   : > { %5503 = vmatpush3.bf16.msra.mxu0 %v982_v16  ;;  %v803_v17 = vpop.permute.xlu1 %802 }
 0x2d7   : > { %v825_v23 = vsel %vm808_vm1, %v803_v17, 0 }
 0x2da   : > { %5489 = vmatpush3.bf16.xpose.msra.mxu1 %v828_v18  ;;  %v801_v19 = vpop.permute.xlu1 %800 }
 0x2db   : > { %5852 = vmatprep.subr.msk.bf16.mxu1 %vm808_vm1, %v803_v17  ;;  %v822_v24 = vsel %vm808_vm1, %v801_v19, 0 }
 0x2de   : > { %v980_v22 = vpop.permute.xlu1 %979 }
 0x2df   : > { %5504 = vmatprep.subr.bf16.mxu0 %v980_v22 }
 0x2e0   : > { %5505 = vmatpush3.bf16.msra.mxu0 %v980_v22 }
 0x2e2   : > { %5491 = vmatpush3.bf16.xpose.msra.mxu1 %v825_v23  ;;  %v976_v60 = vpop.permute.xlu1 %975 }
 0x2e3   : > { %5853 = vmatprep.subr.msk.bf16.mxu1 %vm808_vm1, %v801_v19 }
 0x2e6   : > { %v1112_v62 = vpop.permute.xlu1 %1111 }
 0x2e7   : > { %v1135_v22 = vsel %vm808_vm1, %v1112_v62, 0 }
 0x2ea   : > { %5493 = vmatpush3.bf16.xpose.msra.mxu1 %v822_v24 }
 0x2f1   : > { %5495 = vmatmul.mubr.msk.bf16.vlgmr.msra.gmra.mxu1 %vm808_vm1, %v6866_v12 }
 0x2f2   : > { %5498 = vmatprep.mubr.msk.bf16.mxu1 %vm808_vm1, %v6860_v10 }
 0x2f9   : > { %5499 = vmatmul.mubr.msk.bf16.gmra.mxu1 %vm808_vm1, %v6858_v7 }
 0x3b1   : > { %v5496_v31 = vpop.f32.mrf.mxu1 }
 0x3b2   : > { %v6900_v32 = vadd.f32 %v5496_v31, %v5133_v27 }
 0x3b3   : > { %v867_v33 = vpop.f32.mrf.mxu1 }
 0x3b4   : > { %v868_v20 = vadd.f32 %v5129_v30, %v867_v33  ;;  %v905_v34 = vsel %vm898_vm2, %v6900_v32, -inf }
 0x3b5   : > { %906 = vmax.xlane.f32.xlu0 %v905_v34  ;;  %v5497_v37 = vpop.f32.mrf.mxu1 }
 0x3b6   : > { %v879_v41 = vadd.f32 %v5497_v37, %v5134_v35  ;;  %v899_v42 = vsel %vm898_vm2, %v868_v20, -inf }
 0x3b7   : > { %v870_v40 = vpop.f32.mrf.mxu1 }
 0x3b8   : > { %v871_v28 = vadd.f32 %v5130_v36, %v870_v40  ;;  %v908_v44 = vsel %vm898_vm2, %v879_v41, -inf }
 0x3b9   : > { %900 = vmax.xlane.f32.xlu0 %v899_v42  ;;  %v5500_v21 = vpop.f32.mrf.mxu1 }
 0x3ba   : > { %v902_v43 = vsel %vm898_vm2, %v871_v28, -inf  ;;  %v6919_v53 = vadd.f32 %v5500_v21, %v5141_v51 }
 0x3bb   : > { %903 = vmax.xlane.f32.xlu1 %v902_v43  ;;  %v883_v47 = vpop.f32.mrf.mxu1 }
 0x3bc   : > { %v6917_v38 = vadd.f32 %v5137_v50, %v883_v47  ;;  %v917_v48 = vsel %vm898_vm2, %v6919_v53, -inf }
 0x3bd   : > { %909 = vmax.xlane.f32.xlu0 %v908_v44  ;;  %v5501_v29 = vpop.f32.mrf.mxu1 }
 0x3be   : > { %v6921_v56 = vadd.f32 %v5501_v29, %v5142_v52  ;;  %v911_v57 = vsel %vm898_vm2, %v6917_v38, -inf }
 0x3bf   : > { %v886_v55 = vpop.f32.mrf.mxu1 }
 0x3c0   : > { %v6925_v39 = vadd.f32 %v5138_v54, %v886_v55  ;;  %v920_v58 = vsel %vm898_vm2, %v6921_v56, -inf }
 0x3c2   : > { %v914_v59 = vsel %vm898_vm2, %v6925_v39, -inf }
 0x3cc   : > { %1109 = vrot.lane.b32.xlu1 %v6860_v10, %s6591_s18 }
 0x3d3   : > { %977 = vrot.lane.b32.xlu0 %v6866_v12, %s6590_s22 }
 0x3f0   : > { %912 = vmax.xlane.f32.xlu1 %v911_v57 }
 0x3f2   : > { %918 = vmax.xlane.f32.xlu0 %v917_v48 }
 0x3f4   : > { %921 = vmax.xlane.f32.xlu1 %v920_v58  ;;  %v5259_v58 = vld [vmem:[%s8406_s1 + $0x28] sm:$0xff]  }
 0x3f6   : > { %915 = vmax.xlane.f32.xlu0 %v914_v59 }
 0x405   : > { %1105 = vrot.lane.b32.xlu1 %v6854_v0, %s6591_s18 }
 0x409   : > { %1099 = vrot.lane.b32.xlu1 %v6866_v12, %s6592_s15 }
 0x40c   : > { %1107 = vrot.lane.b32.xlu0 %v6866_v12, %s6591_s18 }
 0x40d   : > { %1103 = vrot.lane.b32.xlu1 %v6858_v7, %s6592_s15 }
 0x410   : > { %1097 = vrot.lane.b32.xlu0 %v6854_v0, %s6592_s15 }
 0x411   : > { %1282 = vrot.lane.b32.xlu1 %v6860_v10, %s6593_s21 }
 0x414   : > { %1101 = vrot.lane.b32.xlu0 %v6860_v10, %s6592_s15 }
 0x415   : > { %1278 = vrot.lane.b32.xlu1 %v6854_v0, %s6593_s21 }
 0x418   : > { %1284 = vrot.lane.b32.xlu0 %v6858_v7, %s6593_s21 }
 0x419   : > { %1414 = vrot.lane.b32.xlu1 %v6858_v7, %s6594_s23 }
 0x43e   : > { %v907_v61 = vpop.xlane.xlu0 %906 }
 0x43f   : > { %v925_v49 = vsub.f32 %v6900_v32, %v907_v61  ;;  %v5149_v61 = vunpack.c.l.bf16 %v5259_v58 }
 0x441   : > { %v935_v5 = vmul.f32 1.442695, %v925_v49 }
 0x442   : > { %v901_v63 = vpop.xlane.xlu0 %900 }
 0x443   : > { %v923_v1 = vsub.f32 %v868_v20, %v901_v63 }
 0x444   : > { %v904_v2 = vpop.xlane.xlu1 %903 }
 0x445   : > { %v931_v3 = vmul.f32 1.442695, %v923_v1  ;;  %v924_v4 = vsub.f32 %v871_v28, %v904_v2 }
 0x446   : > { %v910_v6 = vpop.xlane.xlu0 %909 }
 0x447   : > { %v933_v8 = vmul.f32 1.442695, %v924_v4  ;;  %v926_v9 = vsub.f32 %v879_v41, %v910_v6  ;;  %6113 = vpow2.f32 %v931_v3 }
 0x448   : > { %v1110_v23 = vpop.permute.xlu1 %1109 }
 0x449   : > { %6115 = vpow2.f32 %v933_v8  ;;  %v937_v11 = vmul.f32 1.442695, %v926_v9  ;;  %v1132_v24 = vsel %vm808_vm1, %v1110_v23, 0 }
 0x44a   : > { %6117 = vpow2.f32 %v935_v5  ;;  %v978_v13 = vpop.permute.xlu0 %977  ;;  %v5150_v5 = vunpack.c.h.bf16 %v5259_v58 }
 0x44b   : > { %6119 = vpow2.f32 %v937_v11  ;;  %5506 = vmatprep.subr.bf16.mxu0 %v978_v13 }
 0x44c   : > { %5507 = vmatpush3.bf16.msra.mxu0 %v978_v13 }
 0x44d   : > { %5508 = vmatprep.subr.bf16.mxu0 %v976_v60 }
 0x450   : > { %5509 = vmatpush3.bf16.msra.mxu0 %v976_v60  ;;  %v5258_v60 = vld [vmem:[%s8406_s1 + $0x20] sm:$0xff]  }
 0x451   : > { %5854 = vmatprep.subr.msk.bf16.mxu0 %vm808_vm1, %v1112_v62  ;;  %v5145_v49 = vunpack.c.l.bf16 %v5258_v60  ;;  %v5146_v6 = vunpack.c.h.bf16 %v5258_v60 }
 0x454   : > { %v6955_v14 = vpop.eup %6113 }
 0x456   : > { %v6957_v15 = vpop.eup %6115 }
 0x457   : > { %v6959_v16 = vpop.eup %6117  ;;  %v971_v17 = vpack.c.bf16 %v6957_v15, %v6955_v14 }
 0x458   : > { %v6963_v18 = vpop.eup %6119 }
 0x459   : > { %5510 = vmatprep.mubr.msk.bf16.mxu0 %vm898_vm2, %v971_v17  ;;  %v972_v19 = vpack.c.bf16 %v6963_v18, %v6959_v16 }
 0x45b   : > { %5511 = vmatmul.mubr.msk.bf16.vlgmr.msra.gmra.mxu0 %vm898_vm2, %v972_v19 }
 0x45c   : > { %5519 = vmatpush3.bf16.xpose.msra.mxu0 %v1135_v22 }
 0x45d   : > { %5855 = vmatprep.subr.msk.bf16.mxu0 %vm808_vm1, %v1110_v23 }
 0x464   : > { %5521 = vmatpush3.bf16.xpose.msra.mxu0 %v1132_v24  ;;  %v5260_v24 = vld [vmem:[%s8406_s1 + $0x30] sm:$0xff]  }
 0x479   : > { %v913_v25 = vpop.xlane.xlu1 %912 }
 0x47a   : > { %v927_v26 = vsub.f32 %v6917_v38, %v913_v25  ;;  %v5261_v25 = vld [vmem:[%s8406_s1 + $0x38] sm:$0xff]  }
 0x47b   : > { %v919_v27 = vpop.xlane.xlu0 %918 }
 0x47c   : > { %v929_v30 = vsub.f32 %v6919_v53, %v919_v27  ;;  %v939_v32 = vmul.f32 1.442695, %v927_v26  ;;  %v5153_v27 = vunpack.c.l.bf16 %v5260_v24 }
 0x47d   : > { %v922_v31 = vpop.xlane.xlu1 %921 }
 0x47e   : > { %v930_v33 = vsub.f32 %v6921_v56, %v922_v31  ;;  %v943_v36 = vmul.f32 1.442695, %v929_v30  ;;  %6121 = vpow2.f32 %v939_v32  ;;  %v5157_v30 = vunpack.c.l.bf16 %v5261_v25 }
 0x47f   : > { %v916_v20 = vpop.xlane.xlu0 %915 }
 0x480   : > { %v945_v34 = vmul.f32 1.442695, %v930_v33  ;;  %v928_v35 = vsub.f32 %v6925_v39, %v916_v20  ;;  %v5158_v33 = vunpack.c.h.bf16 %v5261_v25 }
 0x481   : > { %v1106_v37 = vpop.permute.xlu1 %1105 }
 0x482   : > { %v941_v40 = vmul.f32 1.442695, %v928_v35  ;;  %6123 = vpow2.f32 %v945_v34  ;;  %v1126_v45 = vsel %vm808_vm1, %v1106_v37, 0  ;;  %v5154_v34 = vunpack.c.h.bf16 %v5260_v24 }
 0x483   : > { %v1108_v41 = vpop.permute.xlu0 %1107 }
 0x484   : > { %6125 = vpow2.f32 %v941_v40  ;;  %5856 = vmatprep.subr.msk.bf16.mxu0 %vm808_vm1, %v1108_v41  ;;  %v1129_v28 = vsel %vm808_vm1, %v1108_v41, 0 }
 0x485   : > { %6127 = vpow2.f32 %v943_v36  ;;  %5523 = vmatpush3.bf16.xpose.msra.mxu0 %v1129_v28  ;;  %v1100_v42 = vpop.permute.xlu1 %1099 }
 0x486   : > { %5857 = vmatprep.subr.msk.bf16.mxu0 %vm808_vm1, %v1106_v37 }
 0x487   : > { %v1098_v43 = vpop.permute.xlu0 %1097 }
 0x489   : > { %v1104_v44 = vpop.permute.xlu1 %1103 }
 0x48b   : > { %v1102_v21 = vpop.permute.xlu0 %1101  ;;  %v6980_v46 = vpop.eup %6121 }
 0x48d   : > { %5525 = vmatpush3.bf16.xpose.msra.mxu0 %v1126_v45  ;;  %v1283_v29 = vpop.permute.xlu1 %1282 }
 0x48f   : > { %v1285_v47 = vpop.permute.xlu0 %1284  ;;  %v6982_v50 = vpop.eup %6123 }
 0x490   : > { %5534 = vmatprep.subr.bf16.mxu1 %v1285_v47 }
 0x491   : > { %v6984_v51 = vpop.eup %6125  ;;  %5535 = vmatpush3.bf16.msra.mxu1 %v1285_v47 }
 0x492   : > { %v6986_v38 = vpop.eup %6127  ;;  %5536 = vmatprep.subr.bf16.mxu1 %v1283_v29  ;;  %v973_v52 = vpack.c.bf16 %v6984_v51, %v6980_v46 }
 0x493   : > { %v974_v53 = vpack.c.bf16 %v6982_v50, %v6986_v38 }
 0x494   : > { %5514 = vmatprep.mubr.msk.bf16.mxu0 %vm898_vm2, %v973_v52 }
 0x495   : > { %5515 = vmatmul.mubr.msk.bf16.gmra.mxu0 %vm898_vm2, %v974_v53  ;;  %5537 = vmatpush3.bf16.msra.mxu1 %v1283_v29 }
 0x496   : > { %5526 = vmatprep.mubr.msk.bf16.mxu0 %vm808_vm1, %v1098_v43  ;;  %v1279_v43 = vpop.permute.xlu1 %1278 }
 0x49d   : > { %5527 = vmatmul.mubr.msk.bf16.vlgmr.msra.gmra.mxu0 %vm808_vm1, %v1100_v42 }
 0x49e   : > { %5530 = vmatprep.mubr.msk.bf16.mxu0 %vm808_vm1, %v1102_v21  ;;  %v1415_v21 = vpop.permute.xlu1 %1414 }
 0x4a5   : > { %5531 = vmatmul.mubr.msk.bf16.gmra.mxu0 %vm808_vm1, %v1104_v44 }
 0x51b   : > { %v6998_v54 = vpop.f32.mrf.mxu0 }
 0x51d   : > { %v7000_v55 = vpop.f32.mrf.mxu0 }
 0x51f   : > { %v7002_v56 = vpop.f32.mrf.mxu0 }
 0x521   : > { %v7004_v57 = vpop.f32.mrf.mxu0 }
 0x555   : > { %v7006_v39 = vpop.f32.mrf.mxu0 }
 0x556   : > { %8454 = vst [vmem:[#allocation12_spill] sm:$0xff] %v7006_v39 }
 0x557   : > { %v7008_v48 = vpop.f32.mrf.mxu0 }
 0x558   : > { %8455 = vst [vmem:[#allocation13_spill] sm:$0xff] %v7008_v48 }
 0x559   : > { %v7013_v59 = vpop.f32.mrf.mxu0 }
 0x55a   : > { %8456 = vst [vmem:[#allocation14_spill] sm:$0xff] %v7013_v59  ;;  %v5269_v59 = vld [vmem:[%s8406_s1 + $0x78] sm:$0xff]  }
 0x55b   : > { %v7018_v62 = vpop.f32.mrf.mxu0 }
 0x55c   : > { %8457 = vst [vmem:[#allocation15_spill] sm:$0xff] %v7018_v62 }
 0x55d   : > { %v5528_v63 = vpop.f32.mrf.mxu0 }
 0x55e   : > { %v7020_v1 = vadd.f32 %v5528_v63, %v5149_v61 }
 0x55f   : > { %v1171_v2 = vpop.f32.mrf.mxu0 }
 0x560   : > { %v1172_v3 = vadd.f32 %v5145_v49, %v1171_v2  ;;  %v1208_v4 = vsel %vm898_vm2, %v7020_v1, -inf }
 0x561   : > { %1209 = vmax.xlane.f32.xlu0 %v1208_v4  ;;  %v5529_v8 = vpop.f32.mrf.mxu0 }
 0x562   : > { %v1183_v11 = vadd.f32 %v5529_v8, %v5150_v5  ;;  %v1202_v17 = vsel %vm898_vm2, %v1172_v3, -inf }
 0x563   : > { %v1174_v9 = vpop.f32.mrf.mxu0 }
 0x564   : > { %v1175_v13 = vadd.f32 %v5146_v6, %v1174_v9  ;;  %v1211_v22 = vsel %vm898_vm2, %v1183_v11, -inf }
 0x565   : > { %1203 = vmax.xlane.f32.xlu0 %v1202_v17  ;;  %v5532_v23 = vpop.f32.mrf.mxu0 }
 0x566   : > { %v1205_v19 = vsel %vm898_vm2, %v1175_v13, -inf  ;;  %v7039_v20 = vadd.f32 %v5532_v23, %v5157_v30 }
 0x567   : > { %1206 = vmax.xlane.f32.xlu1 %v1205_v19  ;;  %v1187_v26 = vpop.f32.mrf.mxu0 }
 0x568   : > { %v7037_v32 = vadd.f32 %v5153_v27, %v1187_v26  ;;  %v1220_v41 = vsel %vm898_vm2, %v7039_v20, -inf }
 0x569   : > { %1212 = vmax.xlane.f32.xlu0 %v1211_v22  ;;  %v5533_v31 = vpop.f32.mrf.mxu0 }
 0x56a   : > { %v7041_v36 = vadd.f32 %v5533_v31, %v5158_v33  ;;  %v1214_v37 = vsel %vm898_vm2, %v7037_v32, -inf }
 0x56b   : > { %v1190_v35 = vpop.f32.mrf.mxu0 }
 0x56c   : > { %v7045_v40 = vadd.f32 %v5154_v34, %v1190_v35  ;;  %v1223_v28 = vsel %vm898_vm2, %v7041_v36, -inf }
 0x56e   : > { %v1217_v42 = vsel %vm898_vm2, %v7045_v40, -inf }
 0x578   : > { %1412 = vrot.lane.b32.xlu1 %v6860_v10, %s6594_s23 }
 0x57f   : > { %1280 = vrot.lane.b32.xlu0 %v6866_v12, %s6593_s21 }
 0x59c   : > { %1215 = vmax.xlane.f32.xlu1 %v1214_v37 }
 0x59e   : > { %1221 = vmax.xlane.f32.xlu0 %v1220_v41 }
 0x5a0   : > { %1224 = vmax.xlane.f32.xlu1 %v1223_v28 }
 0x5a2   : > { %1218 = vmax.xlane.f32.xlu0 %v1217_v42 }
 0x5b1   : > { %1408 = vrot.lane.b32.xlu1 %v6854_v0, %s6594_s23 }
 0x5b5   : > { %1402 = vrot.lane.b32.xlu1 %v6866_v12, %s8436_s26 }
 0x5b8   : > { %1410 = vrot.lane.b32.xlu0 %v6866_v12, %s6594_s23 }
 0x5b9   : > { %1406 = vrot.lane.b32.xlu1 %v6858_v7, %s8436_s26 }
 0x5bc   : > { %1400 = vrot.lane.b32.xlu0 %v6854_v0, %s8436_s26 }
 0x5bd   : > { %1585 = vrot.lane.b32.xlu1 %v6860_v10, %s8434_s27 }
 0x5c0   : > { %1404 = vrot.lane.b32.xlu0 %v6860_v10, %s8436_s26  ;;  %s8476_s26 = smov 72  }
 0x5c1   : > { %1581 = vrot.lane.b32.xlu1 %v6854_v0, %s8434_s27 }
 0x5c4   : > { %1587 = vrot.lane.b32.xlu0 %v6858_v7, %s8434_s27 }
 0x5c5   : > { %1717 = vrot.lane.b32.xlu1 %v6858_v7, %s8432_s19 }
 0x5ea   : > { %v1210_v44 = vpop.xlane.xlu0 %1209 }
 0x5eb   : > { %v1228_v45 = vsub.f32 %v7020_v1, %v1210_v44 }
 0x5ed   : > { %v1238_v60 = vmul.f32 1.442695, %v1228_v45 }
 0x5ee   : > { %v1204_v47 = vpop.xlane.xlu0 %1203 }
 0x5ef   : > { %v1226_v29 = vsub.f32 %v1172_v3, %v1204_v47 }
 0x5f0   : > { %v1207_v52 = vpop.xlane.xlu1 %1206 }
 0x5f1   : > { %v1234_v53 = vmul.f32 1.442695, %v1226_v29  ;;  %v1227_v58 = vsub.f32 %v1175_v13, %v1207_v52 }
 0x5f2   : > { %v1213_v61 = vpop.xlane.xlu0 %1212 }
 0x5f3   : > { %v1236_v49 = vmul.f32 1.442695, %v1227_v58  ;;  %v1229_v63 = vsub.f32 %v1183_v11, %v1213_v61  ;;  %6129 = vpow2.f32 %v1234_v53  ;;  %v1438_v11 = vsel %vm808_vm1, %v1415_v21, 0 }
 0x5f4   : > { %v1413_v13 = vpop.permute.xlu1 %1412 }
 0x5f5   : > { %6131 = vpow2.f32 %v1236_v49  ;;  %v1240_v2 = vmul.f32 1.442695, %v1229_v63  ;;  %v1435_v17 = vsel %vm808_vm1, %v1413_v13, 0 }
 0x5f6   : > { %6133 = vpow2.f32 %v1238_v60  ;;  %v1281_v4 = vpop.permute.xlu0 %1280 }
 0x5f7   : > { %6135 = vpow2.f32 %v1240_v2  ;;  %5538 = vmatprep.subr.bf16.mxu1 %v1281_v4 }
 0x5f8   : > { %5539 = vmatpush3.bf16.msra.mxu1 %v1281_v4  ;;  %v5263_v4 = vld [vmem:[%s8406_s1 + $0x48] sm:$0xff]  }
 0x5f9   : > { %5540 = vmatprep.subr.bf16.mxu1 %v1279_v43 }
 0x5fc   : > { %5541 = vmatpush3.bf16.msra.mxu1 %v1279_v43 }
 0x5fd   : > { %5858 = vmatprep.subr.msk.bf16.mxu1 %vm808_vm1, %v1415_v21 }
 0x600   : > { %v7075_v1 = vpop.eup %6129 }
 0x602   : > { %v7077_v3 = vpop.eup %6131 }
 0x603   : > { %v7079_v5 = vpop.eup %6133  ;;  %v1274_v6 = vpack.c.bf16 %v7077_v3, %v7075_v1 }
 0x604   : > { %v7083_v8 = vpop.eup %6135 }
 0x605   : > { %v1275_v9 = vpack.c.bf16 %v7083_v8, %v7079_v5  ;;  %5542 = vmatprep.mubr.msk.bf16.mxu1 %vm898_vm2, %v1274_v6 }
 0x607   : > { %5543 = vmatmul.mubr.msk.bf16.vlgmr.msra.gmra.mxu1 %vm898_vm2, %v1275_v9  ;;  %v5262_v9 = vld [vmem:[%s8406_s1 + $0x40] sm:$0xff]  }
 0x608   : > { %5551 = vmatpush3.bf16.xpose.msra.mxu1 %v1438_v11  ;;  %v5165_v11 = vunpack.c.l.bf16 %v5263_v4 }
 0x609   : > { %5859 = vmatprep.subr.msk.bf16.mxu1 %vm808_vm1, %v1413_v13 }
 0x610   : > { %5553 = vmatpush3.bf16.xpose.msra.mxu1 %v1435_v17  ;;  %v5161_v17 = vunpack.c.l.bf16 %v5262_v9 }
 0x625   : > { %v1216_v19 = vpop.xlane.xlu1 %1215 }
 0x626   : > { %v1230_v22 = vsub.f32 %v7037_v32, %v1216_v19 }
 0x627   : > { %v1222_v23 = vpop.xlane.xlu0 %1221 }
 0x628   : > { %v1232_v24 = vsub.f32 %v7039_v20, %v1222_v23  ;;  %v1242_v26 = vmul.f32 1.442695, %v1230_v22 }
 0x629   : > { %v1225_v25 = vpop.xlane.xlu1 %1224 }
 0x62a   : > { %v1233_v27 = vsub.f32 %v7041_v36, %v1225_v25  ;;  %v1246_v34 = vmul.f32 1.442695, %v1232_v24  ;;  %6137 = vpow2.f32 %v1242_v26  ;;  %v5166_v26 = vunpack.c.h.bf16 %v5263_v4 }
 0x62b   : > { %v1219_v30 = vpop.xlane.xlu0 %1218 }
 0x62c   : > { %v1248_v31 = vmul.f32 1.442695, %v1233_v27  ;;  %v1231_v33 = vsub.f32 %v7045_v40, %v1219_v30  ;;  %v5162_v27 = vunpack.c.h.bf16 %v5262_v9 }
 0x62d   : > { %v1409_v35 = vpop.permute.xlu1 %1408 }
 0x62e   : > { %v1244_v37 = vmul.f32 1.442695, %v1231_v33  ;;  %6139 = vpow2.f32 %v1248_v31  ;;  %v1429_v40 = vsel %vm808_vm1, %v1409_v35, 0 }
 0x62f   : > { %v1411_v41 = vpop.permute.xlu0 %1410 }
 0x630   : > { %6141 = vpow2.f32 %v1244_v37  ;;  %5860 = vmatprep.subr.msk.bf16.mxu1 %vm808_vm1, %v1411_v41  ;;  %v1432_v32 = vsel %vm808_vm1, %v1411_v41, 0 }
 0x631   : > { %6143 = vpow2.f32 %v1246_v34  ;;  %5555 = vmatpush3.bf16.xpose.msra.mxu1 %v1432_v32  ;;  %v1403_v20 = vpop.permute.xlu1 %1402 }
 0x632   : > { %5861 = vmatprep.subr.msk.bf16.mxu1 %vm808_vm1, %v1409_v35 }
 0x633   : > { %v1401_v36 = vpop.permute.xlu0 %1400 }
 0x635   : > { %v1407_v28 = vpop.permute.xlu1 %1406 }
 0x637   : > { %v1405_v42 = vpop.permute.xlu0 %1404  ;;  %v7100_v43 = vpop.eup %6137 }
 0x639   : > { %5557 = vmatpush3.bf16.xpose.msra.mxu1 %v1429_v40  ;;  %v1586_v47 = vpop.permute.xlu1 %1585 }
 0x63b   : > { %v1588_v44 = vpop.permute.xlu0 %1587  ;;  %v7102_v21 = vpop.eup %6139 }
 0x63c   : > { %5566 = vmatprep.subr.bf16.mxu0 %v1588_v44 }
 0x63d   : > { %v7104_v45 = vpop.eup %6141  ;;  %5567 = vmatpush3.bf16.msra.mxu0 %v1588_v44 }
 0x63e   : > { %v7106_v29 = vpop.eup %6143  ;;  %5568 = vmatprep.subr.bf16.mxu0 %v1586_v47  ;;  %v1276_v52 = vpack.c.bf16 %v7104_v45, %v7100_v43 }
 0x63f   : > { %v1277_v53 = vpack.c.bf16 %v7102_v21, %v7106_v29 }
 0x640   : > { %5546 = vmatprep.mubr.msk.bf16.mxu1 %vm898_vm2, %v1276_v52 }
 0x641   : > { %5547 = vmatmul.mubr.msk.bf16.gmra.mxu1 %vm898_vm2, %v1277_v53  ;;  %5569 = vmatpush3.bf16.msra.mxu0 %v1586_v47 }
 0x642   : > { %5558 = vmatprep.mubr.msk.bf16.mxu1 %vm808_vm1, %v1401_v36  ;;  %v5265_v36 = vld [vmem:[%s8406_s1 + $0x58] sm:$0xff]  }
 0x643   : > { %v5173_v40 = vunpack.c.l.bf16 %v5265_v36  ;;  %v5174_v52 = vunpack.c.h.bf16 %v5265_v36 }
 0x649   : > { %5559 = vmatmul.mubr.msk.bf16.vlgmr.msra.gmra.mxu1 %vm808_vm1, %v1403_v20  ;;  %v5264_v20 = vld [vmem:[%s8406_s1 + $0x50] sm:$0xff]  }
 0x64a   : > { %5562 = vmatprep.mubr.msk.bf16.mxu1 %vm808_vm1, %v1405_v42  ;;  %v5169_v42 = vunpack.c.l.bf16 %v5264_v20  ;;  %v5170_v4 = vunpack.c.h.bf16 %v5264_v20 }
 0x651   : > { %5563 = vmatmul.mubr.msk.bf16.gmra.mxu1 %vm808_vm1, %v1407_v28 }
 0x6c7   : > { %v7118_v58 = vpop.f32.mrf.mxu1 }
 0x6c9   : > { %v7120_v60 = vpop.f32.mrf.mxu1 }
 0x6cb   : > { %v7122_v61 = vpop.f32.mrf.mxu1 }
 0x6cd   : > { %v7124_v49 = vpop.f32.mrf.mxu1 }
 0x701   : > { %v7126_v63 = vpop.f32.mrf.mxu1 }
 0x703   : > { %v7128_v2 = vpop.f32.mrf.mxu1 }
 0x705   : > { %v7133_v6 = vpop.f32.mrf.mxu1 }
 0x707   : > { %v7138_v13 = vpop.f32.mrf.mxu1 }
 0x709   : > { %v5560_v19 = vpop.f32.mrf.mxu1 }
 0x70a   : > { %v1483_v22 = vadd.f32 %v5560_v19, %v5165_v11 }
 0x70b   : > { %v1474_v23 = vpop.f32.mrf.mxu1 }
 0x70c   : > { %v1475_v24 = vadd.f32 %v5161_v17, %v1474_v23  ;;  %v1511_v25 = vsel %vm898_vm2, %v1483_v22, -inf }
 0x70d   : > { %1512 = vmax.xlane.f32.xlu0 %v1511_v25  ;;  %v5561_v30 = vpop.f32.mrf.mxu1 }
 0x70e   : > { %v1486_v33 = vadd.f32 %v5561_v30, %v5166_v26  ;;  %v1505_v35 = vsel %vm898_vm2, %v1475_v24, -inf }
 0x70f   : > { %v1477_v31 = vpop.f32.mrf.mxu1 }
 0x710   : > { %v1478_v34 = vadd.f32 %v5162_v27, %v1477_v31  ;;  %v1514_v41 = vsel %vm898_vm2, %v1486_v33, -inf  ;;  %v1582_v27 = vpop.permute.xlu1 %1581 }
 0x711   : > { %1506 = vmax.xlane.f32.xlu0 %v1505_v35  ;;  %v5564_v32 = vpop.f32.mrf.mxu1 }
 0x712   : > { %v1508_v37 = vsel %vm898_vm2, %v1478_v34, -inf  ;;  %v7156_v53 = vadd.f32 %v5564_v32, %v5173_v40 }
 0x713   : > { %1509 = vmax.xlane.f32.xlu1 %v1508_v37  ;;  %v1490_v28 = vpop.f32.mrf.mxu1 }
 0x714   : > { %v7154_v47 = vadd.f32 %v5169_v42, %v1490_v28  ;;  %v1523_v23 = vsel %vm898_vm2, %v7156_v53, -inf  ;;  %v1718_v31 = vpop.permute.xlu1 %1717 }
 0x715   : > { %1515 = vmax.xlane.f32.xlu0 %v1514_v41  ;;  %v5565_v44 = vpop.f32.mrf.mxu1 }
 0x716   : > { %v7158_v11 = vadd.f32 %v5565_v44, %v5174_v52  ;;  %v1517_v17 = vsel %vm898_vm2, %v7154_v47, -inf }
 0x717   : > { %v1493_v9 = vpop.f32.mrf.mxu1 }
 0x718   : > { %v7162_v19 = vadd.f32 %v5170_v4, %v1493_v9  ;;  %v1526_v25 = vsel %vm898_vm2, %v7158_v11, -inf }
 0x71a   : > { %v1520_v26 = vsel %vm898_vm2, %v7162_v19, -inf }
 0x724   : > { %1715 = vrot.lane.b32.xlu1 %v6860_v10, %s8432_s19 }
 0x72b   : > { %1583 = vrot.lane.b32.xlu0 %v6866_v12, %s8434_s27 }
 0x748   : > { %1518 = vmax.xlane.f32.xlu1 %v1517_v17 }
 0x74a   : > { %1524 = vmax.xlane.f32.xlu0 %v1523_v23  ;;  %v1741_v23 = vsel %vm808_vm1, %v1718_v31, 0 }
 0x74c   : > { %1527 = vmax.xlane.f32.xlu1 %v1526_v25 }
 0x74e   : > { %1521 = vmax.xlane.f32.xlu0 %v1520_v26 }
 0x75d   : > { %1711 = vrot.lane.b32.xlu1 %v6854_v0, %s8432_s19 }
 0x761   : > { %1705 = vrot.lane.b32.xlu1 %v6866_v12, %s8422_s17 }
 0x764   : > { %1713 = vrot.lane.b32.xlu0 %v6866_v12, %s8432_s19  ;;  %s8481_s19 = smov 24  }
 0x765   : > { %1709 = vrot.lane.b32.xlu1 %v6858_v7, %s8422_s17 }
 0x768   : > { %1703 = vrot.lane.b32.xlu0 %v6854_v0, %s8422_s17 }
 0x76c   : > { %1707 = vrot.lane.b32.xlu0 %v6860_v10, %s8422_s17  ;;  %s8430_s17 = smov 8  }
 0x796   : > { %v1513_v30 = vpop.xlane.xlu0 %1512 }
 0x797   : > { %v1531_v35 = vsub.f32 %v1483_v22, %v1513_v30 }
 0x799   : > { %v1541_v28 = vmul.f32 1.442695, %v1531_v35 }
 0x79a   : > { %v1507_v37 = vpop.xlane.xlu0 %1506 }
 0x79b   : > { %v1529_v41 = vsub.f32 %v1475_v24, %v1507_v37 }
 0x79c   : > { %v1510_v32 = vpop.xlane.xlu1 %1509 }
 0x79d   : > { %v1537_v20 = vmul.f32 1.442695, %v1529_v41  ;;  %v1530_v36 = vsub.f32 %v1478_v34, %v1510_v32 }
 0x79e   : > { %v1516_v42 = vpop.xlane.xlu0 %1515 }
 0x79f   : > { %v1539_v40 = vmul.f32 1.442695, %v1530_v36  ;;  %v1532_v44 = vsub.f32 %v1486_v33, %v1516_v42  ;;  %6145 = vpow2.f32 %v1537_v20 }
 0x7a0   : > { %v1716_v25 = vpop.permute.xlu1 %1715 }
 0x7a1   : > { %6147 = vpow2.f32 %v1539_v40  ;;  %v1543_v52 = vmul.f32 1.442695, %v1532_v44  ;;  %v1738_v26 = vsel %vm808_vm1, %v1716_v25, 0 }
 0x7a2   : > { %6149 = vpow2.f32 %v1541_v28  ;;  %v1584_v4 = vpop.permute.xlu0 %1583 }
 0x7a3   : > { %6151 = vpow2.f32 %v1543_v52  ;;  %5570 = vmatprep.subr.bf16.mxu0 %v1584_v4 }
 0x7a4   : > { %5571 = vmatpush3.bf16.msra.mxu0 %v1584_v4 }
 0x7a5   : > { %5572 = vmatprep.subr.bf16.mxu0 %v1582_v27 }
 0x7a8   : > { %5573 = vmatpush3.bf16.msra.mxu0 %v1582_v27 }
 0x7a9   : > { %5862 = vmatprep.subr.msk.bf16.mxu0 %vm808_vm1, %v1718_v31 }
 0x7ac   : > { %v7183_v22 = vpop.eup %6145 }
 0x7ae   : > { %v7185_v24 = vpop.eup %6147 }
 0x7af   : > { %v7187_v34 = vpop.eup %6149  ;;  %v1577_v33 = vpack.c.bf16 %v7185_v24, %v7183_v22 }
 0x7b0   : > { %v7191_v9 = vpop.eup %6151 }
 0x7b1   : > { %v1578_v17 = vpack.c.bf16 %v7191_v9, %v7187_v34  ;;  %5574 = vmatprep.mubr.msk.bf16.mxu0 %vm898_vm2, %v1577_v33 }
 0x7b3   : > { %5575 = vmatmul.mubr.msk.bf16.vlgmr.msra.gmra.mxu0 %vm898_vm2, %v1578_v17 }
 0x7b4   : > { %5583 = vmatpush3.bf16.xpose.msra.mxu0 %v1741_v23 }
 0x7b5   : > { %5863 = vmatprep.subr.msk.bf16.mxu0 %vm808_vm1, %v1716_v25 }
 0x7bc   : > { %5585 = vmatpush3.bf16.xpose.msra.mxu0 %v1738_v26 }
 0x7d1   : > { %v1519_v27 = vpop.xlane.xlu1 %1518 }
 0x7d2   : > { %v1533_v30 = vsub.f32 %v7154_v47, %v1519_v27 }
 0x7d3   : > { %v1525_v35 = vpop.xlane.xlu0 %1524 }
 0x7d4   : > { %v1535_v37 = vsub.f32 %v7156_v53, %v1525_v35  ;;  %v1545_v32 = vmul.f32 1.442695, %v1533_v30 }
 0x7d5   : > { %v1528_v41 = vpop.xlane.xlu1 %1527 }
 0x7d6   : > { %v1536_v20 = vsub.f32 %v7158_v11, %v1528_v41  ;;  %v1549_v42 = vmul.f32 1.442695, %v1535_v37  ;;  %6153 = vpow2.f32 %v1545_v32 }
 0x7d7   : > { %v1522_v36 = vpop.xlane.xlu0 %1521 }
 0x7d8   : > { %v1551_v28 = vmul.f32 1.442695, %v1536_v20  ;;  %v1534_v31 = vsub.f32 %v7162_v19, %v1522_v36 }
 0x7d9   : > { %v1712_v53 = vpop.permute.xlu1 %1711 }
 0x7da   : > { %v1547_v40 = vmul.f32 1.442695, %v1534_v31  ;;  %6155 = vpow2.f32 %v1551_v28  ;;  %v1732_v11 = vsel %vm808_vm1, %v1712_v53, 0  ;;  %v5267_v28 = vld [vmem:[%s8406_s1 + $0x68] sm:$0xff]  }
 0x7db   : > { %v1714_v44 = vpop.permute.xlu0 %1713 }
 0x7dc   : > { %6157 = vpow2.f32 %v1547_v40  ;;  %5864 = vmatprep.subr.msk.bf16.mxu0 %vm808_vm1, %v1714_v44  ;;  %v1735_v47 = vsel %vm808_vm1, %v1714_v44, 0  ;;  %v5181_v40 = vunpack.c.l.bf16 %v5267_v28 }
 0x7dd   : > { %6159 = vpow2.f32 %v1549_v42  ;;  %5587 = vmatpush3.bf16.xpose.msra.mxu0 %v1735_v47  ;;  %v1706_v26 = vpop.permute.xlu1 %1705  ;;  %v5266_v42 = vld [vmem:[%s8406_s1 + $0x60] sm:$0xff]  }
 0x7de   : > { %5865 = vmatprep.subr.msk.bf16.mxu0 %vm808_vm1, %v1712_v53  ;;  %v5177_v47 = vunpack.c.l.bf16 %v5266_v42 }
 0x7df   : > { %v1704_v25 = vpop.permute.xlu0 %1703 }
 0x7e1   : > { %v1710_v30 = vpop.permute.xlu1 %1709 }
 0x7e3   : > { %v7208_v52 = vpop.eup %6153  ;;  %v1708_v27 = vpop.permute.xlu0 %1707 }
 0x7e5   : > { %5589 = vmatpush3.bf16.xpose.msra.mxu0 %v1732_v11 }
 0x7e7   : > { %v7210_v19 = vpop.eup %6155 }
 0x7e9   : > { %v7212_v4 = vpop.eup %6157 }
 0x7ea   : > { %v7214_v33 = vpop.eup %6159  ;;  %v1579_v17 = vpack.c.bf16 %v7212_v4, %v7208_v52 }
 0x7eb   : > { %v1580_v23 = vpack.c.bf16 %v7210_v19, %v7214_v33 }
 0x7ec   : > { %5578 = vmatprep.mubr.msk.bf16.mxu0 %vm898_vm2, %v1579_v17 }
 0x7ed   : > { %5579 = vmatmul.mubr.msk.bf16.gmra.mxu0 %vm898_vm2, %v1580_v23 }
 0x7ee   : > { %5590 = vmatprep.mubr.msk.bf16.mxu0 %vm808_vm1, %v1704_v25 }
 0x7f5   : > { %5591 = vmatmul.mubr.msk.bf16.vlgmr.msra.gmra.mxu0 %vm808_vm1, %v1706_v26  ;;  %v5182_v26 = vunpack.c.h.bf16 %v5267_v28  ;;  %v5268_v28 = vld [vmem:[%s8406_s1 + $0x70] sm:$0xff]  }
 0x7f6   : > { %5594 = vmatprep.mubr.msk.bf16.mxu0 %vm808_vm1, %v1708_v27  ;;  %v5178_v27 = vunpack.c.h.bf16 %v5266_v42 }
 0x7fd   : > { %5595 = vmatmul.mubr.msk.bf16.gmra.mxu0 %vm808_vm1, %v1710_v30 }
 0x873   : > { %v7226_v35 = vpop.f32.mrf.mxu0 }
 0x875   : > { %v7228_v37 = vpop.f32.mrf.mxu0 }
 0x877   : > { %v7230_v41 = vpop.f32.mrf.mxu0 }
 0x879   : > { %v7232_v32 = vpop.f32.mrf.mxu0 }
 0x8ad   : > { %v7234_v20 = vpop.f32.mrf.mxu0 }
 0x8af   : > { %v7236_v36 = vpop.f32.mrf.mxu0 }
 0x8b1   : > { %v7241_v31 = vpop.f32.mrf.mxu0 }
 0x8b3   : > { %v7246_v44 = vpop.f32.mrf.mxu0 }
 0x8b5   : > { %v5592_v53 = vpop.f32.mrf.mxu0 }
 0x8b6   : > { %v7248_v11 = vadd.f32 %v5592_v53, %v5181_v40 }
 0x8b7   : > { %v1777_v17 = vpop.f32.mrf.mxu0 }
 0x8b8   : > { %v7250_v23 = vadd.f32 %v5177_v47, %v1777_v17  ;;  %v1814_v25 = vsel %vm898_vm2, %v7248_v11, -inf  ;;  %v5189_v47 = vunpack.c.l.bf16 %v5269_v59 }
 0x8b9   : > { %1815 = vmax.xlane.f32.xlu0 %v1814_v25  ;;  %v5593_v30 = vpop.f32.mrf.mxu0  ;;  %v5185_v25 = vunpack.c.l.bf16 %v5268_v28 }
 0x8ba   : > { %v7257_v39 = vadd.f32 %v5593_v30, %v5182_v26  ;;  %v1808_v40 = vsel %vm898_vm2, %v7250_v23, -inf }
 0x8bb   : > { %v1780_v62 = vpop.f32.mrf.mxu0 }
 0x8bc   : > { %v7259_v48 = vadd.f32 %v5178_v27, %v1780_v62  ;;  %v1817_v62 = vsel %vm898_vm2, %v7257_v39, -inf }
 0x8bd   : > { %1809 = vmax.xlane.f32.xlu0 %v1808_v40  ;;  %v5596_v53 = vpop.f32.mrf.mxu0 }
 0x8be   : > { %v1811_v42 = vsel %vm898_vm2, %v7259_v48, -inf  ;;  %v7268_v17 = vadd.f32 %v5596_v53, %v5189_v47  ;;  %v5190_v47 = vunpack.c.h.bf16 %v5269_v59  ;;  %v1259_v59 = vsel %vm898_vm2, %v7083_v8, 0.0 }
 0x8bf   : > { %1812 = vmax.xlane.f32.xlu1 %v1811_v42  ;;  %v1793_v26 = vpop.f32.mrf.mxu0  ;;  %v1565_v8 = vsel %vm898_vm2, %v7208_v52, 0.0 }
 0x8c0   : > { %v7272_v27 = vadd.f32 %v5185_v25, %v1793_v26  ;;  %v1826_v30 = vsel %vm898_vm2, %v7268_v17, -inf  ;;  %v5186_v25 = vunpack.c.h.bf16 %v5268_v28  ;;  %v1553_v28 = vsel %vm898_vm2, %v7183_v22, 0.0 }
 0x8c1   : > { %1818 = vmax.xlane.f32.xlu0 %v1817_v62  ;;  %v5597_v53 = vpop.f32.mrf.mxu0  ;;  %v1253_v22 = vsel %vm898_vm2, %v7077_v3, 0.0 }
 0x8c2   : > { %v1820_v40 = vsel %vm898_vm2, %v7272_v27, -inf  ;;  %v7284_v42 = vadd.f32 %v5597_v53, %v5190_v47  ;;  %v1568_v47 = vsel %vm898_vm2, %v7212_v4, 0.0 }
 0x8c3   : > { %v1796_v62 = vpop.f32.mrf.mxu0 }
 0x8c4   : > { %v7286_v26 = vadd.f32 %v5186_v25, %v1796_v62 }
 0x8c5   : > { %1827 = vmax.xlane.f32.xlu0 %v1826_v30  ;;  %v1829_v30 = vsel %vm898_vm2, %v7284_v42, -inf }
 0x8c9   : > { %1821 = vmax.xlane.f32.xlu0 %v1820_v40  ;;  %v1559_v40 = vsel %vm898_vm2, %v7187_v34, 0.0  ;;  %v1271_v34 = vsel %vm898_vm2, %v7102_v21, 0.0 }
 0x8d0   : > { %1888 = vrot.lane.b32.xlu1 %v6860_v10, %s8424_s28  ;;  %v1823_v10 = vsel %vm898_vm2, %v7286_v26, -inf }
 0x8d4   : > { %1886 = vrot.lane.b32.xlu1 %v6866_v12, %s8424_s28  ;;  %v1250_v12 = vsel %vm898_vm2, %v7075_v1, 0.0  ;;  %v1262_v1 = vsel %vm898_vm2, %v7100_v43, 0.0  ;;  %v1562_v43 = vsel %vm898_vm2, %v7191_v9, 0.0 }
 0x8df   : > { %1890 = vrot.lane.b32.xlu0 %v6858_v7, %s8424_s28  ;;  %v1256_v7 = vsel %vm898_vm2, %v7079_v5, 0.0  ;;  %v1268_v5 = vsel %vm898_vm2, %v7106_v29, 0.0  ;;  %v1265_v29 = vsel %vm898_vm2, %v7104_v45, 0.0 }
 0x8f8   : > { %1830 = vmax.xlane.f32.xlu1 %v1829_v30 }
 0x8fc   : > { %1824 = vmax.xlane.f32.xlu1 %v1823_v10 }
 0x8fe   : > { %1251 = vadd.xlane.f32.xlu0 %v1250_v12 }
 0x902   : > { %1257 = vadd.xlane.f32.xlu0 %v1256_v7 }
 0x906   : > { %1260 = vadd.xlane.f32.xlu0 %v1259_v59 }
 0x90a   : > { %1554 = vadd.xlane.f32.xlu0 %v1553_v28 }
 0x90d   : > { %1884 = vrot.lane.b32.xlu1 %v6854_v0, %s8424_s28  ;;  %v1556_v0 = vsel %vm898_vm2, %v7185_v24, 0.0  ;;  %s8426_s28 = smov 24  }
 0x90e   : > { %1560 = vadd.xlane.f32.xlu0 %v1559_v40 }
 0x912   : > { %1263 = vadd.xlane.f32.xlu0 %v1262_v1 }
 0x916   : > { %1269 = vadd.xlane.f32.xlu0 %v1268_v5 }
 0x91a   : > { %1566 = vadd.xlane.f32.xlu0 %v1565_v8 }
 0x931   : > { %1254 = vadd.xlane.f32.xlu1 %v1253_v22 }
 0x935   : > { %1557 = vadd.xlane.f32.xlu1 %v1556_v0 }
 0x939   : > { %1563 = vadd.xlane.f32.xlu1 %v1562_v43 }
 0x93d   : > { %1266 = vadd.xlane.f32.xlu1 %v1265_v29  ;;  %v1571_v29 = vsel %vm898_vm2, %v7214_v33, 0.0  ;;  %v947_v33 = vsel %vm898_vm2, %v6955_v14, 0.0 }
 0x941   : > { %1272 = vadd.xlane.f32.xlu1 %v1271_v34 }
 0x942   : > { %v1816_v52 = vpop.xlane.xlu0 %1815 }
 0x943   : > { %v1834_v3 = vsub.f32 %v7248_v11, %v1816_v52 }
 0x945   : > { %v1844_v24 = vmul.f32 1.442695, %v1834_v3  ;;  %1569 = vadd.xlane.f32.xlu1 %v1568_v47  ;;  %v1574_v47 = vsel %vm898_vm2, %v7210_v19, 0.0  ;;  %v965_v19 = vsel %vm898_vm2, %v6986_v38, 0.0 }
 0x946   : > { %v1810_v53 = vpop.xlane.xlu0 %1809 }
 0x947   : > { %6161 = vpow2.f32 %v1844_v24  ;;  %v1832_v9 = vsub.f32 %v7250_v23, %v1810_v53 }
 0x948   : > { %v1813_v25 = vpop.xlane.xlu1 %1812 }
 0x949   : > { %v1840_v62 = vmul.f32 1.442695, %v1832_v9  ;;  %v1833_v45 = vsub.f32 %v7259_v48, %v1813_v25  ;;  %v953_v9 = vsel %vm898_vm2, %v6959_v16, 0.0  ;;  %v959_v25 = vsel %vm898_vm2, %v6980_v46, 0.0 }
 0x94a   : > { %v1819_v30 = vpop.xlane.xlu0 %1818 }
 0x94b   : > { %6163 = vpow2.f32 %v1840_v62  ;;  %v1842_v21 = vmul.f32 1.442695, %v1833_v45  ;;  %v1835_v10 = vsub.f32 %v7257_v39, %v1819_v30 }
 0x94c   : > { %v1889_v48 = vpop.permute.xlu1 %1888 }
 0x94d   : > { %6165 = vpow2.f32 %v1842_v21  ;;  %v1846_v11 = vmul.f32 1.442695, %v1835_v10 }
 0x94e   : > { %v1828_v12 = vpop.xlane.xlu0 %1827 }
 0x94f   : > { %6167 = vpow2.f32 %v1846_v11  ;;  %v1838_v4 = vsub.f32 %v7268_v17, %v1828_v12 }
 0x950   : > { %v1887_v0 = vpop.permute.xlu1 %1886 }
 0x951   : > { %v1852_v23 = vmul.f32 1.442695, %v1838_v4 }
 0x952   : > { %v1822_v7 = vpop.xlane.xlu0 %1821 }
 0x953   : > { %v1836_v59 = vsub.f32 %v7272_v27, %v1822_v7 }
 0x954   : > { %v6162_v28 = vpop.eup %6161 }
 0x955   : > { %v1848_v40 = vmul.f32 1.442695, %v1836_v59  ;;  %v1862_v1 = vsel %vm898_vm2, %v6162_v28, 0.0 }
 0x956   : > { %1863 = vadd.xlane.f32.xlu0 %v1862_v1  ;;  %v1891_v5 = vpop.permute.xlu0 %1890  ;;  %v962_v1 = vsel %vm898_vm2, %v6984_v51, 0.0 }
 0x957   : > { %6169 = vpow2.f32 %v1848_v40  ;;  %5598 = vmatprep.subr.bf16.mxu1 %v1891_v5 }
 0x958   : > { %v6164_v39 = vpop.eup %6163  ;;  %5599 = vmatpush3.bf16.msra.mxu1 %v1891_v5  ;;  %6171 = vpow2.f32 %v1852_v23  ;;  %v956_v23 = vsel %vm898_vm2, %v6963_v18, 0.0 }
 0x959   : > { %5600 = vmatprep.subr.bf16.mxu1 %v1889_v48  ;;  %v1856_v8 = vsel %vm898_vm2, %v6164_v39, 0.0 }
 0x95a   : > { %v6166_v17 = vpop.eup %6165  ;;  %1857 = vadd.xlane.f32.xlu0 %v1856_v8 }
 0x95b   : > { %v1880_v22 = vpack.c.bf16 %v6166_v17, %v6164_v39  ;;  %v1859_v34 = vsel %vm898_vm2, %v6166_v17, 0.0 }
 0x95c   : > { %v6168_v27 = vpop.eup %6167  ;;  %5601 = vmatpush3.bf16.msra.mxu1 %v1889_v48  ;;  %v968_v48 = vsel %vm898_vm2, %v6982_v50, 0.0 }
 0x95d   : > { %5602 = vmatprep.subr.bf16.mxu1 %v1887_v0  ;;  %5606 = vmatprep.mubr.msk.bf16.mxu1 %vm898_vm2, %v1880_v22  ;;  %v1865_v43 = vsel %vm898_vm2, %v6168_v27, 0.0  ;;  %v1881_v16 = vpack.c.bf16 %v6168_v27, %v6162_v28  ;;  %v950_v28 = vsel %vm898_vm2, %v6957_v15, 0.0 }
 0x95e   : > { %1866 = vadd.xlane.f32.xlu1 %v1865_v43  ;;  %1572 = vadd.xlane.f32.xlu0 %v1571_v29 }
 0x960   : > { %5603 = vmatpush3.bf16.msra.mxu1 %v1887_v0 }
 0x962   : > { %1860 = vadd.xlane.f32.xlu1 %v1859_v34 }
 0x964   : > { %v6170_v52 = vpop.eup %6169 }
 0x965   : > { %v1868_v3 = vsel %vm898_vm2, %v6170_v52, 0.0  ;;  %v6172_v24 = vpop.eup %6171 }
 0x966   : > { %1869 = vadd.xlane.f32.xlu0 %v1868_v3  ;;  %1575 = vadd.xlane.f32.xlu1 %v1574_v47  ;;  %v1874_v53 = vsel %vm898_vm2, %v6172_v24, 0.0 }
 0x96a   : > { %1875 = vadd.xlane.f32.xlu0 %v1874_v53 }
 0x96e   : > { %948 = vadd.xlane.f32.xlu0 %v947_v33 }
 0x972   : > { %954 = vadd.xlane.f32.xlu0 %v953_v9 }
 0x976   : > { %960 = vadd.xlane.f32.xlu0 %v959_v25 }
 0x97a   : > { %966 = vadd.xlane.f32.xlu0 %v965_v19 }
 0x981   : > { %v1831_v62 = vpop.xlane.xlu1 %1830 }
 0x982   : > { %v1839_v45 = vsub.f32 %v7284_v42, %v1831_v62 }
 0x984   : > { %v1854_v30 = vmul.f32 1.442695, %v1839_v45 }
 0x985   : > { %v1825_v21 = vpop.xlane.xlu1 %1824 }
 0x986   : > { %v1837_v14 = vsub.f32 %v7286_v26, %v1825_v21  ;;  %6173 = vpow2.f32 %v1854_v30 }
 0x987   : > { %v1252_v7 = vpop.xlane.xlu0 %1251 }
 0x988   : > { %v1850_v10 = vmul.f32 1.442695, %v1837_v14 }
 0x989   : > { %v1885_v11 = vpop.permute.xlu1 %1884 }
 0x98a   : > { %6175 = vpow2.f32 %v1850_v10  ;;  %5604 = vmatprep.subr.bf16.mxu1 %v1885_v11 }
 0x98b   : > { %5605 = vmatpush3.bf16.msra.mxu1 %v1885_v11  ;;  %v1258_v59 = vpop.xlane.xlu0 %1257 }
 0x98e   : > { %5607 = vmatmul.mubr.msk.bf16.vlgmr.msra.gmra.mxu1 %vm898_vm2, %v1881_v16 }
 0x98f   : > { %v1261_v40 = vpop.xlane.xlu0 %1260 }
 0x990   : > { %6177 = vrcp.f32 %v1261_v40 }
 0x991   : > { %6179 = vrcp.f32 %v1258_v59  ;;  %v6072_v59 = vld [vmem:[%s8411_s6] sm:$0xff]  }
 0x992   : > { %6181 = vrcp.f32 %v1252_v7 }
 0x993   : > { %v6174_v46 = vpop.eup %6173  ;;  %v1555_v5 = vpop.xlane.xlu0 %1554 }
 0x994   : > { %v1883_v42 = vpack.c.bf16 %v6174_v46, %v6172_v24  ;;  %v1877_v26 = vsel %vm898_vm2, %v6174_v46, 0.0 }
 0x997   : > { %v6176_v12 = vpop.eup %6175  ;;  %v1561_v17 = vpop.xlane.xlu0 %1560 }
 0x998   : > { %v1871_v38 = vsel %vm898_vm2, %v6176_v12, 0.0  ;;  %v1882_v4 = vpack.c.bf16 %v6176_v12, %v6170_v52 }
 0x999   : > { %1872 = vadd.xlane.f32.xlu1 %v1871_v38 }
 0x99a   : > { %5610 = vmatprep.mubr.msk.bf16.mxu1 %vm898_vm2, %v1882_v4 }
 0x99b   : > { %5611 = vmatmul.mubr.msk.bf16.gmra.mxu1 %vm898_vm2, %v1883_v42  ;;  %v1264_v50 = vpop.xlane.xlu0 %1263 }
 0x99d   : > { %1878 = vadd.xlane.f32.xlu1 %v1877_v26  ;;  %v6178_v39 = vpop.eup %6177 }
 0x99e   : > { %v6180_v8 = vpop.eup %6179  ;;  %v1378_v15 = vmul.f32 %v6178_v39, %v7122_v61 }
 0x99f   : > { %v1377_v22 = vmul.f32 %v6180_v8, %v7118_v58  ;;  %v6182_v43 = vpop.eup %6181  ;;  %v1270_v61 = vpop.xlane.xlu0 %1269 }
 0x9a0   : > { %v1375_v58 = vmul.f32 %v6182_v43, %v7120_v60 }
 0x9a1   : > { %951 = vadd.xlane.f32.xlu1 %v950_v28  ;;  %v5954_v27 = vpack.i.bf16 %v1378_v15, %v1377_v22 }
 0x9a5   : > { %957 = vadd.xlane.f32.xlu1 %v956_v23 }
 0x9a9   : > { %963 = vadd.xlane.f32.xlu1 %v962_v1 }
 0x9ad   : > { %969 = vadd.xlane.f32.xlu1 %v968_v48 }
 0x9ba   : > { %v1255_v18 = vpop.xlane.xlu1 %1254 }
 0x9bb   : > { %6183 = vrcp.f32 %v1255_v18 }
 0x9bc   : > { %6185 = vrcp.f32 %v1555_v5 }
 0x9be   : > { %5955 = vrot.lane.b32.xlu1 %v5954_v27, %s8430_s17  ;;  %v1558_v51 = vpop.xlane.xlu1 %1557 }
 0x9bf   : > { %6187 = vrcp.f32 %v1558_v51 }
 0x9c0   : > { %6189 = vrcp.f32 %v1561_v17 }
 0x9c2   : > { %v1564_v0 = vpop.xlane.xlu1 %1563 }
 0x9c3   : > { %6191 = vrcp.f32 %v1564_v0 }
 0x9c4   : > { %6193 = vrcp.f32 %v1264_v50 }
 0x9c6   : > { %v1267_v29 = vpop.xlane.xlu1 %1266 }
 0x9c7   : > { %6195 = vrcp.f32 %v1267_v29 }
 0x9c8   : > { %v6184_v34 = vpop.eup %6183  ;;  %6197 = vrcp.f32 %v1270_v61 }
 0x9c9   : > { %v1376_v52 = vmul.f32 %v6184_v34, %v7124_v49  ;;  %v6186_v3 = vpop.eup %6185 }
 0x9ca   : > { %v1273_v47 = vpop.xlane.xlu1 %1272  ;;  %v1678_v33 = vmul.f32 %v6186_v3, %v7228_v37 }
 0x9cb   : > { %6199 = vrcp.f32 %v1273_v47  ;;  %v5949_v24 = vpack.i.bf16 %v1376_v52, %v1375_v58 }
 0x9cc   : > { %v6188_v53 = vpop.eup %6187 }
 0x9cd   : > { %5950 = vrot.lane.b32.xlu0 %v5949_v24, %s8430_s17  ;;  %v1679_v9 = vmul.f32 %v6188_v53, %v7232_v32  ;;  %v6190_v25 = vpop.eup %6189 }
 0x9ce   : > { %v1680_v60 = vmul.f32 %v6190_v25, %v7226_v35 }
 0x9cf   : > { %v5959_v19 = vpack.i.bf16 %v1679_v9, %v1678_v33 }
 0x9d0   : > { %v6192_v62 = vpop.eup %6191 }
 0x9d1   : > { %5960 = vrot.lane.b32.xlu1 %v5959_v19, %s8428_s24  ;;  %v1681_v49 = vmul.f32 %v6192_v62, %v7230_v41  ;;  %v6194_v45 = vpop.eup %6193  ;;  %v6071_v41 = vld [vmem:[%s8411_s6 + $0x8] sm:$0xff]  }
 0x9d2   : > { %v1379_v14 = vmul.f32 %v6194_v45, %v7128_v2  ;;  %5614 = vmatprep.subr.bf16.mxu1 %v6071_v41  ;;  %v1570_v2 = vpop.xlane.xlu1 %1569 }
 0x9d3   : > { %v5964_v30 = vpack.i.bf16 %v1681_v49, %v1680_v60  ;;  %5615 = vmatpush3.bf16.msra.mxu1 %v6071_v41  ;;  %6201 = vrcp.f32 %v1570_v2 }
 0x9d4   : > { %v6196_v21 = vpop.eup %6195  ;;  %5616 = vmatprep.subr.bf16.mxu1 %v6072_v59 }
 0x9d5   : > { %5965 = vrot.lane.b32.xlu1 %v5964_v30, %s8428_s24  ;;  %v1380_v37 = vmul.f32 %v6196_v21, %v7138_v13  ;;  %v6198_v32 = vpop.eup %6197  ;;  %v1567_v13 = vpop.xlane.xlu0 %1566 }
 0x9d6   : > { %v1381_v16 = vmul.f32 %v6198_v32, %v7126_v63 }
 0x9d7   : > { %v5969_v10 = vpack.i.bf16 %v1380_v37, %v1379_v14  ;;  %5617 = vmatpush3.bf16.msra.mxu1 %v6072_v59 }
 0x9d8   : > { %v6200_v11 = vpop.eup %6199 }
 0x9d9   : > { %5970 = vrot.lane.b32.xlu0 %v5969_v10, %s8430_s17  ;;  %v1382_v35 = vmul.f32 %v6200_v11, %v7133_v6 }
 0x9db   : > { %v5974_v46 = vpack.i.bf16 %v1382_v35, %v1381_v16 }
 0x9dd   : > { %5975 = vrot.lane.b32.xlu1 %v5974_v46, %s8430_s17  ;;  %s8475_s17 = smov 48  }
 0x9df   : > { %v1864_v38 = vpop.xlane.xlu0 %1863 }
 0x9e0   : > { %6203 = vrcp.f32 %v1864_v38  ;;  %v6202_v28 = vpop.eup %6201 }
 0x9e1   : > { %v1683_v3 = vmul.f32 %v6202_v28, %v7246_v44 }
 0x9e3   : > { %v1858_v7 = vpop.xlane.xlu0 %1857 }
 0x9e4   : > { %6205 = vrcp.f32 %v1858_v7 }
 0x9e7   : > { %v1867_v12 = vpop.xlane.xlu1 %1866  ;;  %v1573_v6 = vpop.xlane.xlu0 %1572 }
 0x9e8   : > { %6207 = vrcp.f32 %v1867_v12 }
 0x9eb   : > { %v1861_v4 = vpop.xlane.xlu1 %1860 }
 0x9ed   : > { %v6204_v1 = vpop.eup %6203 }
 0x9ef   : > { %v1576_v63 = vpop.xlane.xlu1 %1575  ;;  %v1870_v42 = vpop.xlane.xlu0 %1869 }
 0x9f0   : > { %6209 = vrcp.f32 %v1576_v63 }
 0x9f1   : > { %6211 = vrcp.f32 %v1573_v6  ;;  %v6206_v5 = vpop.eup %6205 }
 0x9f2   : > { %6213 = vrcp.f32 %v1861_v4 }
 0x9f3   : > { %6215 = vrcp.f32 %v1567_v13  ;;  %v1876_v23 = vpop.xlane.xlu0 %1875 }
 0x9f4   : > { %6217 = vrcp.f32 %v1876_v23 }
 0x9f5   : > { %v6208_v8 = vpop.eup %6207 }
 0x9f7   : > { %v949_v10 = vpop.xlane.xlu0 %948 }
 0x9fb   : > { %v955_v16 = vpop.xlane.xlu0 %954 }
 0x9fd   : > { %v6210_v15 = vpop.eup %6209 }
 0x9fe   : > { %v6212_v18 = vpop.eup %6211  ;;  %v1685_v29 = vmul.f32 %v6210_v15, %v7241_v31 }
 0x9ff   : > { %v6214_v51 = vpop.eup %6213  ;;  %v1684_v52 = vmul.f32 %v6212_v18, %v7234_v20  ;;  %v961_v46 = vpop.xlane.xlu0 %960 }
 0xa00   : > { %v6216_v34 = vpop.eup %6215 }
 0xa01   : > { %v5994_v47 = vpack.i.bf16 %v1685_v29, %v1684_v52  ;;  %v1682_v24 = vmul.f32 %v6216_v34, %v7236_v36  ;;  %v6218_v31 = vpop.eup %6217 }
 0xa03   : > { %v5989_v33 = vpack.i.bf16 %v1683_v3, %v1682_v24  ;;  %v967_v2 = vpop.xlane.xlu0 %966 }
 0xa22   : > { %v1873_v26 = vpop.xlane.xlu1 %1872 }
 0xa26   : > { %v1879_v48 = vpop.xlane.xlu1 %1878 }
 0xa27   : > { %6219 = vrcp.f32 %v1879_v48 }
 0xa28   : > { %6221 = vrcp.f32 %v1870_v42 }
 0xa29   : > { %6223 = vrcp.f32 %v1873_v26 }
 0xa2a   : > { %v952_v36 = vpop.xlane.xlu1 %951  ;;  %6225 = vrcp.f32 %v949_v10 }
 0xa2e   : > { %v958_v37 = vpop.xlane.xlu1 %957 }
 0xa2f   : > { %6227 = vrcp.f32 %v958_v37 }
 0xa30   : > { %6229 = vrcp.f32 %v955_v16 }
 0xa31   : > { %6231 = vrcp.f32 %v952_v36 }
 0xa32   : > { %v964_v32 = vpop.xlane.xlu1 %963  ;;  %6233 = vrcp.f32 %v961_v46 }
 0xa33   : > { %6235 = vrcp.f32 %v967_v2 }
 0xa34   : > { %v6220_v25 = vpop.eup %6219  ;;  %6237 = vrcp.f32 %v964_v32  ;;  %v8460_v32 = vld [vmem:[#allocation15_spill] sm:$0xff] }
 0xa35   : > { %v6222_v62 = vpop.eup %6221 }
 0xa36   : > { %v6224_v49 = vpop.eup %6223  ;;  %v970_v11 = vpop.xlane.xlu1 %969 }
 0xa37   : > { %v6226_v12 = vpop.eup %6225  ;;  %6239 = vrcp.f32 %v970_v11  ;;  %v8461_v11 = vld [vmem:[#allocation14_spill] sm:$0xff] }
 0xa3a   : > { %v5956_v35 = vpop.permute.xlu1 %5955 }
 0xa3b   : > { %v5957_v26 = vunpack.i.l.bf16 %v5956_v35 }
 0xa3c   : > { %v6228_v4 = vpop.eup %6227 }
 0xa3d   : > { %v6230_v7 = vpop.eup %6229  ;;  %v1075_v42 = vmul.f32 %v6228_v4, %v7002_v56 }
 0xa3e   : > { %v6232_v6 = vpop.eup %6231 }
 0xa3f   : > { %v5951_v38 = vpop.permute.xlu0 %5950 }
 0xa40   : > { %v5953_v59 = vunpack.i.h.bf16 %v5951_v38  ;;  %v5952_v28 = vunpack.i.l.bf16 %v5951_v38 }
 0xa43   : > { %v5961_v41 = vpop.permute.xlu1 %5960 }
 0xa44   : > { %v5963_v15 = vunpack.i.h.bf16 %v5961_v41 }
 0xa47   : > { %v5966_v13 = vpop.permute.xlu1 %5965 }
 0xa48   : > { %v5968_v48 = vunpack.i.h.bf16 %v5966_v13 }
 0xa4b   : > { %v5971_v23 = vpop.permute.xlu0 %5970 }
 0xa4e   : > { %v5608_v40 = vpop.f32.mrf.mxu1 }
 0xa4f   : > { %v1983_v22 = vmul.f32 %v6204_v1, %v5608_v40  ;;  %v7396_v63 = vpop.permute.xlu1 %5975  ;;  %v1074_v40 = vmul.f32 %v6230_v7, %v6998_v54  ;;  %v1072_v1 = vmul.f32 %v6226_v12, %v7000_v55 }
 0xa50   : > { %v1942_v39 = vpop.f32.mrf.mxu1 }
 0xa51   : > { %v1981_v0 = vmul.f32 %v6206_v5, %v1942_v39  ;;  %v5967_v5 = vunpack.i.l.bf16 %v5966_v13  ;;  %v5958_v39 = vunpack.i.h.bf16 %v5956_v35  ;;  %v2085_v54 = vsel %vm808_vm1, %v1072_v1, %v5952_v28 }
 0xa52   : > { %v5609_v17 = vpop.f32.mrf.mxu1 }
 0xa53   : > { %v1984_v27 = vmul.f32 %v6208_v8, %v5609_v17  ;;  %v1073_v8 = vmul.f32 %v6232_v6, %v7004_v57  ;;  %v5962_v17 = vunpack.i.l.bf16 %v5961_v41 }
 0xa54   : > { %v1945_v50 = vpop.f32.mrf.mxu1 }
 0xa55   : > { %v5979_v43 = vpack.i.bf16 %v1984_v27, %v1983_v22  ;;  %v1982_v61 = vmul.f32 %v6214_v51, %v1945_v50  ;;  %v2088_v27 = vsel %vm808_vm1, %v1075_v42, %v5958_v39  ;;  %v2087_v51 = vsel %vm808_vm1, %v1074_v40, %v5957_v26 }
 0xa56   : > { %v2086_v55 = vsel %vm808_vm1, %v1073_v8, %v5953_v59  ;;  %v2097_v57 = vsel %vm2093_vm3, %v2088_v27, %v5968_v48  ;;  %v2094_v34 = vsel %vm2093_vm3, %v2085_v54, %v5962_v17  ;;  %v4971_v17 = vld [vmem:[#allocation2] ss:$0 sm:$0xff] }
 0xa57   : > { %v5984_v58 = vpack.i.bf16 %v1982_v61, %v1981_v0  ;;  %5980 = vrot.lane.b32.xlu1 %v5979_v43, %s8426_s28  ;;  %v2096_v0 = vsel %vm2093_vm3, %v2087_v51, %v5967_v5  ;;  %v2095_v29 = vsel %vm2093_vm3, %v2086_v55, %v5963_v15  ;;  %v6449_v51 = vld [vmem:[%s6769_s30] sm:$0xff] }
 0xa59   : > { %5985 = vrot.lane.b32.xlu0 %v5984_v58, %s8426_s28 }
 0xa5b   : > { %v5612_v53 = vpop.f32.mrf.mxu1  ;;  %5995 = vrot.lane.b32.xlu1 %v5994_v47, %s8428_s24 }
 0xa5c   : > { %v1987_v60 = vmul.f32 %v6218_v31, %v5612_v53  ;;  %v6234_v53 = vpop.eup %6233 }
 0xa5d   : > { %v1958_v9 = vpop.f32.mrf.mxu1  ;;  %5990 = vrot.lane.b32.xlu0 %v5989_v33, %s8428_s24 }
 0xa5e   : > { %v1985_v45 = vmul.f32 %v6222_v62, %v1958_v9  ;;  %v6236_v9 = vpop.eup %6235 }
 0xa5f   : > { %v5613_v19 = vpop.f32.mrf.mxu1  ;;  %v6238_v31 = vpop.eup %6237 }
 0xa60   : > { %v1988_v20 = vmul.f32 %v6220_v25, %v5613_v19  ;;  %v6240_v19 = vpop.eup %6239  ;;  %v1077_v10 = vmul.f32 %v6238_v31, %v8460_v32 }
 0xa61   : > { %v1961_v44 = vpop.f32.mrf.mxu1  ;;  %v1079_v16 = vmul.f32 %v6240_v19, %v8461_v11  ;;  %v6453_v19 = vld [vmem:[%s6769_s30 + $0x20] sm:$0xff] }
 0xa62   : > { %v6004_v30 = vpack.i.bf16 %v1988_v20, %v1987_v60  ;;  %v1986_v21 = vmul.f32 %v6224_v49, %v1961_v44  ;;  %v5973_v60 = vunpack.i.h.bf16 %v5971_v23  ;;  %v5972_v20 = vunpack.i.l.bf16 %v5971_v23 }
 0xa63   : > { %v5978_v49 = vunpack.i.h.bf16 %v7396_v63  ;;  %v5977_v44 = vunpack.i.l.bf16 %v7396_v63 }
 0xa64   : > { %v5999_v14 = vpack.i.bf16 %v1986_v21, %v1985_v45  ;;  %6005 = vrot.lane.b32.xlu1 %v6004_v30, %s8426_s28  ;;  %v8458_v45 = vld [vmem:[#allocation13_spill] sm:$0xff]  ;;  %v8459_v21 = vld [vmem:[#allocation12_spill] sm:$0xff]  ;;  %v2090_v38 = vsel %vm808_vm1, %v1077_v10, %v5973_v60 }
 0xa65   : > { %v1076_v30 = vmul.f32 %v6234_v53, %v8458_v45  ;;  %v2092_v4 = vsel %vm808_vm1, %v1079_v16, %v5978_v49 }
 0xa66   : > { %6000 = vrot.lane.b32.xlu0 %v5999_v14, %s8426_s28  ;;  %v1078_v14 = vmul.f32 %v6236_v9, %v8459_v21  ;;  %v6455_v21 = vld [vmem:[%s6769_s30 + $0x28] sm:$0xff] }
 0xa67   : > { %v2089_v12 = vsel %vm808_vm1, %v1076_v30, %v5972_v20  ;;  %v6454_v20 = vld [vmem:[%s6769_s30 + $0x30] sm:$0xff] }
 0xa68   : > { %v2091_v7 = vsel %vm808_vm1, %v1078_v14, %v5977_v44 }
 0xac9   : > { %v5981_v18 = vpop.permute.xlu1 %5980 }
 0xaca   : > { %v5983_v22 = vunpack.i.h.bf16 %v5981_v18  ;;  %v5982_v56 = vunpack.i.l.bf16 %v5981_v18 }
 0xacb   : > { %v5986_v50 = vpop.permute.xlu0 %5985 }
 0xacc   : > { %v5988_v43 = vunpack.i.h.bf16 %v5986_v50  ;;  %v5987_v61 = vunpack.i.l.bf16 %v5986_v50  ;;  %v2105_v58 = vsel %vm2102_vm4, %v2096_v0, %v5982_v56  ;;  %v2106_v52 = vsel %vm2102_vm4, %v2097_v57, %v5983_v22  ;;  %v6450_v50 = vld [vmem:[%s6769_s30 + $0x10] sm:$0xff] }
 0xacd   : > { %v2112_v33 = vpack.c.bf16 %v2106_v52, %v2105_v58  ;;  %v5996_v25 = vpop.permute.xlu1 %5995  ;;  %v6452_v58 = vld [vmem:[%s6769_s30 + $0x18] sm:$0xff] }
 0xace   : > { %v2103_v3 = vsel %vm2102_vm4, %v2094_v34, %v5987_v61  ;;  %v2104_v47 = vsel %vm2102_vm4, %v2095_v29, %v5988_v43  ;;  %v5998_v36 = vunpack.i.h.bf16 %v5996_v25  ;;  %v5997_v37 = vunpack.i.l.bf16 %v5996_v25  ;;  %v6451_v29 = vld [vmem:[%s6769_s30 + $0x8] sm:$0xff] }
 0xacf   : > { %v2111_v24 = vpack.c.bf16 %v2104_v47, %v2103_v3  ;;  %v5991_v62 = vpop.permute.xlu0 %5990 }
 0xad0   : > { %v5993_v35 = vunpack.i.h.bf16 %v5991_v62  ;;  %v5992_v46 = vunpack.i.l.bf16 %v5991_v62  ;;  %v2100_v6 = vsel %vm2093_vm3, %v2091_v7, %v5997_v37  ;;  %v2101_v42 = vsel %vm2093_vm3, %v2092_v4, %v5998_v36  ;;  %v6456_v36 = vld [vmem:[%s6769_s30 + $0x38] sm:$0xff]  ;;  %s8477_s30 = smov 104  }
 0xad1   : > { %5618 = vmatprep.mubr.msk.bf16.mxu1 %vm536_vm0, %v2111_v24 }
 0xad2   : > { %5619 = vmatmul.mubr.msk.bf16.vlgmr.msra.gmra.mxu1 %vm536_vm0, %v2112_v33  ;;  %v2098_v28 = vsel %vm2093_vm3, %v2089_v12, %v5992_v46  ;;  %v2099_v23 = vsel %vm2093_vm3, %v2090_v38, %v5993_v35 }
 0xad6   : > { %v6006_v41 = vpop.permute.xlu1 %6005 }
 0xad7   : > { %v6008_v2 = vunpack.i.h.bf16 %v6006_v41  ;;  %v6007_v13 = vunpack.i.l.bf16 %v6006_v41 }
 0xad8   : > { %v6001_v63 = vpop.permute.xlu0 %6000 }
 0xad9   : > { %v6003_v26 = vunpack.i.h.bf16 %v6001_v63  ;;  %v6002_v59 = vunpack.i.l.bf16 %v6001_v63  ;;  %v2109_v40 = vsel %vm2102_vm4, %v2100_v6, %v6007_v13  ;;  %v2110_v1 = vsel %vm2102_vm4, %v2101_v42, %v6008_v2 }
 0xada   : > { %v2114_v8 = vpack.c.bf16 %v2110_v1, %v2109_v40 }
 0xadb   : > { %v2107_v48 = vsel %vm2102_vm4, %v2098_v28, %v6002_v59  ;;  %v2108_v5 = vsel %vm2102_vm4, %v2099_v23, %v6003_v26 }
 0xadc   : > { %v2113_v39 = vpack.c.bf16 %v2108_v5, %v2107_v48 }
 0xade   : > { %5622 = vmatprep.mubr.msk.bf16.mxu1 %vm536_vm0, %v2113_v39 }
 0xadf   : > { %5623 = vmatmul.mubr.msk.bf16.gmra.mxu1 %vm536_vm0, %v2114_v8 }
 0xb92   : > { %v5620_v15 = vpop.f32.mrf.mxu1 }
 0xb93   : > { %v2193_v22 = vadd.f32 %v5620_v15, %v4971_v17 }
 0xb94   : > { %v2184_v18 = vpop.f32.mrf.mxu1 }
 0xb95   : > { %v2185_v56 = vadd.f32 %v4971_v17, %v2184_v18  ;;  %v7440_v0 = vadd.f32 %v6450_v50, %v2193_v22 }
 0xb96   : > { %v5621_v27 = vpop.f32.mrf.mxu1 }
 0xb97   : > { %v7437_v54 = vadd.f32 %v6449_v51, %v2185_v56  ;;  %v2196_v57 = vadd.f32 %v5621_v27, %v4971_v17  ;;  %v2229_v47 = vsel %vm536_vm0, %v7440_v0, 0.0 }
 0xb98   : > { %v2187_v55 = vpop.f32.mrf.mxu1 }
 0xb99   : > { %v2188_v43 = vadd.f32 %v4971_v17, %v2187_v55  ;;  %v2223_v61 = vsel %vm536_vm0, %v7437_v54, 0.0  ;;  %v7448_v52 = vadd.f32 %v6452_v58, %v2196_v57 }
 0xb9a   : > { %2224 = vadd.xlane.f32.xlu0 %v2223_v61 }
 0xb9b   : > { %v7445_v34 = vadd.f32 %v6451_v29, %v2188_v43  ;;  %v2232_v33 = vsel %vm536_vm0, %v7448_v52, 0.0 }
 0xb9d   : > { %v2226_v3 = vsel %vm536_vm0, %v7445_v34, 0.0 }
 0xb9e   : > { %2227 = vadd.xlane.f32.xlu1 %v2226_v3  ;;  %2230 = vadd.xlane.f32.xlu0 %v2229_v47 }
 0xb9f   : > { %v5624_v24 = vpop.f32.mrf.mxu1 }
 0xba0   : > { %v2209_v9 = vadd.f32 %v5624_v24, %v4971_v17 }
 0xba1   : > { %v2200_v53 = vpop.f32.mrf.mxu1 }
 0xba2   : > { %v2201_v31 = vadd.f32 %v4971_v17, %v2200_v53  ;;  %2233 = vadd.xlane.f32.xlu0 %v2232_v33  ;;  %v7460_v49 = vadd.f32 %v6454_v20, %v2209_v9  ;;  %v6073_v53 = vld [vmem:[#allocation4 + $0x8] sm:$0xff]   ;;  %v6074_v33 = vld [vmem:[#allocation4] sm:$0xff]  }
 0xba3   : > { %v5625_v25 = vpop.f32.mrf.mxu1  ;;  %5626 = vmatprep.subr.bf16.mxu0 %v6073_v53 }
 0xba4   : > { %v7457_v62 = vadd.f32 %v6453_v19, %v2201_v31  ;;  %v2212_v44 = vadd.f32 %v5625_v25, %v4971_v17  ;;  %v2241_v10 = vsel %vm536_vm0, %v7460_v49, 0.0  ;;  %5627 = vmatpush3.bf16.msra.mxu0 %v6073_v53 }
 0xba5   : > { %v2203_v60 = vpop.f32.mrf.mxu1  ;;  %5628 = vmatprep.subr.bf16.mxu0 %v6074_v33 }
 0xba6   : > { %v2204_v45 = vadd.f32 %v4971_v17, %v2203_v60  ;;  %v2235_v30 = vsel %vm536_vm0, %v7457_v62, 0.0  ;;  %v7468_v37 = vadd.f32 %v6456_v36, %v2212_v44 }
 0xba7   : > { %2236 = vadd.xlane.f32.xlu0 %v2235_v30 }
 0xba8   : > { %v7465_v14 = vadd.f32 %v6455_v21, %v2204_v45  ;;  %v2244_v11 = vsel %vm536_vm0, %v7468_v37, 0.0  ;;  %5629 = vmatpush3.bf16.msra.mxu0 %v6074_v33 }
 0xbaa   : > { %v2238_v32 = vsel %vm536_vm0, %v7465_v14, 0.0 }
 0xbab   : > { %2239 = vadd.xlane.f32.xlu1 %v2238_v32  ;;  %2242 = vadd.xlane.f32.xlu0 %v2241_v10 }
 0xbaf   : > { %2245 = vadd.xlane.f32.xlu1 %v2244_v11 }
 0xc23   : > { %v2225_v16 = vpop.xlane.xlu0 %2224 }
 0xc24   : > { %v2247_v35 = vmul.f32 0.03125, %v2225_v16 }
 0xc26   : > { %v7477_v46 = vsub.f32 %v7437_v54, %v2247_v35 }
 0xc27   : > { %v2228_v41 = vpop.xlane.xlu1 %2227  ;;  %v2231_v2 = vpop.xlane.xlu0 %2230 }
 0xc28   : > { %v2248_v13 = vmul.f32 0.03125, %v2228_v41  ;;  %v2249_v12 = vmul.f32 0.03125, %v2231_v2  ;;  %v2263_v38 = vmul.f32 %v7477_v46, %v7477_v46 }
 0xc2a   : > { %v7482_v4 = vsub.f32 %v7445_v34, %v2248_v13  ;;  %v7485_v7 = vsub.f32 %v7440_v0, %v2249_v12  ;;  %v2271_v63 = vsel %vm536_vm0, %v2263_v38, 0.0 }
 0xc2b   : > { %2272 = vadd.xlane.f32.xlu0 %v2271_v63  ;;  %v2234_v6 = vpop.xlane.xlu0 %2233  ;;  %v4978_v63 = vld [vmem:[%s8413_s8] ss:$0 sm:$0xff] }
 0xc2c   : > { %v2250_v42 = vmul.f32 0.03125, %v2234_v6  ;;  %v2264_v26 = vmul.f32 %v7482_v4, %v7482_v4  ;;  %v2265_v59 = vmul.f32 %v7485_v7, %v7485_v7 }
 0xc2e   : > { %v7493_v28 = vsub.f32 %v7448_v52, %v2250_v42  ;;  %v2274_v23 = vsel %vm536_vm0, %v2264_v26, 0.0  ;;  %v2277_v40 = vsel %vm536_vm0, %v2265_v59, 0.0 }
 0xc2f   : > { %2275 = vadd.xlane.f32.xlu1 %v2274_v23  ;;  %2278 = vadd.xlane.f32.xlu0 %v2277_v40 }
 0xc30   : > { %v2237_v1 = vpop.xlane.xlu0 %2236  ;;  %v2266_v48 = vmul.f32 %v7493_v28, %v7493_v28 }
 0xc31   : > { %v2251_v5 = vmul.f32 0.03125, %v2237_v1 }
 0xc32   : > { %v2280_v39 = vsel %vm536_vm0, %v2266_v48, 0.0 }
 0xc33   : > { %v7501_v8 = vsub.f32 %v7457_v62, %v2251_v5  ;;  %2281 = vadd.xlane.f32.xlu1 %v2280_v39 }
 0xc34   : > { %v2240_v15 = vpop.xlane.xlu1 %2239  ;;  %v2243_v17 = vpop.xlane.xlu0 %2242 }
 0xc35   : > { %v2252_v18 = vmul.f32 0.03125, %v2240_v15  ;;  %v2253_v22 = vmul.f32 0.03125, %v2243_v17  ;;  %v2267_v56 = vmul.f32 %v7501_v8, %v7501_v8 }
 0xc37   : > { %v7506_v27 = vsub.f32 %v7465_v14, %v2252_v18  ;;  %v7509_v51 = vsub.f32 %v7460_v49, %v2253_v22  ;;  %v2283_v55 = vsel %vm536_vm0, %v2267_v56, 0.0 }
 0xc38   : > { %v2246_v50 = vpop.xlane.xlu1 %2245  ;;  %2284 = vadd.xlane.f32.xlu0 %v2283_v55 }
 0xc39   : > { %v2254_v57 = vmul.f32 0.03125, %v2246_v50  ;;  %v2268_v43 = vmul.f32 %v7506_v27, %v7506_v27  ;;  %v2269_v61 = vmul.f32 %v7509_v51, %v7509_v51 }
 0xc3b   : > { %v7517_v29 = vsub.f32 %v7468_v37, %v2254_v57  ;;  %v2286_v58 = vsel %vm536_vm0, %v2268_v43, 0.0  ;;  %v2289_v3 = vsel %vm536_vm0, %v2269_v61, 0.0 }
 0xc3c   : > { %2287 = vadd.xlane.f32.xlu1 %v2286_v58  ;;  %2290 = vadd.xlane.f32.xlu0 %v2289_v3 }
 0xc3d   : > { %v2270_v47 = vmul.f32 %v7517_v29, %v7517_v29 }
 0xc3f   : > { %v2292_v24 = vsel %vm536_vm0, %v2270_v47, 0.0 }
 0xc40   : > { %2293 = vadd.xlane.f32.xlu1 %v2292_v24 }
 0xcb4   : > { %v2273_v9 = vpop.xlane.xlu0 %2272 }
 0xcb5   : > { %v2295_v31 = vmul.f32 0.03125, %v2273_v9 }
 0xcb7   : > { %v2303_v25 = vadd.f32 1e-05, %v2295_v31 }
 0xcb8   : > { %v2276_v19 = vpop.xlane.xlu1 %2275  ;;  %v2279_v60 = vpop.xlane.xlu0 %2278 }
 0xcb9   : > { %6241 = vrsqrt.f32 %v2303_v25  ;;  %v2296_v20 = vmul.f32 0.03125, %v2276_v19  ;;  %v2297_v44 = vmul.f32 0.03125, %v2279_v60 }
 0xcbb   : > { %v2304_v45 = vadd.f32 1e-05, %v2296_v20  ;;  %v2305_v30 = vadd.f32 1e-05, %v2297_v44 }
 0xcbc   : > { %v2282_v21 = vpop.xlane.xlu1 %2281 }
 0xcbd   : > { %6243 = vrsqrt.f32 %v2304_v45  ;;  %v2298_v36 = vmul.f32 0.03125, %v2282_v21  ;;  %v6078_v21 = vld [vmem:[%s8417_s12 + $0x20] sm:$0xff]  }
 0xcbe   : > { %6245 = vrsqrt.f32 %v2305_v30 }
 0xcbf   : > { %v2306_v32 = vadd.f32 1e-05, %v2298_v36  ;;  %v6079_v36 = vld [vmem:[%s8417_s12 + $0x18] sm:$0xff]  }
 0xcc1   : > { %6247 = vrsqrt.f32 %v2306_v32  ;;  %v2285_v10 = vpop.xlane.xlu0 %2284  ;;  %v6080_v32 = vld [vmem:[%s8417_s12 + $0x10] sm:$0xff]  }
 0xcc2   : > { %v2299_v11 = vmul.f32 0.03125, %v2285_v10  ;;  %v6081_v10 = vld [vmem:[%s8417_s12 + $0x8] sm:$0xff]  }
 0xcc4   : > { %v2307_v16 = vadd.f32 1e-05, %v2299_v11  ;;  %v6082_v11 = vld [vmem:[%s8417_s12] sm:$0xff]  }
 0xcc5   : > { %v2288_v35 = vpop.xlane.xlu1 %2287  ;;  %v2291_v41 = vpop.xlane.xlu0 %2290 }
 0xcc6   : > { %v6242_v2 = vpop.eup %6241  ;;  %6249 = vrsqrt.f32 %v2307_v16  ;;  %v2300_v13 = vmul.f32 0.03125, %v2288_v35  ;;  %v2301_v12 = vmul.f32 0.03125, %v2291_v41  ;;  %v4980_v16 = vld [vmem:[#allocation6] ss:$0 sm:$0xff] }
 0xcc7   : > { %v2319_v38 = vmul.f32 %v6242_v2, %v7477_v46  ;;  %v4979_v46 = vld [vmem:[%s8414_s9] ss:$0 sm:$0xff] }
 0xcc8   : > { %v2308_v6 = vadd.f32 1e-05, %v2300_v13  ;;  %v2309_v42 = vadd.f32 1e-05, %v2301_v12 }
 0xcc9   : > { %v2294_v26 = vpop.xlane.xlu1 %2293  ;;  %v2334_v48 = vmul.f32 %v4978_v63, %v2319_v38 }
 0xcca   : > { %v6244_v59 = vpop.eup %6243  ;;  %6251 = vrsqrt.f32 %v2308_v6  ;;  %v2302_v23 = vmul.f32 0.03125, %v2294_v26 }
 0xccb   : > { %v6246_v40 = vpop.eup %6245  ;;  %6253 = vrsqrt.f32 %v2309_v42  ;;  %v2320_v1 = vmul.f32 %v6244_v59, %v7482_v4  ;;  %v2349_v56 = vadd.f32 %v4979_v46, %v2334_v48 }
 0xccc   : > { %v2321_v5 = vmul.f32 %v6246_v40, %v7485_v7  ;;  %v2310_v39 = vadd.f32 1e-05, %v2302_v23 }
 0xccd   : > { %v2335_v15 = vmul.f32 %v4978_v63, %v2320_v1 }
 0xcce   : > { %v6248_v17 = vpop.eup %6247  ;;  %6255 = vrsqrt.f32 %v2310_v39  ;;  %v2336_v18 = vmul.f32 %v4978_v63, %v2321_v5 }
 0xccf   : > { %v2322_v22 = vmul.f32 %v6248_v17, %v7493_v28  ;;  %v2350_v55 = vadd.f32 %v4979_v46, %v2335_v15 }
 0xcd0   : > { %v2351_v4 = vadd.f32 %v4979_v46, %v2336_v18 }
 0xcd1   : > { %v2337_v50 = vmul.f32 %v4978_v63, %v2322_v22  ;;  %v2357_v57 = vpack.c.bf16 %v2350_v55, %v2349_v56 }
 0xcd3   : > { %v6250_v43 = vpop.eup %6249  ;;  %5630 = vmatprep.mubr.msk.bf16.mxu0 %vm536_vm0, %v2357_v57  ;;  %v2352_v7 = vadd.f32 %v4979_v46, %v2337_v50 }
 0xcd4   : > { %v2323_v61 = vmul.f32 %v6250_v43, %v7501_v8 }
 0xcd5   : > { %v2358_v58 = vpack.c.bf16 %v2352_v7, %v2351_v4 }
 0xcd6   : > { %v2338_v53 = vmul.f32 %v4978_v63, %v2323_v61 }
 0xcd7   : > { %v6252_v3 = vpop.eup %6251  ;;  %5631 = vmatmul.mubr.msk.bf16.vlgmr.msra.gmra.mxu0 %vm536_vm0, %v2358_v58 }
 0xcd8   : > { %v6254_v47 = vpop.eup %6253  ;;  %v2324_v24 = vmul.f32 %v6252_v3, %v7506_v27  ;;  %v2353_v31 = vadd.f32 %v4979_v46, %v2338_v53  ;;  %v6075_v27 = vld [vmem:[%s8417_s12 + $0x38] sm:$0xff]  }
 0xcd9   : > { %v2325_v28 = vmul.f32 %v6254_v47, %v7509_v51  ;;  %5638 = vmatprep.subr.bf16.mxu1 %v6075_v27  ;;  %v6076_v51 = vld [vmem:[%s8417_s12 + $0x30] sm:$0xff]  }
 0xcda   : > { %v2339_v33 = vmul.f32 %v4978_v63, %v2324_v24  ;;  %5639 = vmatpush3.bf16.msra.mxu1 %v6075_v27 }
 0xcdb   : > { %v6256_v9 = vpop.eup %6255  ;;  %v2340_v60 = vmul.f32 %v4978_v63, %v2325_v28  ;;  %5640 = vmatprep.subr.bf16.mxu1 %v6076_v51 }
 0xcdc   : > { %v2354_v25 = vadd.f32 %v4979_v46, %v2339_v33  ;;  %v2326_v19 = vmul.f32 %v6256_v9, %v7517_v29  ;;  %v6077_v29 = vld [vmem:[%s8417_s12 + $0x28] sm:$0xff]  }
 0xcdd   : > { %v2355_v8 = vadd.f32 %v4979_v46, %v2340_v60 }
 0xcde   : > { %v2359_v20 = vpack.c.bf16 %v2354_v25, %v2353_v31  ;;  %v2341_v44 = vmul.f32 %v4978_v63, %v2326_v19  ;;  %5641 = vmatpush3.bf16.msra.mxu1 %v6076_v51 }
 0xcdf   : > { %5642 = vmatprep.subr.bf16.mxu1 %v6077_v29 }
 0xce0   : > { %5634 = vmatprep.mubr.msk.bf16.mxu0 %vm536_vm0, %v2359_v20  ;;  %v2356_v45 = vadd.f32 %v4979_v46, %v2341_v44 }
 0xce2   : > { %v2360_v30 = vpack.c.bf16 %v2356_v45, %v2355_v8  ;;  %5643 = vmatpush3.bf16.msra.mxu1 %v6077_v29 }
 0xce3   : > { %5644 = vmatprep.subr.bf16.mxu1 %v6078_v21 }
 0xce4   : > { %5635 = vmatmul.mubr.msk.bf16.gmra.mxu0 %vm536_vm0, %v2360_v30 }
 0xce6   : > { %5645 = vmatpush3.bf16.msra.mxu1 %v6078_v21 }
 0xce7   : > { %5646 = vmatprep.subr.bf16.mxu1 %v6079_v36 }
 0xcea   : > { %5647 = vmatpush3.bf16.msra.mxu1 %v6079_v36 }
 0xceb   : > { %5648 = vmatprep.subr.bf16.mxu1 %v6080_v32 }
 0xcee   : > { %5649 = vmatpush3.bf16.msra.mxu1 %v6080_v32 }
 0xcef   : > { %5650 = vmatprep.subr.bf16.mxu1 %v6081_v10 }
 0xcf2   : > { %5651 = vmatpush3.bf16.msra.mxu1 %v6081_v10 }
 0xcf3   : > { %5652 = vmatprep.subr.bf16.mxu1 %v6082_v11 }
 0xcf6   : > { %5653 = vmatpush3.bf16.msra.mxu1 %v6082_v11 }
 0xd97   : > { %v5632_v35 = vpop.f32.mrf.mxu0 }
 0xd98   : > { %v2439_v41 = vadd.f32 %v5632_v35, %v4980_v16 }
 0xd99   : > { %v2430_v2 = vpop.f32.mrf.mxu0 }
 0xd9a   : > { %v2431_v13 = vadd.f32 %v4980_v16, %v2430_v2  ;;  %v2471_v12 = vmul.f32 0.70710677, %v2439_v41  ;;  %v2463_v28 = vmul.f32 0.5, %v2439_v41 }
 0xd9b   : > { %v5633_v38 = vpop.f32.mrf.mxu0 }
 0xd9c   : > { %v2469_v63 = vmul.f32 0.70710677, %v2431_v13  ;;  %v2442_v6 = vadd.f32 %v5633_v38, %v4980_v16  ;;  %v2461_v47 = vmul.f32 0.5, %v2431_v13 }
 0xd9d   : > { %v2433_v42 = vpop.f32.mrf.mxu0 }
 0xd9e   : > { %6257 = verf.f32 %v2469_v63  ;;  %v2472_v26 = vmul.f32 0.70710677, %v2442_v6  ;;  %v2434_v59 = vadd.f32 %v4980_v16, %v2433_v42  ;;  %v2464_v3 = vmul.f32 0.5, %v2442_v6  ;;  %v4995_v42 = vld [vmem:[#allocation7] ss:$0 sm:$0xff] }
 0xd9f   : > { %6259 = verf.f32 %v2471_v12 }
 0xda0   : > { %6261 = verf.f32 %v2472_v26  ;;  %v2470_v23 = vmul.f32 0.70710677, %v2434_v59  ;;  %v2462_v24 = vmul.f32 0.5, %v2434_v59 }
 0xda2   : > { %6263 = verf.f32 %v2470_v23 }
 0xda4   : > { %v5636_v40 = vpop.f32.mrf.mxu0 }
 0xda5   : > { %v2455_v1 = vadd.f32 %v5636_v40, %v4980_v16 }
 0xda6   : > { %v2446_v48 = vpop.f32.mrf.mxu0 }
 0xda7   : > { %v2447_v5 = vadd.f32 %v4980_v16, %v2446_v48  ;;  %v2475_v39 = vmul.f32 0.70710677, %v2455_v1  ;;  %v2467_v10 = vmul.f32 0.5, %v2455_v1 }
 0xda8   : > { %v5637_v46 = vpop.f32.mrf.mxu0 }
 0xda9   : > { %v2473_v15 = vmul.f32 0.70710677, %v2447_v5  ;;  %v2458_v17 = vadd.f32 %v5637_v46, %v4980_v16  ;;  %v2465_v21 = vmul.f32 0.5, %v2447_v5 }
 0xdaa   : > { %v2449_v18 = vpop.f32.mrf.mxu0 }
 0xdab   : > { %v6258_v22 = vpop.eup %6257  ;;  %6265 = verf.f32 %v2473_v15  ;;  %v2476_v56 = vmul.f32 0.70710677, %v2458_v17  ;;  %v2450_v55 = vadd.f32 %v4980_v16, %v2449_v18  ;;  %v2468_v29 = vmul.f32 0.5, %v2458_v17 }
 0xdac   : > { %v6260_v50 = vpop.eup %6259  ;;  %6267 = verf.f32 %v2475_v39  ;;  %v2485_v4 = vadd.f32 1.0, %v6258_v22 }
 0xdad   : > { %v6262_v57 = vpop.eup %6261  ;;  %6269 = verf.f32 %v2476_v56  ;;  %v2474_v43 = vmul.f32 0.70710677, %v2450_v55  ;;  %v2487_v58 = vadd.f32 1.0, %v6260_v50  ;;  %v2466_v36 = vmul.f32 0.5, %v2450_v55 }
 0xdae   : > { %v2488_v7 = vadd.f32 1.0, %v6262_v57  ;;  %v2493_v9 = vmul.f32 %v2485_v4, %v2461_v47 }
 0xdaf   : > { %v6264_v61 = vpop.eup %6263  ;;  %6271 = verf.f32 %v2474_v43  ;;  %v2495_v25 = vmul.f32 %v2487_v58, %v2463_v28 }
 0xdb0   : > { %v2486_v53 = vadd.f32 1.0, %v6264_v61  ;;  %v2496_v33 = vmul.f32 %v2488_v7, %v2464_v3 }
 0xdb2   : > { %v2494_v31 = vmul.f32 %v2486_v53, %v2462_v24  ;;  %v2502_v60 = vpack.c.bf16 %v2496_v33, %v2495_v25 }
 0xdb4   : > { %v2501_v19 = vpack.c.bf16 %v2494_v31, %v2493_v9 }
 0xdb6   : > { %5654 = vmatprep.mubr.bf16.mxu1 %v2501_v19 }
 0xdb7   : > { %5655 = vmatmul.mubr.bf16.vlgmr.msra.gmra.mxu1 %v2502_v60 }
 0xdb8   : > { %v6266_v20 = vpop.eup %6265 }
 0xdb9   : > { %v6268_v44 = vpop.eup %6267  ;;  %v2489_v45 = vadd.f32 1.0, %v6266_v20 }
 0xdba   : > { %v6270_v8 = vpop.eup %6269  ;;  %v2491_v51 = vadd.f32 1.0, %v6268_v44 }
 0xdbb   : > { %v2492_v30 = vadd.f32 1.0, %v6270_v8  ;;  %v2497_v16 = vmul.f32 %v2489_v45, %v2465_v21 }
 0xdbc   : > { %v6272_v27 = vpop.eup %6271  ;;  %v2499_v41 = vmul.f32 %v2491_v51, %v2467_v10 }
 0xdbd   : > { %v2490_v32 = vadd.f32 1.0, %v6272_v27  ;;  %v2500_v11 = vmul.f32 %v2492_v30, %v2468_v29 }
 0xdbf   : > { %v2498_v35 = vmul.f32 %v2490_v32, %v2466_v36  ;;  %v2504_v13 = vpack.c.bf16 %v2500_v11, %v2499_v41 }
 0xdc1   : > { %v2503_v2 = vpack.c.bf16 %v2498_v35, %v2497_v16 }
 0xdc3   : > { %5658 = vmatprep.mubr.bf16.mxu1 %v2503_v2 }
 0xdc4   : > { %5659 = vmatmul.mubr.bf16.gmra.mxu1 %v2504_v13 }
 0xe77   : > { %v5656_v12 = vpop.f32.mrf.mxu1 }
 0xe78   : > { %v2636_v63 = vadd.f32 %v5656_v12, %v7440_v0 }
 0xe79   : > { %v2603_v38 = vpop.f32.mrf.mxu1 }
 0xe7a   : > { %v2634_v6 = vadd.f32 %v2603_v38, %v7437_v54  ;;  %v7570_v40 = vadd.f32 %v4995_v42, %v2636_v63 }
 0xe7b   : > { %v5657_v26 = vpop.f32.mrf.mxu1 }
 0xe7c   : > { %v7568_v59 = vadd.f32 %v4995_v42, %v2634_v6  ;;  %8463 = vst [vmem:[#allocation12_spill] sm:$0xff] %v7570_v40  ;;  %v2637_v1 = vadd.f32 %v5657_v26, %v7448_v52  ;;  %v2663_v54 = vsel %vm536_vm0, %v7570_v40, 0.0 }
 0xe7d   : > { %v2606_v23 = vpop.f32.mrf.mxu1 }
 0xe7e   : > { %8462 = vst [vmem:[#allocation13_spill] sm:$0xff] %v7568_v59  ;;  %v2635_v48 = vadd.f32 %v2606_v23, %v7445_v34  ;;  %v2657_v5 = vsel %vm536_vm0, %v7568_v59, 0.0  ;;  %v7578_v0 = vadd.f32 %v4995_v42, %v2637_v1 }
 0xe7f   : > { %2658 = vadd.xlane.f32.xlu0 %v2657_v5  ;;  %v6083_v5 = vld [vmem:[%s8409_s4 + $0x18] sm:$0xff]  }
 0xe80   : > { %v7576_v39 = vadd.f32 %v4995_v42, %v2635_v48  ;;  %8465 = vst [vmem:[#allocation14_spill] sm:$0xff] %v7578_v0  ;;  %v2666_v34 = vsel %vm536_vm0, %v7578_v0, 0.0  ;;  %5662 = vmatprep.subr.bf16.mxu0 %v6083_v5 }
 0xe81   : > { %5663 = vmatpush3.bf16.msra.mxu0 %v6083_v5 }
 0xe82   : > { %8464 = vst [vmem:[#allocation15_spill] sm:$0xff] %v7576_v39  ;;  %v2660_v46 = vsel %vm536_vm0, %v7576_v39, 0.0 }
 0xe83   : > { %2664 = vadd.xlane.f32.xlu0 %v2663_v54  ;;  %2661 = vadd.xlane.f32.xlu1 %v2660_v46  ;;  %v6084_v54 = vld [vmem:[%s8409_s4 + $0x10] sm:$0xff]  }
 0xe84   : > { %v5660_v15 = vpop.f32.mrf.mxu1  ;;  %5664 = vmatprep.subr.bf16.mxu0 %v6084_v54 }
 0xe85   : > { %v2640_v17 = vadd.f32 %v5660_v15, %v7460_v49  ;;  %5665 = vmatpush3.bf16.msra.mxu0 %v6084_v54 }
 0xe86   : > { %v2619_v52 = vpop.f32.mrf.mxu1 }
 0xe87   : > { %v2638_v18 = vadd.f32 %v2619_v52, %v7457_v62  ;;  %2667 = vadd.xlane.f32.xlu1 %v2666_v34  ;;  %v7590_v50 = vadd.f32 %v4995_v42, %v2640_v17 }
 0xe88   : > { %v5661_v22 = vpop.f32.mrf.mxu1 }
 0xe89   : > { %v7588_v56 = vadd.f32 %v4995_v42, %v2638_v18  ;;  %8467 = vst [vmem:[#allocation17_spill] sm:$0xff] %v7590_v50  ;;  %v2641_v57 = vadd.f32 %v5661_v22, %v7468_v37  ;;  %v2675_v62 = vsel %vm536_vm0, %v7590_v50, 0.0 }
 0xe8a   : > { %v2622_v55 = vpop.f32.mrf.mxu1 }
 0xe8b   : > { %8466 = vst [vmem:[#allocation16_spill] sm:$0xff] %v7588_v56  ;;  %v2639_v43 = vadd.f32 %v2622_v55, %v7465_v14  ;;  %v2669_v4 = vsel %vm536_vm0, %v7588_v56, 0.0  ;;  %v7598_v49 = vadd.f32 %v4995_v42, %v2641_v57 }
 0xe8c   : > { %2670 = vadd.xlane.f32.xlu0 %v2669_v4 }
 0xe8d   : > { %v7596_v7 = vadd.f32 %v4995_v42, %v2639_v43  ;;  %8469 = vst [vmem:[#allocation19_spill] sm:$0xff] %v7598_v49  ;;  %v2678_v37 = vsel %vm536_vm0, %v7598_v49, 0.0 }
 0xe8f   : > { %8468 = vst [vmem:[#allocation18_spill] sm:$0xff] %v7596_v7  ;;  %v2672_v61 = vsel %vm536_vm0, %v7596_v7, 0.0 }
 0xe90   : > { %2676 = vadd.xlane.f32.xlu0 %v2675_v62  ;;  %2673 = vadd.xlane.f32.xlu1 %v2672_v61 }
 0xe94   : > { %2679 = vadd.xlane.f32.xlu1 %v2678_v37 }
 0xf08   : > { %v2659_v14 = vpop.xlane.xlu0 %2658 }
 0xf09   : > { %v2681_v58 = vmul.f32 0.03125, %v2659_v14 }
 0xf0b   : > { %v7607_v3 = vsub.f32 %v7568_v59, %v2681_v58 }
 0xf0c   : > { %v2662_v47 = vpop.xlane.xlu1 %2661  ;;  %v2665_v24 = vpop.xlane.xlu0 %2664 }
 0xf0d   : > { %v2682_v53 = vmul.f32 0.03125, %v2662_v47  ;;  %v2683_v28 = vmul.f32 0.03125, %v2665_v24  ;;  %v2697_v33 = vmul.f32 %v7607_v3, %v7607_v3 }
 0xf0f   : > { %v7612_v9 = vsub.f32 %v7576_v39, %v2682_v53  ;;  %v7615_v31 = vsub.f32 %v7570_v40, %v2683_v28  ;;  %v2705_v25 = vsel %vm536_vm0, %v2697_v33, 0.0 }
 0xf10   : > { %v2668_v19 = vpop.xlane.xlu1 %2667  ;;  %2706 = vadd.xlane.f32.xlu0 %v2705_v25  ;;  %v4997_v25 = vld [vmem:[%s8407_s2 + $0x1] ss:$0 sm:$0xff] }
 0xf11   : > { %v2684_v60 = vmul.f32 0.03125, %v2668_v19  ;;  %v2698_v20 = vmul.f32 %v7612_v9, %v7612_v9  ;;  %v2699_v44 = vmul.f32 %v7615_v31, %v7615_v31 }
 0xf13   : > { %v7623_v8 = vsub.f32 %v7578_v0, %v2684_v60  ;;  %v2708_v45 = vsel %vm536_vm0, %v2698_v20, 0.0  ;;  %v2711_v30 = vsel %vm536_vm0, %v2699_v44, 0.0 }
 0xf14   : > { %2709 = vadd.xlane.f32.xlu1 %v2708_v45  ;;  %2712 = vadd.xlane.f32.xlu0 %v2711_v30 }
 0xf15   : > { %v2671_v27 = vpop.xlane.xlu0 %2670  ;;  %v2700_v51 = vmul.f32 %v7623_v8, %v7623_v8 }
 0xf16   : > { %v2685_v29 = vmul.f32 0.03125, %v2671_v27 }
 0xf17   : > { %v2714_v21 = vsel %vm536_vm0, %v2700_v51, 0.0 }
 0xf18   : > { %v7631_v36 = vsub.f32 %v7588_v56, %v2685_v29  ;;  %2715 = vadd.xlane.f32.xlu1 %v2714_v21 }
 0xf19   : > { %v2674_v32 = vpop.xlane.xlu1 %2673  ;;  %v2677_v10 = vpop.xlane.xlu0 %2676 }
 0xf1a   : > { %v2686_v11 = vmul.f32 0.03125, %v2674_v32  ;;  %v2687_v16 = vmul.f32 0.03125, %v2677_v10  ;;  %v2701_v35 = vmul.f32 %v7631_v36, %v7631_v36 }
 0xf1c   : > { %v7636_v41 = vsub.f32 %v7596_v7, %v2686_v11  ;;  %v7639_v2 = vsub.f32 %v7590_v50, %v2687_v16  ;;  %v2717_v13 = vsel %vm536_vm0, %v2701_v35, 0.0 }
 0xf1d   : > { %v2680_v12 = vpop.xlane.xlu1 %2679  ;;  %2718 = vadd.xlane.f32.xlu0 %v2717_v13 }
 0xf1e   : > { %v2688_v38 = vmul.f32 0.03125, %v2680_v12  ;;  %v2702_v63 = vmul.f32 %v7636_v41, %v7636_v41  ;;  %v2703_v6 = vmul.f32 %v7639_v2, %v7639_v2 }
 0xf20   : > { %v7647_v42 = vsub.f32 %v7598_v49, %v2688_v38  ;;  %v2720_v26 = vsel %vm536_vm0, %v2702_v63, 0.0  ;;  %v2723_v23 = vsel %vm536_vm0, %v2703_v6, 0.0 }
 0xf21   : > { %2721 = vadd.xlane.f32.xlu1 %v2720_v26  ;;  %2724 = vadd.xlane.f32.xlu0 %v2723_v23 }
 0xf22   : > { %v2704_v1 = vmul.f32 %v7647_v42, %v7647_v42 }
 0xf24   : > { %v2726_v48 = vsel %vm536_vm0, %v2704_v1, 0.0 }
 0xf25   : > { %2727 = vadd.xlane.f32.xlu1 %v2726_v48 }
 0xf99   : > { %v2707_v46 = vpop.xlane.xlu0 %2706 }
 0xf9a   : > { %v2729_v15 = vmul.f32 0.03125, %v2707_v46 }
 0xf9c   : > { %v2737_v52 = vadd.f32 1e-05, %v2729_v15 }
 0xf9d   : > { %v2710_v34 = vpop.xlane.xlu1 %2709  ;;  %v2713_v17 = vpop.xlane.xlu0 %2712 }
 0xf9e   : > { %6273 = vrsqrt.f32 %v2737_v52  ;;  %v2730_v18 = vmul.f32 0.03125, %v2710_v34  ;;  %v2731_v22 = vmul.f32 0.03125, %v2713_v17 }
 0xfa0   : > { %v2738_v55 = vadd.f32 1e-05, %v2730_v18  ;;  %v2739_v57 = vadd.f32 1e-05, %v2731_v22 }
 0xfa1   : > { %v2716_v43 = vpop.xlane.xlu1 %2715 }
 0xfa2   : > { %6275 = vrsqrt.f32 %v2738_v55  ;;  %v2732_v4 = vmul.f32 0.03125, %v2716_v43 }
 0xfa3   : > { %6277 = vrsqrt.f32 %v2739_v57 }
 0xfa4   : > { %v2740_v62 = vadd.f32 1e-05, %v2732_v4 }
 0xfa6   : > { %6279 = vrsqrt.f32 %v2740_v62  ;;  %v2719_v61 = vpop.xlane.xlu0 %2718 }
 0xfa7   : > { %v2733_v37 = vmul.f32 0.03125, %v2719_v61 }
 0xfa9   : > { %v2741_v14 = vadd.f32 1e-05, %v2733_v37 }
 0xfaa   : > { %v2722_v58 = vpop.xlane.xlu1 %2721  ;;  %v2725_v47 = vpop.xlane.xlu0 %2724 }
 0xfab   : > { %v6274_v24 = vpop.eup %6273  ;;  %6281 = vrsqrt.f32 %v2741_v14  ;;  %v2734_v53 = vmul.f32 0.03125, %v2722_v58  ;;  %v2735_v28 = vmul.f32 0.03125, %v2725_v47 }
 0xfac   : > { %v2753_v33 = vmul.f32 %v6274_v24, %v7607_v3  ;;  %v4999_v3 = vld [vmem:[%s8408_s3 + $0x1] ss:$0 sm:$0xff] }
 0xfad   : > { %v2742_v19 = vadd.f32 1e-05, %v2734_v53  ;;  %v2743_v60 = vadd.f32 1e-05, %v2735_v28 }
 0xfae   : > { %v2728_v20 = vpop.xlane.xlu1 %2727  ;;  %v2769_v51 = vmul.f32 %v4997_v25, %v2753_v33 }
 0xfaf   : > { %v6276_v44 = vpop.eup %6275  ;;  %6283 = vrsqrt.f32 %v2742_v19  ;;  %v2736_v45 = vmul.f32 0.03125, %v2728_v20 }
 0xfb0   : > { %v6278_v30 = vpop.eup %6277  ;;  %6285 = vrsqrt.f32 %v2743_v60  ;;  %v2754_v27 = vmul.f32 %v6276_v44, %v7612_v9  ;;  %v2785_v35 = vadd.f32 %v4999_v3, %v2769_v51 }
 0xfb1   : > { %v2755_v29 = vmul.f32 %v6278_v30, %v7615_v31  ;;  %v2744_v21 = vadd.f32 1e-05, %v2736_v45 }
 0xfb2   : > { %v2770_v32 = vmul.f32 %v4997_v25, %v2754_v27 }
 0xfb3   : > { %v6280_v10 = vpop.eup %6279  ;;  %6287 = vrsqrt.f32 %v2744_v21  ;;  %v2771_v11 = vmul.f32 %v4997_v25, %v2755_v29 }
 0xfb4   : > { %v2756_v16 = vmul.f32 %v6280_v10, %v7623_v8  ;;  %v2786_v13 = vadd.f32 %v4999_v3, %v2770_v32 }
 0xfb5   : > { %v2787_v9 = vadd.f32 %v4999_v3, %v2771_v11 }
 0xfb6   : > { %v2772_v12 = vmul.f32 %v4997_v25, %v2756_v16  ;;  %v2793_v38 = vpack.c.bf16 %v2786_v13, %v2785_v35  ;;  %v5271_v35 = vld [vmem:[%s8406_s1 + $0x88] sm:$0xff]   ;;  %v5270_v13 = vld [vmem:[%s8406_s1 + $0x80] sm:$0xff]  }
 0xfb8   : > { %v6282_v63 = vpop.eup %6281  ;;  %5666 = vmatprep.mubr.msk.bf16.mxu0 %vm536_vm0, %v2793_v38  ;;  %v2788_v31 = vadd.f32 %v4999_v3, %v2772_v12  ;;  %v5197_v12 = vunpack.c.l.bf16 %v5271_v35  ;;  %v5193_v38 = vunpack.c.l.bf16 %v5270_v13 }
 0xfb9   : > { %v2757_v6 = vmul.f32 %v6282_v63, %v7631_v36 }
 0xfba   : > { %v2794_v26 = vpack.c.bf16 %v2788_v31, %v2787_v9 }
 0xfbb   : > { %v2773_v5 = vmul.f32 %v4997_v25, %v2757_v6 }
 0xfbc   : > { %v6284_v23 = vpop.eup %6283  ;;  %5667 = vmatmul.mubr.msk.bf16.vlgmr.msra.gmra.mxu0 %vm536_vm0, %v2794_v26 }
 0xfbd   : > { %v6286_v1 = vpop.eup %6285  ;;  %v2758_v48 = vmul.f32 %v6284_v23, %v7636_v41  ;;  %v2789_v15 = vadd.f32 %v4999_v3, %v2773_v5  ;;  %v5198_v23 = vunpack.c.h.bf16 %v5271_v35 }
 0xfbe   : > { %v2759_v8 = vmul.f32 %v6286_v1, %v7639_v2  ;;  %v5005_v2 = vld [vmem:[%s8410_s5 + $0x1] ss:$0 sm:$0xff]  ;;  %v5194_v1 = vunpack.c.h.bf16 %v5270_v13 }
 0xfbf   : > { %v2774_v54 = vmul.f32 %v4997_v25, %v2758_v48 }
 0xfc0   : > { %v6288_v46 = vpop.eup %6287  ;;  %v2775_v17 = vmul.f32 %v4997_v25, %v2759_v8 }
 0xfc1   : > { %v2790_v52 = vadd.f32 %v4999_v3, %v2774_v54  ;;  %v2760_v34 = vmul.f32 %v6288_v46, %v7647_v42 }
 0xfc2   : > { %v2791_v36 = vadd.f32 %v4999_v3, %v2775_v17  ;;  %v5272_v17 = vld [vmem:[%s8406_s1 + $0x90] sm:$0xff]  }
 0xfc3   : > { %v2795_v18 = vpack.c.bf16 %v2790_v52, %v2789_v15  ;;  %v2776_v22 = vmul.f32 %v4997_v25, %v2760_v34 }
 0xfc5   : > { %5670 = vmatprep.mubr.msk.bf16.mxu0 %vm536_vm0, %v2795_v18  ;;  %v2792_v55 = vadd.f32 %v4999_v3, %v2776_v22  ;;  %v5273_v18 = vld [vmem:[%s8406_s1 + $0x98] sm:$0xff]  }
 0xfc7   : > { %v2796_v57 = vpack.c.bf16 %v2792_v55, %v2791_v36  ;;  %v5201_v36 = vunpack.c.l.bf16 %v5272_v17  ;;  %v5205_v55 = vunpack.c.l.bf16 %v5273_v18 }
 0xfc9   : > { %5671 = vmatmul.mubr.msk.bf16.gmra.mxu0 %vm536_vm0, %v2796_v57 }
0x107c   : > { %v5668_v41 = vpop.f32.mrf.mxu0 }
0x107d   : > { %v2877_v44 = vadd.f32 %v5668_v41, %v5005_v2 }
0x107e   : > { %v2868_v43 = vpop.f32.mrf.mxu0 }
0x107f   : > { %v2869_v61 = vadd.f32 %v5005_v2, %v2868_v43  ;;  %v5206_v43 = vunpack.c.h.bf16 %v5273_v18 }
0x1080   : > { %v5669_v4 = vpop.f32.mrf.mxu0 }
0x1081   : > { %v2880_v60 = vadd.f32 %v5669_v4, %v5005_v2 }
0x1082   : > { %v2871_v62 = vpop.f32.mrf.mxu0 }
0x1083   : > { %v2872_v42 = vadd.f32 %v5005_v2, %v2871_v62  ;;  %v7693_v45 = vpack.c.bf16 %v2880_v60, %v2877_v44 }
0x1085   : > { %v7681_v37 = vpack.c.bf16 %v2872_v42, %v2869_v61 }
0x1087   : > { %5682 = vmatprep.mubr.msk.bf16.mxu0 %vm808_vm1, %v7681_v37 }
0x1089   : > { %v5672_v14 = vpop.f32.mrf.mxu0 }
0x108a   : > { %v2893_v24 = vadd.f32 %v5672_v14, %v5005_v2 }
0x108b   : > { %v2884_v58 = vpop.f32.mrf.mxu0 }
0x108c   : > { %v2885_v33 = vadd.f32 %v5005_v2, %v2884_v58 }
0x108d   : > { %v5673_v47 = vpop.f32.mrf.mxu0 }
0x108e   : > { %v2896_v53 = vadd.f32 %v5673_v47, %v5005_v2 }
0x108f   : > { %v2887_v28 = vpop.f32.mrf.mxu0 }
0x1090   : > { %v7685_v25 = vpack.c.bf16 %v2896_v53, %v2893_v24  ;;  %v2888_v19 = vadd.f32 %v5005_v2, %v2887_v28  ;;  %v5202_v2 = vunpack.c.h.bf16 %v5272_v17 }
0x1092   : > { %v7687_v20 = vpack.c.bf16 %v2888_v19, %v2885_v33  ;;  %2930 = vrot.lane.b32.xlu0 %v7685_v25, %s6589_s20 }
0x1094   : > { %2928 = vrot.lane.b32.xlu1 %v7687_v20, %s6589_s20 }
0x1096   : > { %3103 = vrot.lane.b32.xlu0 %v7685_v25, %s6590_s22 }
0x1098   : > { %2926 = vrot.lane.b32.xlu1 %v7693_v45, %s6589_s20 }
0x109c   : > { %2924 = vrot.lane.b32.xlu1 %v7681_v37, %s6589_s20 }
0x10a0   : > { %3101 = vrot.lane.b32.xlu1 %v7687_v20, %s6590_s22 }
0x10a4   : > { %3097 = vrot.lane.b32.xlu1 %v7681_v37, %s6590_s22 }
0x10a8   : > { %3233 = vrot.lane.b32.xlu1 %v7685_v25, %s6591_s18 }
0x1104   : > { %v2931_v30 = vpop.permute.xlu0 %2930 }
0x1105   : > { %5866 = vmatprep.subr.msk.bf16.mxu0 %vm808_vm1, %v2931_v30  ;;  %v2954_v27 = vsel %vm808_vm1, %v2931_v30, 0 }
0x1106   : > { %5675 = vmatpush3.bf16.xpose.msra.mxu0 %v2954_v27  ;;  %v2929_v51 = vpop.permute.xlu1 %2928 }
0x1107   : > { %5867 = vmatprep.subr.msk.bf16.mxu0 %vm808_vm1, %v2929_v51  ;;  %v2951_v3 = vsel %vm808_vm1, %v2929_v51, 0 }
0x1108   : > { %v3104_v29 = vpop.permute.xlu0 %3103 }
0x1109   : > { %5690 = vmatprep.subr.bf16.mxu1 %v3104_v29 }
0x110a   : > { %5691 = vmatpush3.bf16.msra.mxu1 %v3104_v29  ;;  %v2927_v21 = vpop.permute.xlu1 %2926 }
0x110b   : > { %v2948_v11 = vsel %vm808_vm1, %v2927_v21, 0 }
0x110e   : > { %5677 = vmatpush3.bf16.xpose.msra.mxu0 %v2951_v3  ;;  %v2925_v32 = vpop.permute.xlu1 %2924 }
0x110f   : > { %5868 = vmatprep.subr.msk.bf16.mxu0 %vm808_vm1, %v2927_v21  ;;  %v2945_v16 = vsel %vm808_vm1, %v2925_v32, 0 }
0x1112   : > { %v3102_v10 = vpop.permute.xlu1 %3101 }
0x1113   : > { %5692 = vmatprep.subr.bf16.mxu1 %v3102_v10 }
0x1114   : > { %5693 = vmatpush3.bf16.msra.mxu1 %v3102_v10 }
0x1116   : > { %5679 = vmatpush3.bf16.xpose.msra.mxu0 %v2948_v11  ;;  %v3098_v53 = vpop.permute.xlu1 %3097 }
0x1117   : > { %5869 = vmatprep.subr.msk.bf16.mxu0 %vm808_vm1, %v2925_v32 }
0x111a   : > { %v3234_v33 = vpop.permute.xlu1 %3233 }
0x111e   : > { %5681 = vmatpush3.bf16.xpose.msra.mxu0 %v2945_v16 }
0x1125   : > { %5683 = vmatmul.mubr.msk.bf16.vlgmr.msra.gmra.mxu0 %vm808_vm1, %v7693_v45 }
0x1126   : > { %5686 = vmatprep.mubr.msk.bf16.mxu0 %vm808_vm1, %v7687_v20 }
0x112d   : > { %5687 = vmatmul.mubr.msk.bf16.gmra.mxu0 %vm808_vm1, %v7685_v25 }
0x11e5   : > { %v5684_v63 = vpop.f32.mrf.mxu0 }
0x11e6   : > { %v2999_v9 = vadd.f32 %v5684_v63, %v5197_v12 }
0x11e7   : > { %v2990_v31 = vpop.f32.mrf.mxu0 }
0x11e8   : > { %v2991_v6 = vadd.f32 %v5193_v38, %v2990_v31  ;;  %v3027_v26 = vsel %vm898_vm2, %v2999_v9, -inf }
0x11e9   : > { %3028 = vmax.xlane.f32.xlu0 %v3027_v26  ;;  %v5685_v48 = vpop.f32.mrf.mxu0 }
0x11ea   : > { %v3002_v8 = vadd.f32 %v5685_v48, %v5198_v23  ;;  %v3021_v46 = vsel %vm898_vm2, %v2991_v6, -inf }
0x11eb   : > { %v2993_v5 = vpop.f32.mrf.mxu0 }
0x11ec   : > { %v2994_v54 = vadd.f32 %v5194_v1, %v2993_v5  ;;  %v3030_v52 = vsel %vm898_vm2, %v3002_v8, -inf }
0x11ed   : > { %3022 = vmax.xlane.f32.xlu0 %v3021_v46  ;;  %v5688_v34 = vpop.f32.mrf.mxu0 }
0x11ee   : > { %v3024_v15 = vsel %vm898_vm2, %v2994_v54, -inf  ;;  %v7743_v4 = vadd.f32 %v5688_v34, %v5205_v55 }
0x11ef   : > { %3025 = vmax.xlane.f32.xlu1 %v3024_v15  ;;  %v3006_v22 = vpop.f32.mrf.mxu0 }
0x11f0   : > { %v7741_v41 = vadd.f32 %v5201_v36, %v3006_v22  ;;  %v3039_v58 = vsel %vm898_vm2, %v7743_v4, -inf }
0x11f1   : > { %3031 = vmax.xlane.f32.xlu0 %v3030_v52  ;;  %v5689_v57 = vpop.f32.mrf.mxu0 }
0x11f2   : > { %v7745_v61 = vadd.f32 %v5689_v57, %v5206_v43  ;;  %v3033_v42 = vsel %vm898_vm2, %v7741_v41, -inf }
0x11f3   : > { %v3009_v62 = vpop.f32.mrf.mxu0 }
0x11f4   : > { %v7749_v14 = vadd.f32 %v5202_v2, %v3009_v62  ;;  %v3042_v47 = vsel %vm898_vm2, %v7745_v61, -inf }
0x11f6   : > { %v3036_v24 = vsel %vm898_vm2, %v7749_v14, -inf }
0x1200   : > { %3231 = vrot.lane.b32.xlu1 %v7687_v20, %s6591_s18 }
0x1207   : > { %3099 = vrot.lane.b32.xlu0 %v7693_v45, %s6590_s22  ;;  %s8478_s22 = smov 40  }
0x1224   : > { %3034 = vmax.xlane.f32.xlu1 %v3033_v42 }
0x1226   : > { %3040 = vmax.xlane.f32.xlu0 %v3039_v58 }
0x1228   : > { %3043 = vmax.xlane.f32.xlu1 %v3042_v47 }
0x122a   : > { %3037 = vmax.xlane.f32.xlu0 %v3036_v24 }
0x1239   : > { %3227 = vrot.lane.b32.xlu1 %v7681_v37, %s6591_s18 }
0x123d   : > { %3221 = vrot.lane.b32.xlu1 %v7693_v45, %s6592_s15 }
0x1240   : > { %3229 = vrot.lane.b32.xlu0 %v7693_v45, %s6591_s18  ;;  %s8479_s18 = smov 8  }
0x1241   : > { %3225 = vrot.lane.b32.xlu1 %v7685_v25, %s6592_s15 }
0x1244   : > { %3219 = vrot.lane.b32.xlu0 %v7681_v37, %s6592_s15 }
0x1245   : > { %3404 = vrot.lane.b32.xlu1 %v7687_v20, %s6593_s21 }
0x1248   : > { %3223 = vrot.lane.b32.xlu0 %v7687_v20, %s6592_s15  ;;  %s8480_s15 = smov 16  }
0x1249   : > { %3400 = vrot.lane.b32.xlu1 %v7681_v37, %s6593_s21 }
0x124c   : > { %3406 = vrot.lane.b32.xlu0 %v7685_v25, %s6593_s21 }
0x124d   : > { %3536 = vrot.lane.b32.xlu1 %v7685_v25, %s6594_s23 }
0x1272   : > { %v3029_v28 = vpop.xlane.xlu0 %3028 }
0x1273   : > { %v3047_v19 = vsub.f32 %v2999_v9, %v3029_v28  ;;  %v3257_v9 = vsel %vm808_vm1, %v3234_v33, 0 }
0x1275   : > { %v3057_v29 = vmul.f32 1.442695, %v3047_v19 }
0x1276   : > { %v3023_v60 = vpop.xlane.xlu0 %3022 }
0x1277   : > { %v3045_v44 = vsub.f32 %v2991_v6, %v3023_v60 }
0x1278   : > { %v3026_v30 = vpop.xlane.xlu1 %3025 }
0x1279   : > { %v3053_v27 = vmul.f32 1.442695, %v3045_v44  ;;  %v3046_v51 = vsub.f32 %v2994_v54, %v3026_v30  ;;  %v5275_v30 = vld [vmem:[%s8406_s1 + $0xa8] sm:$0xff]  }
0x127a   : > { %v3032_v21 = vpop.xlane.xlu0 %3031 }
0x127b   : > { %v3055_v3 = vmul.f32 1.442695, %v3046_v51  ;;  %v3048_v32 = vsub.f32 %v3002_v8, %v3032_v21  ;;  %6289 = vpow2.f32 %v3053_v27  ;;  %v5274_v51 = vld [vmem:[%s8406_s1 + $0xa0] sm:$0xff]  }
0x127c   : > { %v3232_v31 = vpop.permute.xlu1 %3231 }
0x127d   : > { %6291 = vpow2.f32 %v3055_v3  ;;  %v3059_v10 = vmul.f32 1.442695, %v3048_v32  ;;  %v3254_v6 = vsel %vm808_vm1, %v3232_v31, 0  ;;  %v5209_v3 = vunpack.c.l.bf16 %v5274_v51 }
0x127e   : > { %6293 = vpow2.f32 %v3057_v29  ;;  %v3100_v11 = vpop.permute.xlu0 %3099  ;;  %v5213_v29 = vunpack.c.l.bf16 %v5275_v30 }
0x127f   : > { %6295 = vpow2.f32 %v3059_v10  ;;  %5694 = vmatprep.subr.bf16.mxu1 %v3100_v11 }
0x1280   : > { %5695 = vmatpush3.bf16.msra.mxu1 %v3100_v11 }
0x1281   : > { %5696 = vmatprep.subr.bf16.mxu1 %v3098_v53 }
0x1284   : > { %5697 = vmatpush3.bf16.msra.mxu1 %v3098_v53 }
0x1285   : > { %5870 = vmatprep.subr.msk.bf16.mxu1 %vm808_vm1, %v3234_v33 }
0x1288   : > { %v7778_v16 = vpop.eup %6289 }
0x128a   : > { %v7780_v35 = vpop.eup %6291 }
0x128b   : > { %v7782_v13 = vpop.eup %6293  ;;  %v3093_v12 = vpack.c.bf16 %v7780_v35, %v7778_v16 }
0x128c   : > { %v7786_v38 = vpop.eup %6295 }
0x128d   : > { %v3094_v63 = vpack.c.bf16 %v7786_v38, %v7782_v13  ;;  %5698 = vmatprep.mubr.msk.bf16.mxu1 %vm898_vm2, %v3093_v12 }
0x128f   : > { %5699 = vmatmul.mubr.msk.bf16.vlgmr.msra.gmra.mxu1 %vm898_vm2, %v3094_v63 }
0x1290   : > { %5707 = vmatpush3.bf16.xpose.msra.mxu1 %v3257_v9  ;;  %v5214_v9 = vunpack.c.h.bf16 %v5275_v30 }
0x1291   : > { %5871 = vmatprep.subr.msk.bf16.mxu1 %vm808_vm1, %v3232_v31  ;;  %v5210_v31 = vunpack.c.h.bf16 %v5274_v51 }
0x1298   : > { %5709 = vmatpush3.bf16.xpose.msra.mxu1 %v3254_v6 }
0x12ad   : > { %v3035_v26 = vpop.xlane.xlu1 %3034 }
0x12ae   : > { %v3049_v23 = vsub.f32 %v7741_v41, %v3035_v26 }
0x12af   : > { %v3041_v1 = vpop.xlane.xlu0 %3040 }
0x12b0   : > { %v3051_v48 = vsub.f32 %v7743_v4, %v3041_v1  ;;  %v3061_v8 = vmul.f32 1.442695, %v3049_v23 }
0x12b1   : > { %v3044_v5 = vpop.xlane.xlu1 %3043 }
0x12b2   : > { %v3052_v54 = vsub.f32 %v7745_v61, %v3044_v5  ;;  %v3065_v34 = vmul.f32 1.442695, %v3051_v48  ;;  %6297 = vpow2.f32 %v3061_v8 }
0x12b3   : > { %v3038_v46 = vpop.xlane.xlu0 %3037 }
0x12b4   : > { %v3067_v15 = vmul.f32 1.442695, %v3052_v54  ;;  %v3050_v52 = vsub.f32 %v7749_v14, %v3038_v46  ;;  %v5276_v46 = vld [vmem:[%s8406_s1 + $0xb0] sm:$0xff]  }
0x12b5   : > { %v3228_v17 = vpop.permute.xlu1 %3227 }
0x12b6   : > { %v3063_v18 = vmul.f32 1.442695, %v3050_v52  ;;  %6299 = vpow2.f32 %v3067_v15  ;;  %v3248_v4 = vsel %vm808_vm1, %v3228_v17, 0  ;;  %v5277_v15 = vld [vmem:[%s8406_s1 + $0xb8] sm:$0xff]  }
0x12b7   : > { %v3230_v22 = vpop.permute.xlu0 %3229 }
0x12b8   : > { %6301 = vpow2.f32 %v3063_v18  ;;  %5872 = vmatprep.subr.msk.bf16.mxu1 %vm808_vm1, %v3230_v22  ;;  %v3251_v36 = vsel %vm808_vm1, %v3230_v22, 0 }
0x12b9   : > { %6303 = vpow2.f32 %v3065_v34  ;;  %5711 = vmatpush3.bf16.xpose.msra.mxu1 %v3251_v36  ;;  %v3222_v55 = vpop.permute.xlu1 %3221  ;;  %v5217_v34 = vunpack.c.l.bf16 %v5276_v46  ;;  %v5222_v36 = vunpack.c.h.bf16 %v5277_v15 }
0x12ba   : > { %5873 = vmatprep.subr.msk.bf16.mxu1 %vm808_vm1, %v3228_v17  ;;  %v5221_v17 = vunpack.c.l.bf16 %v5277_v15 }
0x12bb   : > { %v3220_v57 = vpop.permute.xlu0 %3219 }
0x12bd   : > { %v3226_v41 = vpop.permute.xlu1 %3225 }
0x12bf   : > { %v3224_v43 = vpop.permute.xlu0 %3223  ;;  %v7803_v2 = vpop.eup %6297 }
0x12c1   : > { %5713 = vmatpush3.bf16.xpose.msra.mxu1 %v3248_v4  ;;  %v3405_v14 = vpop.permute.xlu1 %3404 }
0x12c3   : > { %v3407_v62 = vpop.permute.xlu0 %3406  ;;  %v7805_v61 = vpop.eup %6299 }
0x12c4   : > { %5722 = vmatprep.subr.bf16.mxu0 %v3407_v62 }
0x12c5   : > { %v7807_v42 = vpop.eup %6301  ;;  %5723 = vmatpush3.bf16.msra.mxu0 %v3407_v62  ;;  %v3401_v30 = vpop.permute.xlu1 %3400 }
0x12c6   : > { %v7809_v58 = vpop.eup %6303  ;;  %5724 = vmatprep.subr.bf16.mxu0 %v3405_v14  ;;  %v3095_v47 = vpack.c.bf16 %v7807_v42, %v7803_v2 }
0x12c7   : > { %v3096_v24 = vpack.c.bf16 %v7805_v61, %v7809_v58 }
0x12c8   : > { %5702 = vmatprep.mubr.msk.bf16.mxu1 %vm898_vm2, %v3095_v47 }
0x12c9   : > { %5703 = vmatmul.mubr.msk.bf16.gmra.mxu1 %vm898_vm2, %v3096_v24  ;;  %5725 = vmatpush3.bf16.msra.mxu0 %v3405_v14 }
0x12ca   : > { %5714 = vmatprep.mubr.msk.bf16.mxu1 %vm808_vm1, %v3220_v57  ;;  %v5218_v57 = vunpack.c.h.bf16 %v5276_v46 }
0x12d1   : > { %5715 = vmatmul.mubr.msk.bf16.vlgmr.msra.gmra.mxu1 %vm808_vm1, %v3222_v55 }
0x12d2   : > { %5718 = vmatprep.mubr.msk.bf16.mxu1 %vm808_vm1, %v3224_v43 }
0x12d9   : > { %5719 = vmatmul.mubr.msk.bf16.gmra.mxu1 %vm808_vm1, %v3226_v41 }
0x134f   : > { %v7821_v53 = vpop.f32.mrf.mxu1 }
0x1351   : > { %v7823_v28 = vpop.f32.mrf.mxu1 }
0x1353   : > { %v7825_v33 = vpop.f32.mrf.mxu1 }
0x1355   : > { %v7827_v19 = vpop.f32.mrf.mxu1 }
0x1389   : > { %v7829_v60 = vpop.f32.mrf.mxu1 }
0x138a   : > { %8470 = vst [vmem:[#allocation20_spill] sm:$0xff] %v7829_v60 }
0x138b   : > { %v7831_v44 = vpop.f32.mrf.mxu1 }
0x138c   : > { %8471 = vst [vmem:[#allocation21_spill] sm:$0xff] %v7831_v44 }
0x138d   : > { %v7836_v27 = vpop.f32.mrf.mxu1 }
0x138e   : > { %8472 = vst [vmem:[#allocation22_spill] sm:$0xff] %v7836_v27  ;;  %v5285_v27 = vld [vmem:[%s8406_s1 + $0xf8] sm:$0xff]  }
0x138f   : > { %v7841_v21 = vpop.f32.mrf.mxu1 }
0x1390   : > { %8473 = vst [vmem:[#allocation23_spill] sm:$0xff] %v7841_v21 }
0x1391   : > { %v5716_v32 = vpop.f32.mrf.mxu1 }
0x1392   : > { %v3302_v10 = vadd.f32 %v5716_v32, %v5213_v29  ;;  %v3537_v29 = vpop.permute.xlu1 %3536 }
0x1393   : > { %v3293_v11 = vpop.f32.mrf.mxu1 }
0x1394   : > { %v3294_v12 = vadd.f32 %v5209_v3, %v3293_v11  ;;  %v3330_v63 = vsel %vm898_vm2, %v3302_v10, -inf }
0x1395   : > { %3331 = vmax.xlane.f32.xlu0 %v3330_v63  ;;  %v5717_v6 = vpop.f32.mrf.mxu1 }
0x1396   : > { %v3305_v23 = vadd.f32 %v5717_v6, %v5214_v9  ;;  %v3324_v48 = vsel %vm898_vm2, %v3294_v12, -inf }
0x1397   : > { %v3296_v26 = vpop.f32.mrf.mxu1 }
0x1398   : > { %v3297_v1 = vadd.f32 %v5210_v31, %v3296_v26  ;;  %v3333_v8 = vsel %vm898_vm2, %v3305_v23, -inf }
0x1399   : > { %3325 = vmax.xlane.f32.xlu0 %v3324_v48  ;;  %v5720_v54 = vpop.f32.mrf.mxu1 }
0x139a   : > { %v3327_v5 = vsel %vm898_vm2, %v3297_v1, -inf  ;;  %v7859_v55 = vadd.f32 %v5720_v54, %v5221_v17 }
0x139b   : > { %3328 = vmax.xlane.f32.xlu1 %v3327_v5  ;;  %v3309_v52 = vpop.f32.mrf.mxu1 }
0x139c   : > { %v7857_v22 = vadd.f32 %v5217_v34, %v3309_v52  ;;  %v3342_v14 = vsel %vm898_vm2, %v7859_v55, -inf  ;;  %v3560_v52 = vsel %vm808_vm1, %v3537_v29, 0 }
0x139d   : > { %3334 = vmax.xlane.f32.xlu0 %v3333_v8  ;;  %v5721_v18 = vpop.f32.mrf.mxu1 }
0x139e   : > { %v7861_v43 = vadd.f32 %v5721_v18, %v5222_v36  ;;  %v3336_v4 = vsel %vm898_vm2, %v7857_v22, -inf }
0x139f   : > { %v3312_v41 = vpop.f32.mrf.mxu1 }
0x13a0   : > { %v7865_v62 = vadd.f32 %v5218_v57, %v3312_v41  ;;  %v3345_v47 = vsel %vm898_vm2, %v7861_v43, -inf }
0x13a2   : > { %v3339_v24 = vsel %vm898_vm2, %v7865_v62, -inf }
0x13ac   : > { %3534 = vrot.lane.b32.xlu1 %v7687_v20, %s6594_s23 }
0x13b3   : > { %3402 = vrot.lane.b32.xlu0 %v7693_v45, %s6593_s21  ;;  %s8474_s21 = smov 112  }
0x13d0   : > { %3337 = vmax.xlane.f32.xlu1 %v3336_v4 }
0x13d2   : > { %3343 = vmax.xlane.f32.xlu0 %v3342_v14 }
0x13d4   : > { %3346 = vmax.xlane.f32.xlu1 %v3345_v47 }
0x13d6   : > { %3340 = vmax.xlane.f32.xlu0 %v3339_v24 }
0x13e5   : > { %3530 = vrot.lane.b32.xlu1 %v7681_v37, %s6594_s23 }
0x13e9   : > { %3524 = vrot.lane.b32.xlu1 %v7693_v45, %s8474_s21 }
0x13ec   : > { %3532 = vrot.lane.b32.xlu0 %v7693_v45, %s6594_s23 }
0x13ed   : > { %3528 = vrot.lane.b32.xlu1 %v7685_v25, %s8474_s21 }
0x13f0   : > { %3522 = vrot.lane.b32.xlu0 %v7681_v37, %s8474_s21 }
0x13f1   : > { %3707 = vrot.lane.b32.xlu1 %v7687_v20, %s8475_s17 }
0x13f4   : > { %3526 = vrot.lane.b32.xlu0 %v7687_v20, %s8474_s21 }
0x13f5   : > { %3703 = vrot.lane.b32.xlu1 %v7681_v37, %s8475_s17 }
0x13f8   : > { %3709 = vrot.lane.b32.xlu0 %v7685_v25, %s8475_s17 }
0x13f9   : > { %3839 = vrot.lane.b32.xlu1 %v7685_v25, %s8476_s26 }
0x141e   : > { %v3332_v51 = vpop.xlane.xlu0 %3331 }
0x141f   : > { %v3350_v3 = vsub.f32 %v3302_v10, %v3332_v51 }
0x1421   : > { %v3360_v6 = vmul.f32 1.442695, %v3350_v3 }
0x1422   : > { %v3326_v32 = vpop.xlane.xlu0 %3325 }
0x1423   : > { %v3348_v11 = vsub.f32 %v3294_v12, %v3326_v32 }
0x1424   : > { %v3329_v63 = vpop.xlane.xlu1 %3328 }
0x1425   : > { %v3356_v9 = vmul.f32 1.442695, %v3348_v11  ;;  %v3349_v31 = vsub.f32 %v3297_v1, %v3329_v63 }
0x1426   : > { %v3335_v26 = vpop.xlane.xlu0 %3334 }
0x1427   : > { %v3358_v48 = vmul.f32 1.442695, %v3349_v31  ;;  %v3351_v5 = vsub.f32 %v3305_v23, %v3335_v26  ;;  %6305 = vpow2.f32 %v3356_v9 }
0x1428   : > { %v3535_v34 = vpop.permute.xlu1 %3534 }
0x1429   : > { %6307 = vpow2.f32 %v3358_v48  ;;  %v3362_v8 = vmul.f32 1.442695, %v3351_v5  ;;  %v3557_v17 = vsel %vm808_vm1, %v3535_v34, 0 }
0x142a   : > { %6309 = vpow2.f32 %v3360_v6  ;;  %v3403_v54 = vpop.permute.xlu0 %3402 }
0x142b   : > { %6311 = vpow2.f32 %v3362_v8  ;;  %5726 = vmatprep.subr.bf16.mxu0 %v3403_v54 }
0x142c   : > { %5727 = vmatpush3.bf16.msra.mxu0 %v3403_v54 }
0x142d   : > { %5728 = vmatprep.subr.bf16.mxu0 %v3401_v30 }
0x1430   : > { %5729 = vmatpush3.bf16.msra.mxu0 %v3401_v30 }
0x1431   : > { %5874 = vmatprep.subr.msk.bf16.mxu0 %vm808_vm1, %v3537_v29 }
0x1434   : > { %v7894_v10 = vpop.eup %6305 }
0x1436   : > { %v7896_v12 = vpop.eup %6307 }
0x1437   : > { %v7898_v1 = vpop.eup %6309  ;;  %v3396_v23 = vpack.c.bf16 %v7896_v12, %v7894_v10 }
0x1438   : > { %v7902_v46 = vpop.eup %6311 }
0x1439   : > { %v3397_v15 = vpack.c.bf16 %v7902_v46, %v7898_v1  ;;  %5730 = vmatprep.mubr.msk.bf16.mxu0 %vm898_vm2, %v3396_v23 }
0x143b   : > { %5731 = vmatmul.mubr.msk.bf16.vlgmr.msra.gmra.mxu0 %vm898_vm2, %v3397_v15 }
0x143c   : > { %5739 = vmatpush3.bf16.xpose.msra.mxu0 %v3560_v52 }
0x143d   : > { %5875 = vmatprep.subr.msk.bf16.mxu0 %vm808_vm1, %v3535_v34 }
0x1444   : > { %5741 = vmatpush3.bf16.xpose.msra.mxu0 %v3557_v17 }
0x1459   : > { %v3338_v18 = vpop.xlane.xlu1 %3337 }
0x145a   : > { %v3352_v36 = vsub.f32 %v7857_v22, %v3338_v18 }
0x145b   : > { %v3344_v57 = vpop.xlane.xlu0 %3343 }
0x145c   : > { %v3354_v41 = vsub.f32 %v7859_v55, %v3344_v57  ;;  %v3364_v14 = vmul.f32 1.442695, %v3352_v36  ;;  %v5279_v57 = vld [vmem:[%s8406_s1 + $0xc8] sm:$0xff]  }
0x145d   : > { %v3347_v4 = vpop.xlane.xlu1 %3346 }
0x145e   : > { %v3355_v47 = vsub.f32 %v7861_v43, %v3347_v4  ;;  %v3368_v29 = vmul.f32 1.442695, %v3354_v41  ;;  %6313 = vpow2.f32 %v3364_v14  ;;  %v5278_v4 = vld [vmem:[%s8406_s1 + $0xc0] sm:$0xff]   ;;  %v5229_v14 = vunpack.c.l.bf16 %v5279_v57 }
0x145f   : > { %v3341_v24 = vpop.xlane.xlu0 %3340 }
0x1460   : > { %v3370_v30 = vmul.f32 1.442695, %v3355_v47  ;;  %v3353_v51 = vsub.f32 %v7865_v62, %v3341_v24  ;;  %v5225_v24 = vunpack.c.l.bf16 %v5278_v4 }
0x1461   : > { %v3531_v3 = vpop.permute.xlu1 %3530 }
0x1462   : > { %v3366_v32 = vmul.f32 1.442695, %v3353_v51  ;;  %6315 = vpow2.f32 %v3370_v30  ;;  %v3551_v62 = vsel %vm808_vm1, %v3531_v3, 0 }
0x1463   : > { %v3533_v11 = vpop.permute.xlu0 %3532 }
0x1464   : > { %6317 = vpow2.f32 %v3366_v32  ;;  %5876 = vmatprep.subr.msk.bf16.mxu0 %vm808_vm1, %v3533_v11  ;;  %v3554_v22 = vsel %vm808_vm1, %v3533_v11, 0  ;;  %v5230_v11 = vunpack.c.h.bf16 %v5279_v57  ;;  %v5281_v57 = vld [vmem:[%s8406_s1 + $0xd8] sm:$0xff]  }
0x1465   : > { %6319 = vpow2.f32 %v3368_v29  ;;  %5743 = vmatpush3.bf16.xpose.msra.mxu0 %v3554_v22  ;;  %v3525_v55 = vpop.permute.xlu1 %3524  ;;  %v5226_v22 = vunpack.c.h.bf16 %v5278_v4 }
0x1466   : > { %5877 = vmatprep.subr.msk.bf16.mxu0 %vm808_vm1, %v3531_v3 }
0x1467   : > { %v3523_v43 = vpop.permute.xlu0 %3522 }
0x1469   : > { %v3529_v63 = vpop.permute.xlu1 %3528 }
0x146b   : > { %v3527_v9 = vpop.permute.xlu0 %3526  ;;  %v7919_v31 = vpop.eup %6313 }
0x146d   : > { %5745 = vmatpush3.bf16.xpose.msra.mxu0 %v3551_v62  ;;  %v3708_v5 = vpop.permute.xlu1 %3707 }
0x146f   : > { %v3710_v6 = vpop.permute.xlu0 %3709  ;;  %v7921_v26 = vpop.eup %6315 }
0x1470   : > { %5754 = vmatprep.subr.bf16.mxu1 %v3710_v6 }
0x1471   : > { %v7923_v48 = vpop.eup %6317  ;;  %5755 = vmatpush3.bf16.msra.mxu1 %v3710_v6 }
0x1472   : > { %v7925_v8 = vpop.eup %6319  ;;  %5756 = vmatprep.subr.bf16.mxu1 %v3708_v5  ;;  %v3398_v54 = vpack.c.bf16 %v7923_v48, %v7919_v31 }
0x1473   : > { %v3399_v23 = vpack.c.bf16 %v7921_v26, %v7925_v8 }
0x1474   : > { %5734 = vmatprep.mubr.msk.bf16.mxu0 %vm898_vm2, %v3398_v54 }
0x1475   : > { %5735 = vmatmul.mubr.msk.bf16.gmra.mxu0 %vm898_vm2, %v3399_v23  ;;  %5757 = vmatpush3.bf16.msra.mxu1 %v3708_v5  ;;  %v5280_v23 = vld [vmem:[%s8406_s1 + $0xd0] sm:$0xff]  }
0x1476   : > { %5746 = vmatprep.mubr.msk.bf16.mxu0 %vm808_vm1, %v3523_v43 }
0x147d   : > { %5747 = vmatmul.mubr.msk.bf16.vlgmr.msra.gmra.mxu0 %vm808_vm1, %v3525_v55 }
0x147e   : > { %5750 = vmatprep.mubr.msk.bf16.mxu0 %vm808_vm1, %v3527_v9 }
0x1485   : > { %5751 = vmatmul.mubr.msk.bf16.gmra.mxu0 %vm808_vm1, %v3529_v63 }
0x14fb   : > { %v7937_v15 = vpop.f32.mrf.mxu0 }
0x14fd   : > { %v7939_v52 = vpop.f32.mrf.mxu0 }
0x14ff   : > { %v7941_v34 = vpop.f32.mrf.mxu0 }
0x1501   : > { %v7943_v17 = vpop.f32.mrf.mxu0 }
0x1535   : > { %v7945_v18 = vpop.f32.mrf.mxu0 }
0x1537   : > { %v7947_v36 = vpop.f32.mrf.mxu0 }
0x1539   : > { %v7952_v41 = vpop.f32.mrf.mxu0 }
0x153b   : > { %v7957_v47 = vpop.f32.mrf.mxu0 }
0x153d   : > { %v5748_v30 = vpop.f32.mrf.mxu0 }
0x153e   : > { %v3605_v51 = vadd.f32 %v5748_v30, %v5229_v14  ;;  %v5233_v14 = vunpack.c.l.bf16 %v5280_v23 }
0x153f   : > { %v3596_v29 = vpop.f32.mrf.mxu0 }
0x1540   : > { %v3597_v3 = vadd.f32 %v5225_v24, %v3596_v29  ;;  %v3633_v32 = vsel %vm898_vm2, %v3605_v51, -inf  ;;  %v5237_v24 = vunpack.c.l.bf16 %v5281_v57 }
0x1541   : > { %3634 = vmax.xlane.f32.xlu0 %v3633_v32  ;;  %v5749_v55 = vpop.f32.mrf.mxu0  ;;  %v5238_v32 = vunpack.c.h.bf16 %v5281_v57 }
0x1542   : > { %v3608_v63 = vadd.f32 %v5749_v55, %v5230_v11  ;;  %v3627_v62 = vsel %vm898_vm2, %v3597_v3, -inf }
0x1543   : > { %v3599_v43 = vpop.f32.mrf.mxu0 }
0x1544   : > { %v3600_v9 = vadd.f32 %v5226_v22, %v3599_v43  ;;  %v3636_v5 = vsel %vm898_vm2, %v3608_v63, -inf  ;;  %v5234_v22 = vunpack.c.h.bf16 %v5280_v23 }
0x1545   : > { %3628 = vmax.xlane.f32.xlu0 %v3627_v62  ;;  %v5752_v54 = vpop.f32.mrf.mxu0 }
0x1546   : > { %v3630_v6 = vsel %vm898_vm2, %v3600_v9, -inf  ;;  %v7975_v11 = vadd.f32 %v5752_v54, %v5237_v24 }
0x1547   : > { %3631 = vmax.xlane.f32.xlu1 %v3630_v6  ;;  %v3612_v4 = vpop.f32.mrf.mxu0 }
0x1548   : > { %v7973_v29 = vadd.f32 %v5233_v14, %v3612_v4 }
0x1549   : > { %3637 = vmax.xlane.f32.xlu0 %v3636_v5  ;;  %v5753_v30 = vpop.f32.mrf.mxu0  ;;  %v3645_v5 = vsel %vm898_vm2, %v7975_v11, -inf }
0x154a   : > { %v3624_v43 = vadd.f32 %v5753_v30, %v5238_v32  ;;  %v3639_v62 = vsel %vm898_vm2, %v7973_v29, -inf }
0x154b   : > { %v3615_v55 = vpop.f32.mrf.mxu0 }
0x154c   : > { %v7979_v6 = vadd.f32 %v5234_v22, %v3615_v55  ;;  %v3648_v49 = vsel %vm898_vm2, %v3624_v43, -inf }
0x154e   : > { %v3642_v54 = vsel %vm898_vm2, %v7979_v6, -inf }
0x1558   : > { %3837 = vrot.lane.b32.xlu1 %v7687_v20, %s8476_s26 }
0x155f   : > { %3705 = vrot.lane.b32.xlu0 %v7693_v45, %s8475_s17 }
0x157c   : > { %3640 = vmax.xlane.f32.xlu1 %v3639_v62 }
0x157e   : > { %3646 = vmax.xlane.f32.xlu0 %v3645_v5 }
0x1580   : > { %3649 = vmax.xlane.f32.xlu1 %v3648_v49  ;;  %v3704_v49 = vpop.permute.xlu1 %3703 }
0x1582   : > { %3643 = vmax.xlane.f32.xlu0 %v3642_v54 }
0x1584   : > { %v3840_v57 = vpop.permute.xlu1 %3839 }
0x1591   : > { %3833 = vrot.lane.b32.xlu1 %v7681_v37, %s8476_s26 }
0x1595   : > { %3827 = vrot.lane.b32.xlu1 %v7693_v45, %s8477_s30 }
0x1598   : > { %3835 = vrot.lane.b32.xlu0 %v7693_v45, %s8476_s26 }
0x1599   : > { %3831 = vrot.lane.b32.xlu1 %v7685_v25, %s8477_s30 }
0x159c   : > { %3825 = vrot.lane.b32.xlu0 %v7681_v37, %s8477_s30 }
0x15a0   : > { %3829 = vrot.lane.b32.xlu0 %v7687_v20, %s8477_s30 }
0x15ca   : > { %v3635_v23 = vpop.xlane.xlu0 %3634 }
0x15cb   : > { %v3653_v4 = vsub.f32 %v3605_v51, %v3635_v23 }
0x15cd   : > { %v3663_v55 = vmul.f32 1.442695, %v3653_v4 }
0x15ce   : > { %v3629_v14 = vpop.xlane.xlu0 %3628 }
0x15cf   : > { %v3651_v24 = vsub.f32 %v3597_v3, %v3629_v14 }
0x15d0   : > { %v3632_v30 = vpop.xlane.xlu1 %3631 }
0x15d1   : > { %v3659_v32 = vmul.f32 1.442695, %v3651_v24  ;;  %v3652_v22 = vsub.f32 %v3600_v9, %v3632_v30 }
0x15d2   : > { %v3638_v62 = vpop.xlane.xlu0 %3637 }
0x15d3   : > { %v3661_v5 = vmul.f32 1.442695, %v3652_v22  ;;  %v3654_v54 = vsub.f32 %v3608_v63, %v3638_v62  ;;  %6321 = vpow2.f32 %v3659_v32 }
0x15d5   : > { %6323 = vpow2.f32 %v3661_v5  ;;  %v3665_v7 = vmul.f32 1.442695, %v3654_v54 }
0x15d6   : > { %6325 = vpow2.f32 %v3663_v55  ;;  %v3706_v50 = vpop.permute.xlu0 %3705 }
0x15d7   : > { %6327 = vpow2.f32 %v3665_v7  ;;  %5758 = vmatprep.subr.bf16.mxu1 %v3706_v50 }
0x15d8   : > { %5759 = vmatpush3.bf16.msra.mxu1 %v3706_v50  ;;  %v3863_v50 = vsel %vm808_vm1, %v3840_v57, 0 }
0x15d9   : > { %5760 = vmatprep.subr.bf16.mxu1 %v3704_v49 }
0x15dc   : > { %5761 = vmatpush3.bf16.msra.mxu1 %v3704_v49  ;;  %v3838_v49 = vpop.permute.xlu1 %3837 }
0x15dd   : > { %5878 = vmatprep.subr.msk.bf16.mxu1 %vm808_vm1, %v3840_v57  ;;  %v3860_v4 = vsel %vm808_vm1, %v3838_v49, 0 }
0x15e0   : > { %v7999_v51 = vpop.eup %6321 }
0x15e2   : > { %v8001_v3 = vpop.eup %6323 }
0x15e3   : > { %v8003_v9 = vpop.eup %6325  ;;  %v3699_v63 = vpack.c.bf16 %v8001_v3, %v7999_v51 }
0x15e4   : > { %v8007_v23 = vpop.eup %6327 }
0x15e5   : > { %v3700_v7 = vpack.c.bf16 %v8007_v23, %v8003_v9  ;;  %5762 = vmatprep.mubr.msk.bf16.mxu1 %vm898_vm2, %v3699_v63 }
0x15e7   : > { %5763 = vmatmul.mubr.msk.bf16.vlgmr.msra.gmra.mxu1 %vm898_vm2, %v3700_v7 }
0x15e8   : > { %5771 = vmatpush3.bf16.xpose.msra.mxu1 %v3863_v50 }
0x15e9   : > { %5879 = vmatprep.subr.msk.bf16.mxu1 %vm808_vm1, %v3838_v49 }
0x15f0   : > { %5773 = vmatpush3.bf16.xpose.msra.mxu1 %v3860_v4 }
0x1605   : > { %v3641_v14 = vpop.xlane.xlu1 %3640 }
0x1606   : > { %v3655_v24 = vsub.f32 %v7973_v29, %v3641_v14 }
0x1607   : > { %v3647_v30 = vpop.xlane.xlu0 %3646 }
0x1608   : > { %v3657_v32 = vsub.f32 %v7975_v11, %v3647_v30  ;;  %v3667_v55 = vmul.f32 1.442695, %v3655_v24 }
0x1609   : > { %v3650_v22 = vpop.xlane.xlu1 %3649 }
0x160a   : > { %v3658_v62 = vsub.f32 %v3624_v43, %v3650_v22  ;;  %v3671_v63 = vmul.f32 1.442695, %v3657_v32  ;;  %6329 = vpow2.f32 %v3667_v55 }
0x160b   : > { %v3644_v5 = vpop.xlane.xlu0 %3643 }
0x160c   : > { %v3673_v57 = vmul.f32 1.442695, %v3658_v62  ;;  %v3656_v54 = vsub.f32 %v7979_v6, %v3644_v5 }
0x160d   : > { %v3834_v29 = vpop.permute.xlu1 %3833 }
0x160e   : > { %v3669_v7 = vmul.f32 1.442695, %v3656_v54  ;;  %6331 = vpow2.f32 %v3673_v57  ;;  %v3854_v11 = vsel %vm808_vm1, %v3834_v29, 0 }
0x160f   : > { %v3836_v50 = vpop.permute.xlu0 %3835 }
0x1610   : > { %6333 = vpow2.f32 %v3669_v7  ;;  %v3857_v49 = vsel %vm808_vm1, %v3836_v50, 0  ;;  %5880 = vmatprep.subr.msk.bf16.mxu1 %vm808_vm1, %v3836_v50 }
0x1611   : > { %6335 = vpow2.f32 %v3671_v63  ;;  %5775 = vmatpush3.bf16.xpose.msra.mxu1 %v3857_v49  ;;  %v3828_v22 = vpop.permute.xlu1 %3827  ;;  %v5283_v49 = vld [vmem:[%s8406_s1 + $0xe8] sm:$0xff]  }
0x1612   : > { %5881 = vmatprep.subr.msk.bf16.mxu1 %vm808_vm1, %v3834_v29  ;;  %v5246_v39 = vunpack.c.h.bf16 %v5283_v49 }
0x1613   : > { %v3826_v32 = vpop.permute.xlu0 %3825 }
0x1615   : > { %v3832_v62 = vpop.permute.xlu1 %3831 }
0x1617   : > { %v8023_v43 = vpop.eup %6329  ;;  %v3830_v55 = vpop.permute.xlu0 %3829 }
0x1619   : > { %5777 = vmatpush3.bf16.xpose.msra.mxu1 %v3854_v11  ;;  %v5282_v11 = vld [vmem:[%s8406_s1 + $0xe0] sm:$0xff]  }
0x161a   : > { %v5242_v40 = vunpack.c.h.bf16 %v5282_v11 }
0x161b   : > { %v8025_v6 = vpop.eup %6331 }
0x161d   : > { %v8027_v4 = vpop.eup %6333 }
0x161e   : > { %v8029_v14 = vpop.eup %6335  ;;  %v3701_v24 = vpack.c.bf16 %v8027_v4, %v8023_v43 }
0x161f   : > { %v3702_v30 = vpack.c.bf16 %v8025_v6, %v8029_v14 }
0x1620   : > { %5766 = vmatprep.mubr.msk.bf16.mxu1 %vm898_vm2, %v3701_v24  ;;  %v5245_v24 = vunpack.c.l.bf16 %v5283_v49 }
0x1621   : > { %5767 = vmatmul.mubr.msk.bf16.gmra.mxu1 %vm898_vm2, %v3702_v30 }
0x1622   : > { %5778 = vmatprep.mubr.msk.bf16.mxu1 %vm808_vm1, %v3826_v32  ;;  %v5241_v32 = vunpack.c.l.bf16 %v5282_v11 }
0x1629   : > { %5779 = vmatmul.mubr.msk.bf16.vlgmr.msra.gmra.mxu1 %vm808_vm1, %v3828_v22 }
0x162a   : > { %5782 = vmatprep.mubr.msk.bf16.mxu1 %vm808_vm1, %v3830_v55 }
0x1631   : > { %5783 = vmatmul.mubr.msk.bf16.gmra.mxu1 %vm808_vm1, %v3832_v62 }
0x16a7   : > { %v8041_v5 = vpop.f32.mrf.mxu1 }
0x16a9   : > { %v8043_v57 = vpop.f32.mrf.mxu1 }
0x16ab   : > { %v8045_v54 = vpop.f32.mrf.mxu1 }
0x16ad   : > { %v8047_v63 = vpop.f32.mrf.mxu1 }
0x16e1   : > { %v8049_v7 = vpop.f32.mrf.mxu1 }
0x16e3   : > { %v8051_v50 = vpop.f32.mrf.mxu1 }
0x16e5   : > { %v8056_v29 = vpop.f32.mrf.mxu1 }
0x16e7   : > { %v8061_v30 = vpop.f32.mrf.mxu1 }
0x16e9   : > { %v5780_v22 = vpop.f32.mrf.mxu1 }
0x16ea   : > { %v8063_v55 = vadd.f32 %v5780_v22, %v5245_v24 }
0x16eb   : > { %v3899_v62 = vpop.f32.mrf.mxu1 }
0x16ec   : > { %v8065_v56 = vadd.f32 %v5241_v32, %v3899_v62  ;;  %v3936_v0 = vsel %vm898_vm2, %v8063_v55, -inf  ;;  %v5253_v32 = vunpack.c.l.bf16 %v5285_v27 }
0x16ed   : > { %3937 = vmax.xlane.f32.xlu0 %v3936_v0  ;;  %v5781_v59 = vpop.f32.mrf.mxu1  ;;  %v5284_v0 = vld [vmem:[%s8406_s1 + $0xf0] sm:$0xff]  }
0x16ee   : > { %v8072_v60 = vadd.f32 %v5781_v59, %v5246_v39  ;;  %v3930_v24 = vsel %vm898_vm2, %v8065_v56, -inf  ;;  %v5249_v59 = vunpack.c.l.bf16 %v5284_v0 }
0x16ef   : > { %v3902_v21 = vpop.f32.mrf.mxu1 }
0x16f0   : > { %v8074_v44 = vadd.f32 %v5242_v40, %v3902_v21  ;;  %v3939_v40 = vsel %vm898_vm2, %v8072_v60, -inf }
0x16f1   : > { %3931 = vmax.xlane.f32.xlu0 %v3930_v24  ;;  %v5784_v22 = vpop.f32.mrf.mxu1 }
0x16f2   : > { %v3933_v49 = vsel %vm898_vm2, %v8074_v44, -inf  ;;  %v8083_v11 = vadd.f32 %v5784_v22, %v5253_v32  ;;  %v5254_v32 = vunpack.c.h.bf16 %v5285_v27  ;;  %v3381_v27 = vsel %vm898_vm2, %v7902_v46, 0.0 }
0x16f3   : > { %3934 = vmax.xlane.f32.xlu1 %v3933_v49  ;;  %v3915_v39 = vpop.f32.mrf.mxu1  ;;  %v3687_v46 = vsel %vm898_vm2, %v8023_v43, 0.0 }
0x16f4   : > { %v8087_v21 = vadd.f32 %v5249_v59, %v3915_v39  ;;  %v3948_v62 = vsel %vm898_vm2, %v8083_v11, -inf  ;;  %v5250_v59 = vunpack.c.h.bf16 %v5284_v0  ;;  %v3675_v0 = vsel %vm898_vm2, %v7999_v51, 0.0 }
0x16f5   : > { %3940 = vmax.xlane.f32.xlu0 %v3939_v40  ;;  %v5785_v22 = vpop.f32.mrf.mxu1  ;;  %v3375_v51 = vsel %vm898_vm2, %v7896_v12, 0.0 }
0x16f6   : > { %v3942_v24 = vsel %vm898_vm2, %v8087_v21, -inf  ;;  %v8099_v49 = vadd.f32 %v5785_v22, %v5254_v32  ;;  %v3690_v32 = vsel %vm898_vm2, %v8027_v4, 0.0 }
0x16f7   : > { %v3918_v40 = vpop.f32.mrf.mxu1 }
0x16f8   : > { %v8101_v39 = vadd.f32 %v5250_v59, %v3918_v40 }
0x16f9   : > { %3949 = vmax.xlane.f32.xlu0 %v3948_v62  ;;  %v3951_v62 = vsel %vm898_vm2, %v8099_v49, -inf }
0x16fd   : > { %3943 = vmax.xlane.f32.xlu0 %v3942_v24  ;;  %v3681_v24 = vsel %vm898_vm2, %v8003_v9, 0.0  ;;  %v3393_v9 = vsel %vm898_vm2, %v7921_v26, 0.0 }
0x1704   : > { %4010 = vrot.lane.b32.xlu1 %v7687_v20, %s8478_s22  ;;  %v3945_v20 = vsel %vm898_vm2, %v8101_v39, -inf }
0x1708   : > { %4008 = vrot.lane.b32.xlu1 %v7693_v45, %s8478_s22  ;;  %v3372_v45 = vsel %vm898_vm2, %v7894_v10, 0.0  ;;  %v3384_v10 = vsel %vm898_vm2, %v7919_v31, 0.0  ;;  %v3684_v31 = vsel %vm898_vm2, %v8007_v23, 0.0 }
0x1713   : > { %4012 = vrot.lane.b32.xlu0 %v7685_v25, %s8478_s22  ;;  %v3378_v25 = vsel %vm898_vm2, %v7898_v1, 0.0  ;;  %v3390_v1 = vsel %vm898_vm2, %v7925_v8, 0.0  ;;  %v3387_v8 = vsel %vm898_vm2, %v7923_v48, 0.0 }
0x172c   : > { %3952 = vmax.xlane.f32.xlu1 %v3951_v62 }
0x1730   : > { %3946 = vmax.xlane.f32.xlu1 %v3945_v20 }
0x1732   : > { %3373 = vadd.xlane.f32.xlu0 %v3372_v45 }
0x1736   : > { %3379 = vadd.xlane.f32.xlu0 %v3378_v25 }
0x173a   : > { %3382 = vadd.xlane.f32.xlu0 %v3381_v27 }
0x173e   : > { %3676 = vadd.xlane.f32.xlu0 %v3675_v0 }
0x1741   : > { %4006 = vrot.lane.b32.xlu1 %v7681_v37, %s8478_s22  ;;  %v3678_v37 = vsel %vm898_vm2, %v8001_v3, 0.0  ;;  %s8494_s22 = sshll.u32 %s8496_s16, 6 }
0x1742   : > { %3682 = vadd.xlane.f32.xlu0 %v3681_v24  ;;  %s526_s28 = scalar_lea.vmem %s8419_s14, %s8494_s22 }
0x1746   : > { %3385 = vadd.xlane.f32.xlu0 %v3384_v10 }
0x174a   : > { %3391 = vadd.xlane.f32.xlu0 %v3390_v1 }
0x174e   : > { %3688 = vadd.xlane.f32.xlu0 %v3687_v46 }
0x1765   : > { %3376 = vadd.xlane.f32.xlu1 %v3375_v51 }
0x1769   : > { %3679 = vadd.xlane.f32.xlu1 %v3678_v37 }
0x176d   : > { %3685 = vadd.xlane.f32.xlu1 %v3684_v31 }
0x1771   : > { %3388 = vadd.xlane.f32.xlu1 %v3387_v8  ;;  %v3693_v8 = vsel %vm898_vm2, %v8029_v14, 0.0  ;;  %v3069_v14 = vsel %vm898_vm2, %v7778_v16, 0.0 }
0x1775   : > { %3394 = vadd.xlane.f32.xlu1 %v3393_v9 }
0x1776   : > { %v3938_v43 = vpop.xlane.xlu0 %3937 }
0x1777   : > { %v3956_v12 = vsub.f32 %v8063_v55, %v3938_v43 }
0x1779   : > { %v3966_v3 = vmul.f32 1.442695, %v3956_v12  ;;  %3691 = vadd.xlane.f32.xlu1 %v3690_v32  ;;  %v3696_v32 = vsel %vm898_vm2, %v8025_v6, 0.0  ;;  %v3087_v6 = vsel %vm898_vm2, %v7809_v58, 0.0 }
0x177a   : > { %v3932_v22 = vpop.xlane.xlu0 %3931 }
0x177b   : > { %6337 = vpow2.f32 %v3966_v3  ;;  %v3954_v23 = vsub.f32 %v8065_v56, %v3932_v22 }
0x177c   : > { %v3935_v59 = vpop.xlane.xlu1 %3934 }
0x177d   : > { %v3962_v40 = vmul.f32 1.442695, %v3954_v23  ;;  %v3955_v48 = vsub.f32 %v8074_v44, %v3935_v59  ;;  %v3075_v23 = vsel %vm898_vm2, %v7782_v13, 0.0  ;;  %v3081_v59 = vsel %vm898_vm2, %v7803_v2, 0.0 }
0x177e   : > { %v3941_v62 = vpop.xlane.xlu0 %3940 }
0x177f   : > { %6339 = vpow2.f32 %v3962_v40  ;;  %v3964_v26 = vmul.f32 1.442695, %v3955_v48  ;;  %v3957_v20 = vsub.f32 %v8072_v60, %v3941_v62 }
0x1780   : > { %v4011_v44 = vpop.permute.xlu1 %4010 }
0x1781   : > { %6341 = vpow2.f32 %v3964_v26  ;;  %v3968_v55 = vmul.f32 1.442695, %v3957_v20 }
0x1782   : > { %v3950_v45 = vpop.xlane.xlu0 %3949 }
0x1783   : > { %6343 = vpow2.f32 %v3968_v55  ;;  %v3960_v4 = vsub.f32 %v8083_v11, %v3950_v45 }
0x1784   : > { %v4009_v37 = vpop.permute.xlu1 %4008 }
0x1785   : > { %v3974_v56 = vmul.f32 1.442695, %v3960_v4 }
0x1786   : > { %v3944_v25 = vpop.xlane.xlu0 %3943 }
0x1787   : > { %v3958_v27 = vsub.f32 %v8087_v21, %v3944_v25 }
0x1788   : > { %v6338_v0 = vpop.eup %6337 }
0x1789   : > { %v3970_v24 = vmul.f32 1.442695, %v3958_v27  ;;  %v3984_v10 = vsel %vm898_vm2, %v6338_v0, 0.0 }
0x178a   : > { %3985 = vadd.xlane.f32.xlu0 %v3984_v10  ;;  %v4013_v1 = vpop.permute.xlu0 %4012  ;;  %v3084_v10 = vsel %vm898_vm2, %v7807_v42, 0.0 }
0x178b   : > { %6345 = vpow2.f32 %v3970_v24  ;;  %5786 = vmatprep.subr.bf16.mxu0 %v4013_v1 }
0x178c   : > { %v6340_v60 = vpop.eup %6339  ;;  %5787 = vmatpush3.bf16.msra.mxu0 %v4013_v1  ;;  %6347 = vpow2.f32 %v3974_v56  ;;  %v3078_v56 = vsel %vm898_vm2, %v7786_v38, 0.0 }
0x178d   : > { %5788 = vmatprep.subr.bf16.mxu0 %v4011_v44  ;;  %v3978_v46 = vsel %vm898_vm2, %v6340_v60, 0.0 }
0x178e   : > { %v6342_v11 = vpop.eup %6341  ;;  %3979 = vadd.xlane.f32.xlu0 %v3978_v46 }
0x178f   : > { %v4002_v51 = vpack.c.bf16 %v6342_v11, %v6340_v60  ;;  %v3981_v9 = vsel %vm898_vm2, %v6342_v11, 0.0 }
0x1790   : > { %v6344_v21 = vpop.eup %6343  ;;  %5789 = vmatpush3.bf16.msra.mxu0 %v4011_v44  ;;  %v3090_v44 = vsel %vm898_vm2, %v7805_v61, 0.0 }
0x1791   : > { %5790 = vmatprep.subr.bf16.mxu0 %v4009_v37  ;;  %5794 = vmatprep.mubr.msk.bf16.mxu0 %vm898_vm2, %v4002_v51  ;;  %v3987_v31 = vsel %vm898_vm2, %v6344_v21, 0.0  ;;  %v4003_v13 = vpack.c.bf16 %v6344_v21, %v6338_v0  ;;  %v3072_v0 = vsel %vm898_vm2, %v7780_v35, 0.0 }
0x1792   : > { %3988 = vadd.xlane.f32.xlu1 %v3987_v31  ;;  %3694 = vadd.xlane.f32.xlu0 %v3693_v8 }
0x1794   : > { %5791 = vmatpush3.bf16.msra.mxu0 %v4009_v37 }
0x1796   : > { %3982 = vadd.xlane.f32.xlu1 %v3981_v9 }
0x1798   : > { %v6346_v43 = vpop.eup %6345 }
0x1799   : > { %v3990_v12 = vsel %vm898_vm2, %v6346_v43, 0.0  ;;  %v6348_v3 = vpop.eup %6347 }
0x179a   : > { %3991 = vadd.xlane.f32.xlu0 %v3990_v12  ;;  %3697 = vadd.xlane.f32.xlu1 %v3696_v32  ;;  %v3996_v22 = vsel %vm898_vm2, %v6348_v3, 0.0 }
0x179e   : > { %3997 = vadd.xlane.f32.xlu0 %v3996_v22 }
0x17a2   : > { %3070 = vadd.xlane.f32.xlu0 %v3069_v14 }
0x17a6   : > { %3076 = vadd.xlane.f32.xlu0 %v3075_v23 }
0x17aa   : > { %3082 = vadd.xlane.f32.xlu0 %v3081_v59 }
0x17ae   : > { %3088 = vadd.xlane.f32.xlu0 %v3087_v6 }
0x17b5   : > { %v3953_v40 = vpop.xlane.xlu1 %3952 }
0x17b6   : > { %v3961_v48 = vsub.f32 %v8099_v49, %v3953_v40 }
0x17b8   : > { %v3976_v62 = vmul.f32 1.442695, %v3961_v48 }
0x17b9   : > { %v3947_v26 = vpop.xlane.xlu1 %3946 }
0x17ba   : > { %v3959_v16 = vsub.f32 %v8101_v39, %v3947_v26  ;;  %6349 = vpow2.f32 %v3976_v62 }
0x17bb   : > { %v3374_v25 = vpop.xlane.xlu0 %3373 }
0x17bc   : > { %v3972_v20 = vmul.f32 1.442695, %v3959_v16 }
0x17bd   : > { %v4007_v55 = vpop.permute.xlu1 %4006 }
0x17be   : > { %6351 = vpow2.f32 %v3972_v20  ;;  %5792 = vmatprep.subr.bf16.mxu0 %v4007_v55 }
0x17bf   : > { %5793 = vmatpush3.bf16.msra.mxu0 %v4007_v55  ;;  %v3380_v27 = vpop.xlane.xlu0 %3379 }
0x17c2   : > { %5795 = vmatmul.mubr.msk.bf16.vlgmr.msra.gmra.mxu0 %vm898_vm2, %v4003_v13 }
0x17c3   : > { %v3383_v24 = vpop.xlane.xlu0 %3382 }
0x17c4   : > { %6353 = vrcp.f32 %v3383_v24 }
0x17c5   : > { %6355 = vrcp.f32 %v3380_v27  ;;  %v6086_v27 = vld [vmem:[%s8411_s6 + $0x10] sm:$0xff]  }
0x17c6   : > { %6357 = vrcp.f32 %v3374_v25 }
0x17c7   : > { %v6350_v2 = vpop.eup %6349  ;;  %v3677_v1 = vpop.xlane.xlu0 %3676 }
0x17c8   : > { %v4005_v49 = vpack.c.bf16 %v6350_v2, %v6348_v3  ;;  %v3999_v39 = vsel %vm898_vm2, %v6350_v2, 0.0 }
0x17cb   : > { %v6352_v45 = vpop.eup %6351  ;;  %v3683_v11 = vpop.xlane.xlu0 %3682 }
0x17cc   : > { %v3993_v58 = vsel %vm898_vm2, %v6352_v45, 0.0  ;;  %v4004_v4 = vpack.c.bf16 %v6352_v45, %v6346_v43 }
0x17cd   : > { %3994 = vadd.xlane.f32.xlu1 %v3993_v58 }
0x17ce   : > { %5798 = vmatprep.mubr.msk.bf16.mxu0 %vm898_vm2, %v4004_v4 }
0x17cf   : > { %5799 = vmatmul.mubr.msk.bf16.gmra.mxu0 %vm898_vm2, %v4005_v49  ;;  %v3386_v37 = vpop.xlane.xlu0 %3385 }
0x17d1   : > { %4000 = vadd.xlane.f32.xlu1 %v3999_v39  ;;  %v6354_v60 = vpop.eup %6353 }
0x17d2   : > { %v6356_v46 = vpop.eup %6355  ;;  %v3500_v35 = vmul.f32 %v6354_v60, %v7941_v34 }
0x17d3   : > { %v3499_v51 = vmul.f32 %v6356_v46, %v7937_v15  ;;  %v6358_v31 = vpop.eup %6357  ;;  %v3392_v8 = vpop.xlane.xlu0 %3391 }
0x17d4   : > { %v3497_v15 = vmul.f32 %v6358_v31, %v7939_v52 }
0x17d5   : > { %3073 = vadd.xlane.f32.xlu1 %v3072_v0  ;;  %v6014_v21 = vpack.i.bf16 %v3500_v35, %v3499_v51 }
0x17d9   : > { %3079 = vadd.xlane.f32.xlu1 %v3078_v56 }
0x17dd   : > { %3085 = vadd.xlane.f32.xlu1 %v3084_v10 }
0x17e1   : > { %3091 = vadd.xlane.f32.xlu1 %v3090_v44 }
0x17ee   : > { %v3377_v38 = vpop.xlane.xlu1 %3376 }
0x17ef   : > { %6359 = vrcp.f32 %v3377_v38 }
0x17f0   : > { %6361 = vrcp.f32 %v3677_v1 }
0x17f2   : > { %6015 = vrot.lane.b32.xlu1 %v6014_v21, %s8479_s18  ;;  %v3680_v42 = vpop.xlane.xlu1 %3679 }
0x17f3   : > { %6363 = vrcp.f32 %v3680_v42 }
0x17f4   : > { %6365 = vrcp.f32 %v3683_v11 }
0x17f6   : > { %v3686_v61 = vpop.xlane.xlu1 %3685 }
0x17f7   : > { %6367 = vrcp.f32 %v3686_v61 }
0x17f8   : > { %6369 = vrcp.f32 %v3386_v37 }
0x17fa   : > { %v3389_v34 = vpop.xlane.xlu1 %3388 }
0x17fb   : > { %6371 = vrcp.f32 %v3389_v34 }
0x17fc   : > { %v6360_v9 = vpop.eup %6359  ;;  %6373 = vrcp.f32 %v3392_v8 }
0x17fd   : > { %v3498_v43 = vmul.f32 %v6360_v9, %v7943_v17  ;;  %v6362_v12 = vpop.eup %6361 }
0x17fe   : > { %v3395_v32 = vpop.xlane.xlu1 %3394  ;;  %v3800_v14 = vmul.f32 %v6362_v12, %v8043_v57 }
0x17ff   : > { %6375 = vrcp.f32 %v3395_v32  ;;  %v6009_v3 = vpack.i.bf16 %v3498_v43, %v3497_v15 }
0x1800   : > { %v6364_v22 = vpop.eup %6363 }
0x1801   : > { %6010 = vrot.lane.b32.xlu0 %v6009_v3, %s8479_s18  ;;  %v3801_v23 = vmul.f32 %v6364_v22, %v8047_v63  ;;  %v6366_v59 = vpop.eup %6365 }
0x1802   : > { %v3802_v52 = vmul.f32 %v6366_v59, %v8041_v5 }
0x1803   : > { %v6019_v6 = vpack.i.bf16 %v3801_v23, %v3800_v14 }
0x1804   : > { %v6368_v40 = vpop.eup %6367 }
0x1805   : > { %6020 = vrot.lane.b32.xlu1 %v6019_v6, %s8480_s15  ;;  %v3803_v17 = vmul.f32 %v6368_v40, %v8045_v54  ;;  %v6370_v48 = vpop.eup %6369  ;;  %v6085_v54 = vld [vmem:[%s8411_s6 + $0x18] sm:$0xff]  }
0x1806   : > { %v3501_v16 = vmul.f32 %v6370_v48, %v7947_v36  ;;  %5802 = vmatprep.subr.bf16.mxu0 %v6085_v54  ;;  %v3692_v36 = vpop.xlane.xlu1 %3691 }
0x1807   : > { %v6024_v62 = vpack.i.bf16 %v3803_v17, %v3802_v52  ;;  %5803 = vmatpush3.bf16.msra.mxu0 %v6085_v54  ;;  %6377 = vrcp.f32 %v3692_v36 }
0x1808   : > { %v6372_v26 = vpop.eup %6371  ;;  %5804 = vmatprep.subr.bf16.mxu0 %v6086_v27 }
0x1809   : > { %6025 = vrot.lane.b32.xlu1 %v6024_v62, %s8480_s15  ;;  %v3502_v57 = vmul.f32 %v6372_v26, %v7957_v47  ;;  %v6374_v20 = vpop.eup %6373  ;;  %v3689_v47 = vpop.xlane.xlu0 %3688 }
0x180a   : > { %v3503_v13 = vmul.f32 %v6374_v20, %v7945_v18 }
0x180b   : > { %v6029_v63 = vpack.i.bf16 %v3502_v57, %v3501_v16  ;;  %5805 = vmatpush3.bf16.msra.mxu0 %v6086_v27 }
0x180c   : > { %v6376_v55 = vpop.eup %6375 }
0x180d   : > { %6030 = vrot.lane.b32.xlu0 %v6029_v63, %s8479_s18  ;;  %v3504_v5 = vmul.f32 %v6376_v55, %v7952_v41 }
0x180f   : > { %v6034_v2 = vpack.i.bf16 %v3504_v5, %v3503_v13 }
0x1811   : > { %6035 = vrot.lane.b32.xlu1 %v6034_v2, %s8479_s18 }
0x1813   : > { %v3986_v58 = vpop.xlane.xlu0 %3985 }
0x1814   : > { %6379 = vrcp.f32 %v3986_v58  ;;  %v6378_v0 = vpop.eup %6377 }
0x1815   : > { %v3805_v12 = vmul.f32 %v6378_v0, %v8061_v30 }
0x1817   : > { %v3980_v25 = vpop.xlane.xlu0 %3979 }
0x1818   : > { %6381 = vrcp.f32 %v3980_v25 }
0x181b   : > { %v3989_v45 = vpop.xlane.xlu1 %3988  ;;  %v3695_v41 = vpop.xlane.xlu0 %3694 }
0x181c   : > { %6383 = vrcp.f32 %v3989_v45 }
0x181f   : > { %v3983_v4 = vpop.xlane.xlu1 %3982 }
0x1821   : > { %v6380_v10 = vpop.eup %6379 }
0x1823   : > { %v3698_v18 = vpop.xlane.xlu1 %3697  ;;  %v3992_v49 = vpop.xlane.xlu0 %3991 }
0x1824   : > { %6385 = vrcp.f32 %v3698_v18 }
0x1825   : > { %6387 = vrcp.f32 %v3695_v41  ;;  %v6382_v1 = vpop.eup %6381 }
0x1826   : > { %6389 = vrcp.f32 %v3983_v4 }
0x1827   : > { %6391 = vrcp.f32 %v3689_v47  ;;  %v3998_v56 = vpop.xlane.xlu0 %3997 }
0x1828   : > { %6393 = vrcp.f32 %v3998_v56 }
0x1829   : > { %v6384_v46 = vpop.eup %6383 }
0x182b   : > { %v3071_v63 = vpop.xlane.xlu0 %3070 }
0x182f   : > { %v3077_v13 = vpop.xlane.xlu0 %3076 }
0x1831   : > { %v6386_v35 = vpop.eup %6385 }
0x1832   : > { %v6388_v38 = vpop.eup %6387  ;;  %v3807_v34 = vmul.f32 %v6386_v35, %v8056_v29 }
0x1833   : > { %v6390_v42 = vpop.eup %6389  ;;  %v3806_v43 = vmul.f32 %v6388_v38, %v8049_v7  ;;  %v3083_v2 = vpop.xlane.xlu0 %3082 }
0x1834   : > { %v6392_v9 = vpop.eup %6391 }
0x1835   : > { %v6054_v32 = vpack.i.bf16 %v3807_v34, %v3806_v43  ;;  %v3804_v3 = vmul.f32 %v6392_v9, %v8051_v50  ;;  %v6394_v29 = vpop.eup %6393 }
0x1837   : > { %v6049_v14 = vpack.i.bf16 %v3805_v12, %v3804_v3  ;;  %v3089_v36 = vpop.xlane.xlu0 %3088 }
0x1856   : > { %v3995_v39 = vpop.xlane.xlu1 %3994 }
0x185a   : > { %v4001_v44 = vpop.xlane.xlu1 %4000 }
0x185b   : > { %6395 = vrcp.f32 %v4001_v44 }
0x185c   : > { %6397 = vrcp.f32 %v3992_v49 }
0x185d   : > { %6399 = vrcp.f32 %v3995_v39 }
0x185e   : > { %v3074_v50 = vpop.xlane.xlu1 %3073  ;;  %6401 = vrcp.f32 %v3071_v63 }
0x1862   : > { %v3080_v57 = vpop.xlane.xlu1 %3079 }
0x1863   : > { %6403 = vrcp.f32 %v3080_v57 }
0x1864   : > { %6405 = vrcp.f32 %v3077_v13 }
0x1865   : > { %6407 = vrcp.f32 %v3074_v50 }
0x1866   : > { %v3086_v20 = vpop.xlane.xlu1 %3085  ;;  %6409 = vrcp.f32 %v3083_v2 }
0x1867   : > { %6411 = vrcp.f32 %v3089_v36 }
0x1868   : > { %v6396_v59 = vpop.eup %6395  ;;  %6413 = vrcp.f32 %v3086_v20  ;;  %v8484_v20 = vld [vmem:[#allocation23_spill] sm:$0xff] }
0x1869   : > { %v6398_v40 = vpop.eup %6397 }
0x186a   : > { %v6400_v17 = vpop.eup %6399  ;;  %v3092_v55 = vpop.xlane.xlu1 %3091 }
0x186b   : > { %v6402_v45 = vpop.eup %6401  ;;  %6415 = vrcp.f32 %v3092_v55  ;;  %v8485_v55 = vld [vmem:[#allocation22_spill] sm:$0xff] }
0x186e   : > { %v6016_v5 = vpop.permute.xlu1 %6015 }
0x186f   : > { %v6017_v39 = vunpack.i.l.bf16 %v6016_v5 }
0x1870   : > { %v6404_v4 = vpop.eup %6403 }
0x1871   : > { %v6406_v25 = vpop.eup %6405  ;;  %v3197_v49 = vmul.f32 %v6404_v4, %v7825_v33 }
0x1872   : > { %v6408_v41 = vpop.eup %6407 }
0x1873   : > { %v6011_v58 = vpop.permute.xlu0 %6010 }
0x1874   : > { %v6013_v27 = vunpack.i.h.bf16 %v6011_v58  ;;  %v6012_v0 = vunpack.i.l.bf16 %v6011_v58 }
0x1877   : > { %v6021_v54 = vpop.permute.xlu1 %6020 }
0x1878   : > { %v6023_v35 = vunpack.i.h.bf16 %v6021_v54 }
0x187b   : > { %v6026_v47 = vpop.permute.xlu1 %6025 }
0x187c   : > { %v6028_v44 = vunpack.i.h.bf16 %v6026_v47 }
0x187f   : > { %v6031_v56 = vpop.permute.xlu0 %6030 }
0x1882   : > { %v5796_v24 = vpop.f32.mrf.mxu0 }
0x1883   : > { %v4105_v51 = vmul.f32 %v6380_v10, %v5796_v24  ;;  %v8211_v18 = vpop.permute.xlu1 %6035  ;;  %v3196_v24 = vmul.f32 %v6406_v25, %v7821_v53  ;;  %v3194_v10 = vmul.f32 %v6402_v45, %v7823_v28 }
0x1884   : > { %v4064_v60 = vpop.f32.mrf.mxu0 }
0x1885   : > { %v4103_v61 = vmul.f32 %v6382_v1, %v4064_v60  ;;  %v6027_v1 = vunpack.i.l.bf16 %v6026_v47  ;;  %v6018_v60 = vunpack.i.h.bf16 %v6016_v5 }
0x1886   : > { %v5797_v11 = vpop.f32.mrf.mxu0 }
0x1887   : > { %v4106_v21 = vmul.f32 %v6384_v46, %v5797_v11  ;;  %v3195_v46 = vmul.f32 %v6408_v41, %v7827_v19  ;;  %v6022_v11 = vunpack.i.l.bf16 %v6021_v54  ;;  %v4210_v33 = vsel %vm808_vm1, %v3197_v49, %v6018_v60 }
0x1888   : > { %v4067_v37 = vpop.f32.mrf.mxu0 }
0x1889   : > { %v6039_v31 = vpack.i.bf16 %v4106_v21, %v4105_v51  ;;  %v4104_v8 = vmul.f32 %v6390_v42, %v4067_v37  ;;  %v4209_v42 = vsel %vm808_vm1, %v3196_v24, %v6017_v39  ;;  %v4207_v37 = vsel %vm808_vm1, %v3194_v10, %v6012_v0 }
0x188a   : > { %v4208_v53 = vsel %vm808_vm1, %v3195_v46, %v6013_v27  ;;  %v4217_v28 = vsel %vm2093_vm3, %v4209_v42, %v6027_v1  ;;  %v4215_v9 = vsel %vm2093_vm3, %v4207_v37, %v6022_v11  ;;  %v5080_v11 = vld [vmem:[#allocation2 + $0x1] ss:$0 sm:$0xff]  ;;  %v8486_v42 = vld [vmem:[#allocation13_spill] sm:$0xff] }
0x188b   : > { %v6044_v15 = vpack.i.bf16 %v4104_v8, %v4103_v61  ;;  %6040 = vrot.lane.b32.xlu1 %v6039_v31, %s8481_s19  ;;  %v4218_v31 = vsel %vm2093_vm3, %v4210_v33, %v6028_v44  ;;  %v4216_v34 = vsel %vm2093_vm3, %v4208_v53, %v6023_v35 }
0x188d   : > { %6045 = vrot.lane.b32.xlu0 %v6044_v15, %s8481_s19 }
0x188f   : > { %v5800_v22 = vpop.f32.mrf.mxu0  ;;  %6055 = vrot.lane.b32.xlu1 %v6054_v32, %s8480_s15 }
0x1890   : > { %v4109_v52 = vmul.f32 %v6394_v29, %v5800_v22  ;;  %v6410_v22 = vpop.eup %6409 }
0x1891   : > { %v4080_v23 = vpop.f32.mrf.mxu0  ;;  %6050 = vrot.lane.b32.xlu0 %v6049_v14, %s8480_s15 }
0x1892   : > { %v4107_v48 = vmul.f32 %v6398_v40, %v4080_v23  ;;  %v6412_v23 = vpop.eup %6411 }
0x1893   : > { %v5801_v6 = vpop.f32.mrf.mxu0  ;;  %v6414_v29 = vpop.eup %6413 }
0x1894   : > { %v4110_v7 = vmul.f32 %v6396_v59, %v5801_v6  ;;  %v6416_v6 = vpop.eup %6415  ;;  %v3199_v63 = vmul.f32 %v6414_v29, %v8484_v20 }
0x1895   : > { %v4083_v30 = vpop.f32.mrf.mxu0  ;;  %v3201_v13 = vmul.f32 %v6416_v6, %v8485_v55  ;;  %v8490_v6 = vld [vmem:[#allocation16_spill] sm:$0xff] }
0x1896   : > { %v6064_v62 = vpack.i.bf16 %v4110_v7, %v4109_v52  ;;  %v4108_v26 = vmul.f32 %v6400_v17, %v4083_v30  ;;  %v6033_v52 = vunpack.i.h.bf16 %v6031_v56  ;;  %v6032_v7 = vunpack.i.l.bf16 %v6031_v56 }
0x1897   : > { %v6038_v17 = vunpack.i.h.bf16 %v8211_v18  ;;  %v6037_v30 = vunpack.i.l.bf16 %v8211_v18 }
0x1898   : > { %v6059_v16 = vpack.i.bf16 %v4108_v26, %v4107_v48  ;;  %6065 = vrot.lane.b32.xlu1 %v6064_v62, %s8481_s19  ;;  %v8482_v48 = vld [vmem:[#allocation21_spill] sm:$0xff]  ;;  %v8483_v26 = vld [vmem:[#allocation20_spill] sm:$0xff]  ;;  %v4212_v58 = vsel %vm808_vm1, %v3199_v63, %v6033_v52 }
0x1899   : > { %v3198_v62 = vmul.f32 %v6410_v22, %v8482_v48  ;;  %v4214_v4 = vsel %vm808_vm1, %v3201_v13, %v6038_v17 }
0x189a   : > { %6060 = vrot.lane.b32.xlu0 %v6059_v16, %s8481_s19  ;;  %v3200_v16 = vmul.f32 %v6412_v23, %v8483_v26  ;;  %v8492_v26 = vld [vmem:[#allocation18_spill] sm:$0xff] }
0x189b   : > { %v4211_v45 = vsel %vm808_vm1, %v3198_v62, %v6032_v7  ;;  %v8491_v7 = vld [vmem:[#allocation17_spill] sm:$0xff] }
0x189c   : > { %v4213_v25 = vsel %vm808_vm1, %v3200_v16, %v6037_v30 }
0x18fd   : > { %v6041_v38 = vpop.permute.xlu1 %6040 }
0x18fe   : > { %v6043_v51 = vunpack.i.h.bf16 %v6041_v38  ;;  %v6042_v21 = vunpack.i.l.bf16 %v6041_v38 }
0x18ff   : > { %v6046_v61 = vpop.permute.xlu0 %6045 }
0x1900   : > { %v6048_v8 = vunpack.i.h.bf16 %v6046_v61  ;;  %v6047_v19 = vunpack.i.l.bf16 %v6046_v61  ;;  %v4225_v15 = vsel %vm2102_vm4, %v4217_v28, %v6042_v21  ;;  %v4226_v43 = vsel %vm2102_vm4, %v4218_v31, %v6043_v51  ;;  %v8487_v61 = vld [vmem:[#allocation12_spill] sm:$0xff] }
0x1901   : > { %v4232_v14 = vpack.c.bf16 %v4226_v43, %v4225_v15  ;;  %v6056_v59 = vpop.permute.xlu1 %6055  ;;  %v8489_v15 = vld [vmem:[#allocation14_spill] sm:$0xff] }
0x1902   : > { %v4223_v12 = vsel %vm2102_vm4, %v4215_v9, %v6047_v19  ;;  %v4224_v32 = vsel %vm2102_vm4, %v4216_v34, %v6048_v8  ;;  %v6058_v50 = vunpack.i.h.bf16 %v6056_v59  ;;  %v6057_v57 = vunpack.i.l.bf16 %v6056_v59  ;;  %v8488_v34 = vld [vmem:[#allocation15_spill] sm:$0xff] }
0x1903   : > { %v4231_v3 = vpack.c.bf16 %v4224_v32, %v4223_v12  ;;  %v6051_v40 = vpop.permute.xlu0 %6050 }
0x1904   : > { %v6053_v5 = vunpack.i.h.bf16 %v6051_v40  ;;  %v6052_v2 = vunpack.i.l.bf16 %v6051_v40  ;;  %v4221_v41 = vsel %vm2093_vm3, %v4213_v25, %v6057_v57  ;;  %v4222_v49 = vsel %vm2093_vm3, %v4214_v4, %v6058_v50  ;;  %v8493_v50 = vld [vmem:[#allocation19_spill] sm:$0xff] }
0x1905   : > { %5806 = vmatprep.mubr.msk.bf16.mxu0 %vm536_vm0, %v4231_v3 }
0x1906   : > { %5807 = vmatmul.mubr.msk.bf16.vlgmr.msra.gmra.mxu0 %vm536_vm0, %v4232_v14  ;;  %v4219_v0 = vsel %vm2093_vm3, %v4211_v45, %v6052_v2  ;;  %v4220_v56 = vsel %vm2093_vm3, %v4212_v58, %v6053_v5 }
0x190a   : > { %v6066_v54 = vpop.permute.xlu1 %6065 }
0x190b   : > { %v6068_v36 = vunpack.i.h.bf16 %v6066_v54  ;;  %v6067_v47 = vunpack.i.l.bf16 %v6066_v54 }
0x190c   : > { %v6061_v18 = vpop.permute.xlu0 %6060 }
0x190d   : > { %v6063_v39 = vunpack.i.h.bf16 %v6061_v18  ;;  %v6062_v27 = vunpack.i.l.bf16 %v6061_v18  ;;  %v4229_v24 = vsel %vm2102_vm4, %v4221_v41, %v6067_v47  ;;  %v4230_v10 = vsel %vm2102_vm4, %v4222_v49, %v6068_v36 }
0x190e   : > { %v4234_v46 = vpack.c.bf16 %v4230_v10, %v4229_v24 }
0x190f   : > { %v4227_v44 = vsel %vm2102_vm4, %v4219_v0, %v6062_v27  ;;  %v4228_v1 = vsel %vm2102_vm4, %v4220_v56, %v6063_v39 }
0x1910   : > { %v4233_v60 = vpack.c.bf16 %v4228_v1, %v4227_v44 }
0x1912   : > { %5810 = vmatprep.mubr.msk.bf16.mxu0 %vm536_vm0, %v4233_v60 }
0x1913   : > { %5811 = vmatmul.mubr.msk.bf16.gmra.mxu0 %vm536_vm0, %v4234_v46 }
0x19c6   : > { %v5808_v35 = vpop.f32.mrf.mxu0 }
0x19c7   : > { %v4315_v51 = vadd.f32 %v5808_v35, %v5080_v11 }
0x19c8   : > { %v4306_v38 = vpop.f32.mrf.mxu0 }
0x19c9   : > { %v4307_v21 = vadd.f32 %v5080_v11, %v4306_v38  ;;  %v8255_v28 = vadd.f32 %v4315_v51, %v8487_v61 }
0x19ca   : > { %v5809_v33 = vpop.f32.mrf.mxu0 }
0x19cb   : > { %v8252_v37 = vadd.f32 %v4307_v21, %v8486_v42  ;;  %v4318_v31 = vadd.f32 %v5809_v33, %v5080_v11  ;;  %v4351_v32 = vsel %vm536_vm0, %v8255_v28, 0.0 }
0x19cc   : > { %v4309_v53 = vpop.f32.mrf.mxu0 }
0x19cd   : > { %v4310_v8 = vadd.f32 %v5080_v11, %v4309_v53  ;;  %v4345_v19 = vsel %vm536_vm0, %v8252_v37, 0.0  ;;  %v8263_v43 = vadd.f32 %v4318_v31, %v8489_v15 }
0x19ce   : > { %4346 = vadd.xlane.f32.xlu0 %v4345_v19 }
0x19cf   : > { %v8260_v9 = vadd.f32 %v4310_v8, %v8488_v34  ;;  %v4354_v14 = vsel %vm536_vm0, %v8263_v43, 0.0 }
0x19d1   : > { %v4348_v12 = vsel %vm536_vm0, %v8260_v9, 0.0 }
0x19d2   : > { %4349 = vadd.xlane.f32.xlu1 %v4348_v12  ;;  %4352 = vadd.xlane.f32.xlu0 %v4351_v32 }
0x19d3   : > { %v5812_v3 = vpop.f32.mrf.mxu0 }
0x19d4   : > { %v4331_v23 = vadd.f32 %v5812_v3, %v5080_v11 }
0x19d5   : > { %v4322_v22 = vpop.f32.mrf.mxu0 }
0x19d6   : > { %v4323_v29 = vadd.f32 %v5080_v11, %v4322_v22  ;;  %4355 = vadd.xlane.f32.xlu0 %v4354_v14  ;;  %v8275_v17 = vadd.f32 %v4331_v23, %v8491_v7  ;;  %v6087_v22 = vld [vmem:[#allocation4 + $0x18] sm:$0xff]   ;;  %v6088_v14 = vld [vmem:[#allocation4 + $0x10] sm:$0xff]  }
0x19d7   : > { %v5813_v59 = vpop.f32.mrf.mxu0  ;;  %5814 = vmatprep.subr.bf16.mxu1 %v6087_v22 }
0x19d8   : > { %v8272_v40 = vadd.f32 %v4323_v29, %v8490_v6  ;;  %v4334_v30 = vadd.f32 %v5813_v59, %v5080_v11  ;;  %v4363_v63 = vsel %vm536_vm0, %v8275_v17, 0.0  ;;  %5815 = vmatpush3.bf16.msra.mxu1 %v6087_v22 }
0x19d9   : > { %v4325_v52 = vpop.f32.mrf.mxu0  ;;  %5816 = vmatprep.subr.bf16.mxu1 %v6088_v14 }
0x19da   : > { %v4326_v48 = vadd.f32 %v5080_v11, %v4325_v52  ;;  %v4357_v62 = vsel %vm536_vm0, %v8272_v40, 0.0  ;;  %v8283_v57 = vadd.f32 %v4334_v30, %v8493_v50 }
0x19db   : > { %4358 = vadd.xlane.f32.xlu0 %v4357_v62 }
0x19dc   : > { %v8280_v16 = vadd.f32 %v4326_v48, %v8492_v26  ;;  %v4366_v55 = vsel %vm536_vm0, %v8283_v57, 0.0  ;;  %5817 = vmatpush3.bf16.msra.mxu1 %v6088_v14 }
0x19de   : > { %v4360_v20 = vsel %vm536_vm0, %v8280_v16, 0.0 }
0x19df   : > { %4361 = vadd.xlane.f32.xlu1 %v4360_v20  ;;  %4364 = vadd.xlane.f32.xlu0 %v4363_v63 }
0x19e3   : > { %4367 = vadd.xlane.f32.xlu1 %v4366_v55 }
0x1a57   : > { %v4347_v13 = vpop.xlane.xlu0 %4346 }
0x1a58   : > { %v4369_v5 = vmul.f32 0.03125, %v4347_v13 }
0x1a5a   : > { %v8292_v2 = vsub.f32 %v8252_v37, %v4369_v5 }
0x1a5b   : > { %v4350_v54 = vpop.xlane.xlu1 %4349  ;;  %v4353_v36 = vpop.xlane.xlu0 %4352 }
0x1a5c   : > { %v4370_v47 = vmul.f32 0.03125, %v4350_v54  ;;  %v4371_v45 = vmul.f32 0.03125, %v4353_v36  ;;  %v4385_v58 = vmul.f32 %v8292_v2, %v8292_v2 }
0x1a5e   : > { %v8297_v4 = vsub.f32 %v8260_v9, %v4370_v47  ;;  %v8300_v25 = vsub.f32 %v8255_v28, %v4371_v45  ;;  %v4393_v18 = vsel %vm536_vm0, %v4385_v58, 0.0 }
0x1a5f   : > { %4394 = vadd.xlane.f32.xlu0 %v4393_v18  ;;  %v4356_v41 = vpop.xlane.xlu0 %4355  ;;  %v5088_v18 = vld [vmem:[%s8413_s8 + $0x1] ss:$0 sm:$0xff] }
0x1a60   : > { %v4372_v49 = vmul.f32 0.03125, %v4356_v41  ;;  %v4386_v39 = vmul.f32 %v8297_v4, %v8297_v4  ;;  %v4387_v27 = vmul.f32 %v8300_v25, %v8300_v25 }
0x1a62   : > { %v8308_v0 = vsub.f32 %v8263_v43, %v4372_v49  ;;  %v4396_v56 = vsel %vm536_vm0, %v4386_v39, 0.0  ;;  %v4399_v24 = vsel %vm536_vm0, %v4387_v27, 0.0 }
0x1a63   : > { %4397 = vadd.xlane.f32.xlu1 %v4396_v56  ;;  %4400 = vadd.xlane.f32.xlu0 %v4399_v24 }
0x1a64   : > { %v4359_v10 = vpop.xlane.xlu0 %4358  ;;  %v4388_v44 = vmul.f32 %v8308_v0, %v8308_v0 }
0x1a65   : > { %v4373_v1 = vmul.f32 0.03125, %v4359_v10 }
0x1a66   : > { %v4402_v60 = vsel %vm536_vm0, %v4388_v44, 0.0 }
0x1a67   : > { %v8316_v46 = vsub.f32 %v8272_v40, %v4373_v1  ;;  %4403 = vadd.xlane.f32.xlu1 %v4402_v60 }
0x1a68   : > { %v4362_v35 = vpop.xlane.xlu1 %4361  ;;  %v4365_v11 = vpop.xlane.xlu0 %4364 }
0x1a69   : > { %v4374_v38 = vmul.f32 0.03125, %v4362_v35  ;;  %v4375_v51 = vmul.f32 0.03125, %v4365_v11  ;;  %v4389_v21 = vmul.f32 %v8316_v46, %v8316_v46 }
0x1a6b   : > { %v8321_v33 = vsub.f32 %v8280_v16, %v4374_v38  ;;  %v8324_v42 = vsub.f32 %v8275_v17, %v4375_v51  ;;  %v4405_v53 = vsel %vm536_vm0, %v4389_v21, 0.0 }
0x1a6c   : > { %v4368_v61 = vpop.xlane.xlu1 %4367  ;;  %4406 = vadd.xlane.f32.xlu0 %v4405_v53 }
0x1a6d   : > { %v4376_v31 = vmul.f32 0.03125, %v4368_v61  ;;  %v4390_v8 = vmul.f32 %v8321_v33, %v8321_v33  ;;  %v4391_v19 = vmul.f32 %v8324_v42, %v8324_v42 }
0x1a6f   : > { %v8332_v34 = vsub.f32 %v8283_v57, %v4376_v31  ;;  %v4408_v15 = vsel %vm536_vm0, %v4390_v8, 0.0  ;;  %v4411_v12 = vsel %vm536_vm0, %v4391_v19, 0.0 }
0x1a70   : > { %4409 = vadd.xlane.f32.xlu1 %v4408_v15  ;;  %4412 = vadd.xlane.f32.xlu0 %v4411_v12 }
0x1a71   : > { %v4392_v32 = vmul.f32 %v8332_v34, %v8332_v34 }
0x1a73   : > { %v4414_v3 = vsel %vm536_vm0, %v4392_v32, 0.0 }
0x1a74   : > { %4415 = vadd.xlane.f32.xlu1 %v4414_v3 }
0x1ae8   : > { %v4395_v23 = vpop.xlane.xlu0 %4394 }
0x1ae9   : > { %v4417_v29 = vmul.f32 0.03125, %v4395_v23 }
0x1aeb   : > { %v4425_v59 = vadd.f32 1e-05, %v4417_v29 }
0x1aec   : > { %v4398_v6 = vpop.xlane.xlu1 %4397  ;;  %v4401_v52 = vpop.xlane.xlu0 %4400 }
0x1aed   : > { %6417 = vrsqrt.f32 %v4425_v59  ;;  %v4418_v7 = vmul.f32 0.03125, %v4398_v6  ;;  %v4419_v30 = vmul.f32 0.03125, %v4401_v52 }
0x1aef   : > { %v4426_v48 = vadd.f32 1e-05, %v4418_v7  ;;  %v4427_v62 = vadd.f32 1e-05, %v4419_v30 }
0x1af0   : > { %v4404_v26 = vpop.xlane.xlu1 %4403 }
0x1af1   : > { %6419 = vrsqrt.f32 %v4426_v48  ;;  %v4420_v50 = vmul.f32 0.03125, %v4404_v26  ;;  %v6092_v26 = vld [vmem:[%s8417_s12 + $0x60] sm:$0xff]  }
0x1af2   : > { %6421 = vrsqrt.f32 %v4427_v62 }
0x1af3   : > { %v4428_v20 = vadd.f32 1e-05, %v4420_v50  ;;  %v6093_v50 = vld [vmem:[%s8417_s12 + $0x58] sm:$0xff]  }
0x1af5   : > { %6423 = vrsqrt.f32 %v4428_v20  ;;  %v4407_v63 = vpop.xlane.xlu0 %4406  ;;  %v6094_v20 = vld [vmem:[%s8417_s12 + $0x50] sm:$0xff]  }
0x1af6   : > { %v4421_v55 = vmul.f32 0.03125, %v4407_v63  ;;  %v6095_v63 = vld [vmem:[%s8417_s12 + $0x48] sm:$0xff]  }
0x1af8   : > { %v4429_v13 = vadd.f32 1e-05, %v4421_v55  ;;  %v6096_v55 = vld [vmem:[%s8417_s12 + $0x40] sm:$0xff]  }
0x1af9   : > { %v4410_v5 = vpop.xlane.xlu1 %4409  ;;  %v4413_v54 = vpop.xlane.xlu0 %4412 }
0x1afa   : > { %v6418_v36 = vpop.eup %6417  ;;  %6425 = vrsqrt.f32 %v4429_v13  ;;  %v4422_v47 = vmul.f32 0.03125, %v4410_v5  ;;  %v4423_v45 = vmul.f32 0.03125, %v4413_v54  ;;  %v5091_v13 = vld [vmem:[#allocation6 + $0x1] ss:$0 sm:$0xff] }
0x1afb   : > { %v4441_v58 = vmul.f32 %v6418_v36, %v8292_v2  ;;  %v5090_v2 = vld [vmem:[%s8414_s9 + $0x1] ss:$0 sm:$0xff] }
0x1afc   : > { %v4430_v41 = vadd.f32 1e-05, %v4422_v47  ;;  %v4431_v49 = vadd.f32 1e-05, %v4423_v45 }
0x1afd   : > { %v4416_v39 = vpop.xlane.xlu1 %4415  ;;  %v4457_v44 = vmul.f32 %v5088_v18, %v4441_v58 }
0x1afe   : > { %v6420_v27 = vpop.eup %6419  ;;  %6427 = vrsqrt.f32 %v4430_v41  ;;  %v4424_v56 = vmul.f32 0.03125, %v4416_v39 }
0x1aff   : > { %v6422_v24 = vpop.eup %6421  ;;  %6429 = vrsqrt.f32 %v4431_v49  ;;  %v4442_v10 = vmul.f32 %v6420_v27, %v8297_v4  ;;  %v4473_v21 = vadd.f32 %v5090_v2, %v4457_v44 }
0x1b00   : > { %v4443_v1 = vmul.f32 %v6422_v24, %v8300_v25  ;;  %v4432_v60 = vadd.f32 1e-05, %v4424_v56 }
0x1b01   : > { %v4458_v35 = vmul.f32 %v5088_v18, %v4442_v10 }
0x1b02   : > { %v6424_v11 = vpop.eup %6423  ;;  %6431 = vrsqrt.f32 %v4432_v60  ;;  %v4459_v38 = vmul.f32 %v5088_v18, %v4443_v1 }
0x1b03   : > { %v4444_v51 = vmul.f32 %v6424_v11, %v8308_v0  ;;  %v4474_v53 = vadd.f32 %v5090_v2, %v4458_v35 }
0x1b04   : > { %v4475_v4 = vadd.f32 %v5090_v2, %v4459_v38 }
0x1b05   : > { %v4460_v61 = vmul.f32 %v5088_v18, %v4444_v51  ;;  %v4481_v31 = vpack.c.bf16 %v4474_v53, %v4473_v21 }
0x1b07   : > { %v6426_v8 = vpop.eup %6425  ;;  %5818 = vmatprep.mubr.msk.bf16.mxu1 %vm536_vm0, %v4481_v31  ;;  %v4476_v25 = vadd.f32 %v5090_v2, %v4460_v61 }
0x1b08   : > { %v4445_v19 = vmul.f32 %v6426_v8, %v8316_v46 }
0x1b09   : > { %v4482_v15 = vpack.c.bf16 %v4476_v25, %v4475_v4 }
0x1b0a   : > { %v4461_v22 = vmul.f32 %v5088_v18, %v4445_v19 }
0x1b0b   : > { %v6428_v12 = vpop.eup %6427  ;;  %5819 = vmatmul.mubr.msk.bf16.vlgmr.msra.gmra.mxu1 %vm536_vm0, %v4482_v15 }
0x1b0c   : > { %v6430_v32 = vpop.eup %6429  ;;  %v4446_v3 = vmul.f32 %v6428_v12, %v8321_v33  ;;  %v4477_v29 = vadd.f32 %v5090_v2, %v4461_v22  ;;  %v6089_v33 = vld [vmem:[%s8417_s12 + $0x78] sm:$0xff]  }
0x1b0d   : > { %v4447_v0 = vmul.f32 %v6430_v32, %v8324_v42  ;;  %5826 = vmatprep.subr.bf16.mxu0 %v6089_v33  ;;  %v6090_v42 = vld [vmem:[%s8417_s12 + $0x70] sm:$0xff]  }
0x1b0e   : > { %v4462_v14 = vmul.f32 %v5088_v18, %v4446_v3  ;;  %5827 = vmatpush3.bf16.msra.mxu0 %v6089_v33 }
0x1b0f   : > { %v6432_v23 = vpop.eup %6431  ;;  %v4463_v52 = vmul.f32 %v5088_v18, %v4447_v0  ;;  %5828 = vmatprep.subr.bf16.mxu0 %v6090_v42 }
0x1b10   : > { %v4478_v59 = vadd.f32 %v5090_v2, %v4462_v14  ;;  %v4448_v6 = vmul.f32 %v6432_v23, %v8332_v34  ;;  %v6091_v34 = vld [vmem:[%s8417_s12 + $0x68] sm:$0xff]  }
0x1b11   : > { %v4479_v46 = vadd.f32 %v5090_v2, %v4463_v52 }
0x1b12   : > { %v4483_v7 = vpack.c.bf16 %v4478_v59, %v4477_v29  ;;  %v4464_v30 = vmul.f32 %v5088_v18, %v4448_v6  ;;  %5829 = vmatpush3.bf16.msra.mxu0 %v6090_v42 }
0x1b13   : > { %5830 = vmatprep.subr.bf16.mxu0 %v6091_v34 }
0x1b14   : > { %5822 = vmatprep.mubr.msk.bf16.mxu1 %vm536_vm0, %v4483_v7  ;;  %v4480_v48 = vadd.f32 %v5090_v2, %v4464_v30 }
0x1b16   : > { %v4484_v62 = vpack.c.bf16 %v4480_v48, %v4479_v46  ;;  %5831 = vmatpush3.bf16.msra.mxu0 %v6091_v34 }
0x1b17   : > { %5832 = vmatprep.subr.bf16.mxu0 %v6092_v26 }
0x1b18   : > { %5823 = vmatmul.mubr.msk.bf16.gmra.mxu1 %vm536_vm0, %v4484_v62 }
0x1b1a   : > { %5833 = vmatpush3.bf16.msra.mxu0 %v6092_v26 }
0x1b1b   : > { %5834 = vmatprep.subr.bf16.mxu0 %v6093_v50 }
0x1b1e   : > { %5835 = vmatpush3.bf16.msra.mxu0 %v6093_v50 }
0x1b1f   : > { %5836 = vmatprep.subr.bf16.mxu0 %v6094_v20 }
0x1b22   : > { %5837 = vmatpush3.bf16.msra.mxu0 %v6094_v20 }
0x1b23   : > { %5838 = vmatprep.subr.bf16.mxu0 %v6095_v63 }
0x1b26   : > { %5839 = vmatpush3.bf16.msra.mxu0 %v6095_v63 }
0x1b27   : > { %5840 = vmatprep.subr.bf16.mxu0 %v6096_v55 }
0x1b2a   : > { %5841 = vmatpush3.bf16.msra.mxu0 %v6096_v55 }
0x1bcb   : > { %v5820_v5 = vpop.f32.mrf.mxu1 }
0x1bcc   : > { %v4565_v54 = vadd.f32 %v5820_v5, %v5091_v13 }
0x1bcd   : > { %v4556_v36 = vpop.f32.mrf.mxu1 }
0x1bce   : > { %v4557_v47 = vadd.f32 %v5091_v13, %v4556_v36  ;;  %v4597_v45 = vmul.f32 0.70710677, %v4565_v54  ;;  %v4589_v0 = vmul.f32 0.5, %v4565_v54 }
0x1bcf   : > { %v5821_v58 = vpop.f32.mrf.mxu1 }
0x1bd0   : > { %v4595_v18 = vmul.f32 0.70710677, %v4557_v47  ;;  %v4568_v41 = vadd.f32 %v5821_v58, %v5091_v13  ;;  %v4587_v32 = vmul.f32 0.5, %v4557_v47  ;;  %v5122_v58 = vld [vmem:[#allocation7 + $0x1] ss:$0 sm:$0xff] }
0x1bd1   : > { %v4559_v49 = vpop.f32.mrf.mxu1 }
0x1bd2   : > { %6433 = verf.f32 %v4595_v18  ;;  %v4598_v39 = vmul.f32 0.70710677, %v4568_v41  ;;  %v4560_v27 = vadd.f32 %v5091_v13, %v4559_v49  ;;  %v4590_v12 = vmul.f32 0.5, %v4568_v41 }
0x1bd3   : > { %6435 = verf.f32 %v4597_v45 }
0x1bd4   : > { %6437 = verf.f32 %v4598_v39  ;;  %v4596_v56 = vmul.f32 0.70710677, %v4560_v27  ;;  %v4588_v3 = vmul.f32 0.5, %v4560_v27 }
0x1bd6   : > { %6439 = verf.f32 %v4596_v56 }
0x1bd8   : > { %v5824_v24 = vpop.f32.mrf.mxu1 }
0x1bd9   : > { %v4581_v10 = vadd.f32 %v5824_v24, %v5091_v13 }
0x1bda   : > { %v4572_v44 = vpop.f32.mrf.mxu1 }
0x1bdb   : > { %v4573_v1 = vadd.f32 %v5091_v13, %v4572_v44  ;;  %v4601_v60 = vmul.f32 0.70710677, %v4581_v10  ;;  %v4593_v63 = vmul.f32 0.5, %v4581_v10 }
0x1bdc   : > { %v5825_v2 = vpop.f32.mrf.mxu1 }
0x1bdd   : > { %v4599_v35 = vmul.f32 0.70710677, %v4573_v1  ;;  %v4584_v11 = vadd.f32 %v5825_v2, %v5091_v13  ;;  %v4591_v26 = vmul.f32 0.5, %v4573_v1 }
0x1bde   : > { %v4575_v38 = vpop.f32.mrf.mxu1 }
0x1bdf   : > { %v6434_v51 = vpop.eup %6433  ;;  %6441 = verf.f32 %v4599_v35  ;;  %v4602_v21 = vmul.f32 0.70710677, %v4584_v11  ;;  %v4576_v53 = vadd.f32 %v5091_v13, %v4575_v38  ;;  %v4594_v34 = vmul.f32 0.5, %v4584_v11 }
0x1be0   : > { %v6436_v61 = vpop.eup %6435  ;;  %6443 = verf.f32 %v4601_v60  ;;  %v4611_v4 = vadd.f32 1.0, %v6434_v51 }
0x1be1   : > { %v6438_v31 = vpop.eup %6437  ;;  %6445 = verf.f32 %v4602_v21  ;;  %v4600_v8 = vmul.f32 0.70710677, %v4576_v53  ;;  %v4613_v15 = vadd.f32 1.0, %v6436_v61  ;;  %v4592_v50 = vmul.f32 0.5, %v4576_v53 }
0x1be2   : > { %v4614_v25 = vadd.f32 1.0, %v6438_v31  ;;  %v4619_v23 = vmul.f32 %v4611_v4, %v4587_v32 }
0x1be3   : > { %v6440_v19 = vpop.eup %6439  ;;  %6447 = verf.f32 %v4600_v8  ;;  %v4621_v59 = vmul.f32 %v4613_v15, %v4589_v0 }
0x1be4   : > { %v4612_v22 = vadd.f32 1.0, %v6440_v19  ;;  %v4622_v14 = vmul.f32 %v4614_v25, %v4590_v12 }
0x1be6   : > { %v4620_v29 = vmul.f32 %v4612_v22, %v4588_v3  ;;  %v4628_v52 = vpack.c.bf16 %v4622_v14, %v4621_v59 }
0x1be8   : > { %v4627_v6 = vpack.c.bf16 %v4620_v29, %v4619_v23 }
0x1bea   : > { %5842 = vmatprep.mubr.bf16.mxu0 %v4627_v6 }
0x1beb   : > { %5843 = vmatmul.mubr.bf16.vlgmr.msra.gmra.mxu0 %v4628_v52 }
0x1bec   : > { %v6442_v7 = vpop.eup %6441 }
0x1bed   : > { %v6444_v30 = vpop.eup %6443  ;;  %v4615_v48 = vadd.f32 1.0, %v6442_v7 }
0x1bee   : > { %v6446_v46 = vpop.eup %6445  ;;  %v4617_v42 = vadd.f32 1.0, %v6444_v30 }
0x1bef   : > { %v4618_v62 = vadd.f32 1.0, %v6446_v46  ;;  %v4623_v13 = vmul.f32 %v4615_v48, %v4591_v26 }
0x1bf0   : > { %v6448_v33 = vpop.eup %6447  ;;  %v4625_v54 = vmul.f32 %v4617_v42, %v4593_v63 }
0x1bf1   : > { %v4616_v20 = vadd.f32 1.0, %v6448_v33  ;;  %v4626_v55 = vmul.f32 %v4618_v62, %v4594_v34 }
0x1bf3   : > { %v4624_v5 = vmul.f32 %v4616_v20, %v4592_v50  ;;  %v4630_v47 = vpack.c.bf16 %v4626_v55, %v4625_v54 }
0x1bf5   : > { %v4629_v36 = vpack.c.bf16 %v4624_v5, %v4623_v13 }
0x1bf7   : > { %5846 = vmatprep.mubr.bf16.mxu0 %v4629_v36 }
0x1bf8   : > { %5847 = vmatmul.mubr.bf16.gmra.mxu0 %v4630_v47 }
0x1cab   : > { %v5844_v45 = vpop.f32.mrf.mxu0 }
0x1cac   : > { %v4763_v18 = vadd.f32 %v5844_v45, %v8255_v28 }
0x1cad   : > { %v4730_v41 = vpop.f32.mrf.mxu0 }
0x1cae   : > { %v4779_v49 = vadd.f32 %v5122_v58, %v4763_v18  ;;  %v4761_v39 = vadd.f32 %v4730_v41, %v8252_v37 }
0x1caf   : > { %v5845_v27 = vpop.f32.mrf.mxu0 }
0x1cb0   : > { %4787 = vst.msk [vmem:[%s526_s28 + $0x10] sm:$0xff] %vm536_vm0, %v4779_v49  ;;  %v4777_v56 = vadd.f32 %v5122_v58, %v4761_v39  ;;  %v4764_v24 = vadd.f32 %v5845_v27, %v8263_v43 }
0x1cb1   : > { %v4733_v10 = vpop.f32.mrf.mxu0 }
0x1cb2   : > { %4785 = vst.msk [vmem:[%s526_s28] sm:$0xff] %vm536_vm0, %v4777_v56  ;;  %v4780_v44 = vadd.f32 %v5122_v58, %v4764_v24  ;;  %v4762_v28 = vadd.f32 %v4733_v10, %v8260_v9 }
0x1cb4   : > { %4788 = vst.msk [vmem:[%s526_s28 + $0x18] sm:$0xff] %vm536_vm0, %v4780_v44  ;;  %v4778_v1 = vadd.f32 %v5122_v58, %v4762_v28 }
0x1cb6   : > { %4786 = vst.msk [vmem:[%s526_s28 + $0x8] sm:$0xff] %vm536_vm0, %v4778_v1 }
0x1cb8   : > { %v5848_v60 = vpop.f32.mrf.mxu0 }
0x1cb9   : > { %v4767_v37 = vadd.f32 %v5848_v60, %v8275_v17 }
0x1cba   : > { %v4746_v2 = vpop.f32.mrf.mxu0 }
0x1cbb   : > { %v4783_v35 = vadd.f32 %v5122_v58, %v4767_v37  ;;  %v4765_v11 = vadd.f32 %v4746_v2, %v8272_v40 }
0x1cbc   : > { %v5849_v38 = vpop.f32.mrf.mxu0 }
0x1cbd   : > { %4791 = vst.msk [vmem:[%s526_s28 + $0x30] sm:$0xff] %vm536_vm0, %v4783_v35  ;;  %v4781_v43 = vadd.f32 %v5122_v58, %v4765_v11  ;;  %v4768_v51 = vadd.f32 %v5849_v38, %v8283_v57 }
0x1cbe   : > { %v4749_v21 = vpop.f32.mrf.mxu0 }
0x1cbf   : > { %4789 = vst.msk [vmem:[%s526_s28 + $0x20] sm:$0xff] %vm536_vm0, %v4781_v43  ;;  %v4784_v9 = vadd.f32 %v5122_v58, %v4768_v51  ;;  %v4766_v53 = vadd.f32 %v4749_v21, %v8280_v16 }
0x1cc1   : > { %4792 = vst.msk [vmem:[%s526_s28 + $0x38] sm:$0xff] %vm536_vm0, %v4784_v9  ;;  %v4782_v61 = vadd.f32 %v5122_v58, %v4766_v53 }
0x1cc3   : > { %4790 = vst.msk [vmem:[%s526_s28 + $0x28] sm:$0xff] %vm536_vm0, %v4782_v61 }
0x1cc4 PF: > { %s27_s29 = sadd.s32 1, %s6579_s29  }
0x1cc5   : > { %p24_p7 = scmp.ge.s32.totalorder %s27_s29, 4  }
0x1cc7   :  { %26 = sbr.rel (!%p24_p7) target bundleno = 3 (0x3), region = 142 }
0x1ccc   :  { %4814 = vsyncpa [#allocation3], 1 }
0x1ccd   :  { %4816 = vsyncpa [#allocation3 + $0x1], 1 }
0x1cce   :  { %4817 = vsyncpa [#allocation5], 1 }
0x1ccf   :  { %4818 = vsyncpa [#allocation8], 1 }

</bundles_post_ra>
